<compile_context>
chip_gen: v5e
topology: v5e:2x2
jax: 0.10.0
libtpu: 0.0.40
codegen_flags: <defaults>
</compile_context>

<pallas_src>
import jax
import jax.numpy as jnp
from jax.experimental import pallas as pl
from jax.experimental.pallas import tpu as pltpu

POOL_K = 5      # F.avg_pool2d kernel_size
POOL_S = 3      # F.avg_pool2d stride
CONV1_K = 5     # conv1 kernel_size
C_MID = 128     # conv0 out channels
C_OUT = 768     # conv1 out channels
BN_EPS = 1e-3   # BatchNorm2d eps=0.001


def _round_up(v, m):
    return (v + m - 1) // m * m


def _inception_aux_kernel(
    x_ref,        # (N, H, W, Cinp)  f32, resident
    w0_ref,       # (Cinp, 128)      f32, BN0 scale folded in
    b0_ref,       # (1, 128)         f32, BN0 shift
    w1_ref,       # (1, 640, 768)    bf16 block (tap row r), BN1 scale folded in
    s1_ref,       # (1, 768)         f32, BN1 shift
    wfc_ref,      # (768, NCp)       bf16
    bfc_ref,      # (1, NCp)         f32
    out_ref,      # (N, NCp)         f32
    h0_ref,       # scratch (25*N, 128) f32  -- conv0 activations for all taps
    acc_ref,      # scratch (N, 768)    f32  -- conv1 accumulator
):
    r = pl.program_id(0)
    n = x_ref.shape[0]
    inv_pool = 1.0 / float(POOL_K * POOL_K)

    # ---- step 0: pooling (vectorized, ref-sliced) + conv0 as ONE big matmul ----------
    @pl.when(r == 0)
    def _init():
        pieces = []
        for oh in range(CONV1_K):
            # vertical sum of 5 input rows (slices taken straight from the ref)
            vsum = x_ref[:, oh * POOL_S, :, :]
            for dh in range(1, POOL_K):
                vsum = vsum + x_ref[:, oh * POOL_S + dh, :, :]        # (N, W, Cinp)
            # horizontal 5-wide window sums -> one pooled pixel per ow
            for ow in range(CONV1_K):
                win = vsum[:, ow * POOL_S: ow * POOL_S + POOL_K, :]    # (N, 5, Cinp)
                pieces.append(jnp.sum(win, axis=1))                    # (N, Cinp)
        pooled = jnp.concatenate(pieces, axis=0) * inv_pool            # (25*N, Cinp)

        # conv0 (1x1) + folded BN + ReLU: single MXU matmul, M = 25*N
        h0 = jnp.dot(pooled, w0_ref[...], preferred_element_type=jnp.float32)
        h0_ref[...] = jnp.maximum(h0 + b0_ref[...], 0.0)               # (25*N, 128)
        acc_ref[...] = jnp.zeros_like(acc_ref)

    # ---- conv1 (5x5): one tap row per grid step, K = 5*128 contraction on the MXU ----
    cols = [h0_ref[pl.ds((r * CONV1_K + ow) * n, n), :] for ow in range(CONV1_K)]
    h0_wide = jnp.concatenate(cols, axis=1).astype(w1_ref.dtype)       # (N, 640) bf16
    acc_ref[...] += jnp.dot(h0_wide, w1_ref[0],
                            preferred_element_type=jnp.float32)        # (N, 768)

    # ---- finalize: BN1 shift + ReLU, adaptive pool (identity at 1x1), fc -------------
    @pl.when(r == pl.num_programs(0) - 1)
    def _final():
        h1 = jnp.maximum(acc_ref[...] + s1_ref[...], 0.0)              # (N, 768)
        out = jnp.dot(h1.astype(wfc_ref.dtype), wfc_ref[...],
                      preferred_element_type=jnp.float32) + bfc_ref[...]
        out_ref[...] = out.astype(out_ref.dtype)


def inception_aux_forward(x_nchw, params):
    """x_nchw: (N, Cin, H, W) float32, like the PyTorch module input."""
    n, cin, h, w = x_nchw.shape
    ph = (h - POOL_K) // POOL_S + 1
    pw = (w - POOL_K) // POOL_S + 1
    assert ph == CONV1_K and pw == CONV1_K, (
        "fused kernel assumes a 5x5 pooled map (e.g. the canonical 17x17 aux input)")

    # ---- eval-mode BatchNorm folding (f32, in the wrapper) ----------------------------
    scale0 = params["bn0_g"] * jax.lax.rsqrt(params["bn0_v"] + BN_EPS)
    shift0 = params["bn0_b"] - params["bn0_m"] * scale0
    scale1 = params["bn1_g"] * jax.lax.rsqrt(params["bn1_v"] + BN_EPS)
    shift1 = params["bn1_b"] - params["bn1_m"] * scale1

    # ---- layout plumbing (plain JAX) --------------------------------------------------
    cinp = _round_up(cin, 128)
    x = jnp.transpose(x_nchw, (0, 2, 3, 1))                           # NCHW -> NHWC
    if cinp != cin:
        x = jnp.pad(x, ((0, 0), (0, 0), (0, 0), (0, cinp - cin)))

    w0 = jnp.transpose(params["conv0_w"][:, :, 0, 0], (1, 0))         # (Cin, 128)
    if cinp != cin:
        w0 = jnp.pad(w0, ((0, cinp - cin), (0, 0)))
    w0 = (w0 * scale0[None, :]).astype(jnp.float32)                   # fold BN0 scale
    b0 = shift0.reshape(1, C_MID).astype(jnp.float32)

    w1 = jnp.transpose(params["conv1_w"], (2, 3, 1, 0))               # (kh, kw, ci, co)
    w1 = (w1 * scale1).reshape(CONV1_K, CONV1_K * C_MID, C_OUT)       # fold BN1 scale
    w1 = w1.astype(jnp.bfloat16)                                      # halve HBM read
    s1 = shift1.reshape(1, C_OUT).astype(jnp.float32)

    nc = params["fc_w"].shape[0]
    ncp = _round_up(nc, 128)                                          # lane-dense output
    wfc = jnp.transpose(params["fc_w"], (1, 0))                       # (768, NC)
    wfc = jnp.pad(wfc, ((0, 0), (0, ncp - nc))).astype(jnp.bfloat16)
    bfc = jnp.pad(params["fc_b"], (0, ncp - nc)).reshape(1, ncp).astype(jnp.float32)

    out = pl.pallas_call(
        _inception_aux_kernel,
        out_shape=jax.ShapeDtypeStruct((n, ncp), jnp.float32),
        grid=(CONV1_K,),                                              # stream w1 by tap row
        in_specs=[
            pl.BlockSpec((n, h, w, cinp), lambda r: (0, 0, 0, 0)),    # x resident
            pl.BlockSpec((cinp, C_MID), lambda r: (0, 0)),            # w0 resident
            pl.BlockSpec((1, C_MID), lambda r: (0, 0)),               # b0
            pl.BlockSpec((1, CONV1_K * C_MID, C_OUT), lambda r: (r, 0, 0)),  # w1 streamed
            pl.BlockSpec((1, C_OUT), lambda r: (0, 0)),               # s1
            pl.BlockSpec((C_OUT, ncp), lambda r: (0, 0)),             # wfc resident
            pl.BlockSpec((1, ncp), lambda r: (0, 0)),                 # bfc
        ],
        out_specs=pl.BlockSpec((n, ncp), lambda r: (0, 0)),
        scratch_shapes=[
            pltpu.VMEM((CONV1_K * CONV1_K * n, C_MID), jnp.float32),  # h0 for all 25 taps
            pltpu.VMEM((n, C_OUT), jnp.float32),                      # conv1 accumulator
        ],
        compiler_params=pltpu.CompilerParams(
            dimension_semantics=("arbitrary",),                       # reduction over tap rows
            vmem_limit_bytes=32 * 1024 * 1024,                        # <= 64 MiB (v7x safe)
        ),
    )(x, w0, b0, w1, s1, wfc, bfc)

    return out[:, :nc]


def init_params(key, in_channels, num_classes):
    ks = jax.random.split(key, 12)
    p = {}
    p["conv0_w"] = 0.1 * jax.random.normal(ks[0], (C_MID, in_channels, 1, 1), jnp.float32)
    p["conv1_w"] = 0.05 * jax.random.normal(ks[1], (C_OUT, C_MID, CONV1_K, CONV1_K), jnp.float32)
    p["fc_w"] = 0.05 * jax.random.normal(ks[2], (num_classes, C_OUT), jnp.float32)
    p["fc_b"] = 0.1 * jax.random.normal(ks[3], (num_classes,), jnp.float32)
    # BatchNorm (eval-mode running statistics).
    p["bn0_g"] = 1.0 + 0.1 * jax.random.normal(ks[4], (C_MID,), jnp.float32)
    p["bn0_b"] = 0.1 * jax.random.normal(ks[5], (C_MID,), jnp.float32)
    p["bn0_m"] = 0.05 * jax.random.normal(ks[6], (C_MID,), jnp.float32)
    p["bn0_v"] = 0.5 + jnp.abs(jax.random.normal(ks[7], (C_MID,), jnp.float32))
    p["bn1_g"] = 1.0 + 0.1 * jax.random.normal(ks[8], (C_OUT,), jnp.float32)
    p["bn1_b"] = 0.1 * jax.random.normal(ks[9], (C_OUT,), jnp.float32)
    p["bn1_m"] = 0.05 * jax.random.normal(ks[10], (C_OUT,), jnp.float32)
    p["bn1_v"] = 0.5 + jnp.abs(jax.random.normal(ks[11], (C_OUT,), jnp.float32))
    return p


def reference_forward(x_nchw, params):
    """Pure-JAX reference mirroring the PyTorch (eval-mode) forward."""
    hi = jax.lax.Precision.HIGHEST
    x = jax.lax.reduce_window(
        x_nchw, 0.0, jax.lax.add,
        (1, 1, POOL_K, POOL_K), (1, 1, POOL_S, POOL_S), "VALID") / float(POOL_K * POOL_K)

    def bn_relu(y, g, b, m, v):
        g, b, m, v = (t.reshape(1, -1, 1, 1) for t in (g, b, m, v))
        return jnp.maximum((y - m) * g / jnp.sqrt(v + BN_EPS) + b, 0.0)

    dn = ("NCHW", "OIHW", "NCHW")
    y = jax.lax.conv_general_dilated(x, params["conv0_w"], (1, 1), "VALID",
                                     dimension_numbers=dn, precision=hi)
    y = bn_relu(y, params["bn0_g"], params["bn0_b"], params["bn0_m"], params["bn0_v"])
    y = jax.lax.conv_general_dilated(y, params["conv1_w"], (1, 1), "VALID",
                                     dimension_numbers=dn, precision=hi)
    y = bn_relu(y, params["bn1_g"], params["bn1_b"], params["bn1_m"], params["bn1_v"])
    y = jnp.mean(y, axis=(2, 3))        # adaptive_avg_pool2d((1,1)) + flatten
    return jnp.dot(y, params["fc_w"].T, precision=hi) + params["fc_b"]


if __name__ == "__main__":
    key = jax.random.PRNGKey(0)
    k_x, k_p = jax.random.split(key)

    N, CIN, H, W = 2, 8, 17, 17          # 17x17 -> 5x5 pooled map (canonical aux geometry)
    NUM_CLASSES = 10

    x = jax.random.normal(k_x, (N, CIN, H, W), jnp.float32)
    params = init_params(k_p, CIN, NUM_CLASSES)

    out = jax.jit(inception_aux_forward)(x, params)
    out = jax.block_until_ready(out)

    ref = jax.block_until_ready(reference_forward(x, params))
    assert out.shape == (N, NUM_CLASSES)
    # conv1 / fc weights run in bf16 (f32 accumulation); tolerance reflects that.
    assert jnp.allclose(out, ref, rtol=2e-2, atol=5e-3), (
        f"mismatch: max abs err {jnp.max(jnp.abs(out - ref))}")

    print("KERNEL_OK")
</pallas_src>

<mosaic_0001>
module attributes {stable_mosaic.version = 11 : i64} {
  func.func @_inception_aux_kernel(%arg0: i32, %arg1: memref<2x17x17x128xf32, #tpu.memory_space<vmem>>, %arg2: memref<128x128xf32, #tpu.memory_space<vmem>>, %arg3: memref<1x128xf32, #tpu.memory_space<vmem>>, %arg4: memref<1x640x768xbf16, #tpu.memory_space<vmem>>, %arg5: memref<1x768xf32, #tpu.memory_space<vmem>>, %arg6: memref<768x128xbf16, #tpu.memory_space<vmem>>, %arg7: memref<1x128xf32, #tpu.memory_space<vmem>>, %arg8: memref<2x128xf32, #tpu.memory_space<vmem>>, %arg9: memref<50x128xf32, #tpu.memory_space<vmem>>, %arg10: memref<2x768xf32, #tpu.memory_space<vmem>>) attributes {dimension_semantics = [#tpu.dimension_semantics<arbitrary>], iteration_bounds = array<i64: 5>, scalar_prefetch = 0 : i64, scratch_operands = 2 : i64, tpu.core_type = #tpu.core_type<tc>, window_params = [{pipeline_mode = #tpu.pipeline_mode<synchronous>, transform_indices = @transform_0, window_bounds = array<i64: 2, 17, 17, 128>}, {pipeline_mode = #tpu.pipeline_mode<synchronous>, transform_indices = @transform_1, window_bounds = array<i64: 128, 128>}, {pipeline_mode = #tpu.pipeline_mode<synchronous>, transform_indices = @transform_2, window_bounds = array<i64: 1, 128>}, {transform_indices = @transform_3, window_bounds = array<i64: 1, 640, 768>}, {pipeline_mode = #tpu.pipeline_mode<synchronous>, transform_indices = @transform_4, window_bounds = array<i64: 1, 768>}, {pipeline_mode = #tpu.pipeline_mode<synchronous>, transform_indices = @transform_5, window_bounds = array<i64: 768, 128>}, {pipeline_mode = #tpu.pipeline_mode<synchronous>, transform_indices = @transform_6, window_bounds = array<i64: 1, 128>}, {pipeline_mode = #tpu.pipeline_mode<synchronous>, transform_indices = @transform_7, window_bounds = array<i64: 2, 128>}]} {
    %c0_i32 = arith.constant 0 : i32
    %0 = arith.cmpi eq, %arg0, %c0_i32 : i32
    %1 = arith.extui %0 : i1 to i32
    %c0_i32_0 = arith.constant 0 : i32
    %2 = arith.cmpi ne, %1, %c0_i32_0 : i32
    scf.if %2 {
      %c0_24 = arith.constant 0 : index
      %c0_25 = arith.constant 0 : index
      %c0_26 = arith.constant 0 : index
      %c0_27 = arith.constant 0 : index
      %39 = vector.load %arg1[%c0_24, %c0_25, %c0_26, %c0_27] : memref<2x17x17x128xf32, #tpu.memory_space<vmem>>, vector<2x1x17x128xf32>
      %40 = vector.shape_cast %39 : vector<2x1x17x128xf32> to vector<2x17x128xf32>
      %c0_28 = arith.constant 0 : index
      %c1 = arith.constant 1 : index
      %c0_29 = arith.constant 0 : index
      %c0_30 = arith.constant 0 : index
      %41 = vector.load %arg1[%c0_28, %c1, %c0_29, %c0_30] : memref<2x17x17x128xf32, #tpu.memory_space<vmem>>, vector<2x1x17x128xf32>
      %42 = vector.shape_cast %41 : vector<2x1x17x128xf32> to vector<2x17x128xf32>
      %43 = arith.addf %40, %42 : vector<2x17x128xf32>
      %c0_31 = arith.constant 0 : index
      %c2 = arith.constant 2 : index
      %c0_32 = arith.constant 0 : index
      %c0_33 = arith.constant 0 : index
      %44 = vector.load %arg1[%c0_31, %c2, %c0_32, %c0_33] : memref<2x17x17x128xf32, #tpu.memory_space<vmem>>, vector<2x1x17x128xf32>
      %45 = vector.shape_cast %44 : vector<2x1x17x128xf32> to vector<2x17x128xf32>
      %46 = arith.addf %43, %45 : vector<2x17x128xf32>
      %c0_34 = arith.constant 0 : index
      %c3 = arith.constant 3 : index
      %c0_35 = arith.constant 0 : index
      %c0_36 = arith.constant 0 : index
      %47 = vector.load %arg1[%c0_34, %c3, %c0_35, %c0_36] : memref<2x17x17x128xf32, #tpu.memory_space<vmem>>, vector<2x1x17x128xf32>
      %48 = vector.shape_cast %47 : vector<2x1x17x128xf32> to vector<2x17x128xf32>
      %49 = arith.addf %46, %48 : vector<2x17x128xf32>
      %c0_37 = arith.constant 0 : index
      %c4 = arith.constant 4 : index
      %c0_38 = arith.constant 0 : index
      %c0_39 = arith.constant 0 : index
      %50 = vector.load %arg1[%c0_37, %c4, %c0_38, %c0_39] : memref<2x17x17x128xf32, #tpu.memory_space<vmem>>, vector<2x1x17x128xf32>
      %51 = vector.shape_cast %50 : vector<2x1x17x128xf32> to vector<2x17x128xf32>
      %52 = arith.addf %49, %51 : vector<2x17x128xf32>
      %53 = vector.extract_strided_slice %52 {offsets = [0, 0, 0], sizes = [2, 5, 128], strides = [1, 1, 1]} : vector<2x17x128xf32> to vector<2x5x128xf32>
      %cst_40 = arith.constant dense<0.000000e+00> : vector<2x128xf32>
      %54 = vector.multi_reduction <add>, %53, %cst_40 [1] : vector<2x5x128xf32> to vector<2x128xf32>
      %55 = vector.extract_strided_slice %52 {offsets = [0, 3, 0], sizes = [2, 5, 128], strides = [1, 1, 1]} : vector<2x17x128xf32> to vector<2x5x128xf32>
      %cst_41 = arith.constant dense<0.000000e+00> : vector<2x128xf32>
      %56 = vector.multi_reduction <add>, %55, %cst_41 [1] : vector<2x5x128xf32> to vector<2x128xf32>
      %57 = vector.extract_strided_slice %52 {offsets = [0, 6, 0], sizes = [2, 5, 128], strides = [1, 1, 1]} : vector<2x17x128xf32> to vector<2x5x128xf32>
      %cst_42 = arith.constant dense<0.000000e+00> : vector<2x128xf32>
      %58 = vector.multi_reduction <add>, %57, %cst_42 [1] : vector<2x5x128xf32> to vector<2x128xf32>
      %59 = vector.extract_strided_slice %52 {offsets = [0, 9, 0], sizes = [2, 5, 128], strides = [1, 1, 1]} : vector<2x17x128xf32> to vector<2x5x128xf32>
      %cst_43 = arith.constant dense<0.000000e+00> : vector<2x128xf32>
      %60 = vector.multi_reduction <add>, %59, %cst_43 [1] : vector<2x5x128xf32> to vector<2x128xf32>
      %61 = vector.extract_strided_slice %52 {offsets = [0, 12, 0], sizes = [2, 5, 128], strides = [1, 1, 1]} : vector<2x17x128xf32> to vector<2x5x128xf32>
      %cst_44 = arith.constant dense<0.000000e+00> : vector<2x128xf32>
      %62 = vector.multi_reduction <add>, %61, %cst_44 [1] : vector<2x5x128xf32> to vector<2x128xf32>
      %c0_45 = arith.constant 0 : index
      %c3_46 = arith.constant 3 : index
      %c0_47 = arith.constant 0 : index
      %c0_48 = arith.constant 0 : index
      %63 = vector.load %arg1[%c0_45, %c3_46, %c0_47, %c0_48] : memref<2x17x17x128xf32, #tpu.memory_space<vmem>>, vector<2x1x17x128xf32>
      %64 = vector.shape_cast %63 : vector<2x1x17x128xf32> to vector<2x17x128xf32>
      %c0_49 = arith.constant 0 : index
      %c4_50 = arith.constant 4 : index
      %c0_51 = arith.constant 0 : index
      %c0_52 = arith.constant 0 : index
      %65 = vector.load %arg1[%c0_49, %c4_50, %c0_51, %c0_52] : memref<2x17x17x128xf32, #tpu.memory_space<vmem>>, vector<2x1x17x128xf32>
      %66 = vector.shape_cast %65 : vector<2x1x17x128xf32> to vector<2x17x128xf32>
      %67 = arith.addf %64, %66 : vector<2x17x128xf32>
      %c0_53 = arith.constant 0 : index
      %c5 = arith.constant 5 : index
      %c0_54 = arith.constant 0 : index
      %c0_55 = arith.constant 0 : index
      %68 = vector.load %arg1[%c0_53, %c5, %c0_54, %c0_55] : memref<2x17x17x128xf32, #tpu.memory_space<vmem>>, vector<2x1x17x128xf32>
      %69 = vector.shape_cast %68 : vector<2x1x17x128xf32> to vector<2x17x128xf32>
      %70 = arith.addf %67, %69 : vector<2x17x128xf32>
      %c0_56 = arith.constant 0 : index
      %c6 = arith.constant 6 : index
      %c0_57 = arith.constant 0 : index
      %c0_58 = arith.constant 0 : index
      %71 = vector.load %arg1[%c0_56, %c6, %c0_57, %c0_58] : memref<2x17x17x128xf32, #tpu.memory_space<vmem>>, vector<2x1x17x128xf32>
      %72 = vector.shape_cast %71 : vector<2x1x17x128xf32> to vector<2x17x128xf32>
      %73 = arith.addf %70, %72 : vector<2x17x128xf32>
      %c0_59 = arith.constant 0 : index
      %c7 = arith.constant 7 : index
      %c0_60 = arith.constant 0 : index
      %c0_61 = arith.constant 0 : index
      %74 = vector.load %arg1[%c0_59, %c7, %c0_60, %c0_61] : memref<2x17x17x128xf32, #tpu.memory_space<vmem>>, vector<2x1x17x128xf32>
      %75 = vector.shape_cast %74 : vector<2x1x17x128xf32> to vector<2x17x128xf32>
      %76 = arith.addf %73, %75 : vector<2x17x128xf32>
      %77 = vector.extract_strided_slice %76 {offsets = [0, 0, 0], sizes = [2, 5, 128], strides = [1, 1, 1]} : vector<2x17x128xf32> to vector<2x5x128xf32>
      %cst_62 = arith.constant dense<0.000000e+00> : vector<2x128xf32>
      %78 = vector.multi_reduction <add>, %77, %cst_62 [1] : vector<2x5x128xf32> to vector<2x128xf32>
      %79 = vector.extract_strided_slice %76 {offsets = [0, 3, 0], sizes = [2, 5, 128], strides = [1, 1, 1]} : vector<2x17x128xf32> to vector<2x5x128xf32>
      %cst_63 = arith.constant dense<0.000000e+00> : vector<2x128xf32>
      %80 = vector.multi_reduction <add>, %79, %cst_63 [1] : vector<2x5x128xf32> to vector<2x128xf32>
      %81 = vector.extract_strided_slice %76 {offsets = [0, 6, 0], sizes = [2, 5, 128], strides = [1, 1, 1]} : vector<2x17x128xf32> to vector<2x5x128xf32>
      %cst_64 = arith.constant dense<0.000000e+00> : vector<2x128xf32>
      %82 = vector.multi_reduction <add>, %81, %cst_64 [1] : vector<2x5x128xf32> to vector<2x128xf32>
      %83 = vector.extract_strided_slice %76 {offsets = [0, 9, 0], sizes = [2, 5, 128], strides = [1, 1, 1]} : vector<2x17x128xf32> to vector<2x5x128xf32>
      %cst_65 = arith.constant dense<0.000000e+00> : vector<2x128xf32>
      %84 = vector.multi_reduction <add>, %83, %cst_65 [1] : vector<2x5x128xf32> to vector<2x128xf32>
      %85 = vector.extract_strided_slice %76 {offsets = [0, 12, 0], sizes = [2, 5, 128], strides = [1, 1, 1]} : vector<2x17x128xf32> to vector<2x5x128xf32>
      %cst_66 = arith.constant dense<0.000000e+00> : vector<2x128xf32>
      %86 = vector.multi_reduction <add>, %85, %cst_66 [1] : vector<2x5x128xf32> to vector<2x128xf32>
      %c0_67 = arith.constant 0 : index
      %c6_68 = arith.constant 6 : index
      %c0_69 = arith.constant 0 : index
      %c0_70 = arith.constant 0 : index
      %87 = vector.load %arg1[%c0_67, %c6_68, %c0_69, %c0_70] : memref<2x17x17x128xf32, #tpu.memory_space<vmem>>, vector<2x1x17x128xf32>
      %88 = vector.shape_cast %87 : vector<2x1x17x128xf32> to vector<2x17x128xf32>
      %c0_71 = arith.constant 0 : index
      %c7_72 = arith.constant 7 : index
      %c0_73 = arith.constant 0 : index
      %c0_74 = arith.constant 0 : index
      %89 = vector.load %arg1[%c0_71, %c7_72, %c0_73, %c0_74] : memref<2x17x17x128xf32, #tpu.memory_space<vmem>>, vector<2x1x17x128xf32>
      %90 = vector.shape_cast %89 : vector<2x1x17x128xf32> to vector<2x17x128xf32>
      %91 = arith.addf %88, %90 : vector<2x17x128xf32>
      %c0_75 = arith.constant 0 : index
      %c8 = arith.constant 8 : index
      %c0_76 = arith.constant 0 : index
      %c0_77 = arith.constant 0 : index
      %92 = vector.load %arg1[%c0_75, %c8, %c0_76, %c0_77] : memref<2x17x17x128xf32, #tpu.memory_space<vmem>>, vector<2x1x17x128xf32>
      %93 = vector.shape_cast %92 : vector<2x1x17x128xf32> to vector<2x17x128xf32>
      %94 = arith.addf %91, %93 : vector<2x17x128xf32>
      %c0_78 = arith.constant 0 : index
      %c9 = arith.constant 9 : index
      %c0_79 = arith.constant 0 : index
      %c0_80 = arith.constant 0 : index
      %95 = vector.load %arg1[%c0_78, %c9, %c0_79, %c0_80] : memref<2x17x17x128xf32, #tpu.memory_space<vmem>>, vector<2x1x17x128xf32>
      %96 = vector.shape_cast %95 : vector<2x1x17x128xf32> to vector<2x17x128xf32>
      %97 = arith.addf %94, %96 : vector<2x17x128xf32>
      %c0_81 = arith.constant 0 : index
      %c10 = arith.constant 10 : index
      %c0_82 = arith.constant 0 : index
      %c0_83 = arith.constant 0 : index
      %98 = vector.load %arg1[%c0_81, %c10, %c0_82, %c0_83] : memref<2x17x17x128xf32, #tpu.memory_space<vmem>>, vector<2x1x17x128xf32>
      %99 = vector.shape_cast %98 : vector<2x1x17x128xf32> to vector<2x17x128xf32>
      %100 = arith.addf %97, %99 : vector<2x17x128xf32>
      %101 = vector.extract_strided_slice %100 {offsets = [0, 0, 0], sizes = [2, 5, 128], strides = [1, 1, 1]} : vector<2x17x128xf32> to vector<2x5x128xf32>
      %cst_84 = arith.constant dense<0.000000e+00> : vector<2x128xf32>
      %102 = vector.multi_reduction <add>, %101, %cst_84 [1] : vector<2x5x128xf32> to vector<2x128xf32>
      %103 = vector.extract_strided_slice %100 {offsets = [0, 3, 0], sizes = [2, 5, 128], strides = [1, 1, 1]} : vector<2x17x128xf32> to vector<2x5x128xf32>
      %cst_85 = arith.constant dense<0.000000e+00> : vector<2x128xf32>
      %104 = vector.multi_reduction <add>, %103, %cst_85 [1] : vector<2x5x128xf32> to vector<2x128xf32>
      %105 = vector.extract_strided_slice %100 {offsets = [0, 6, 0], sizes = [2, 5, 128], strides = [1, 1, 1]} : vector<2x17x128xf32> to vector<2x5x128xf32>
      %cst_86 = arith.constant dense<0.000000e+00> : vector<2x128xf32>
      %106 = vector.multi_reduction <add>, %105, %cst_86 [1] : vector<2x5x128xf32> to vector<2x128xf32>
      %107 = vector.extract_strided_slice %100 {offsets = [0, 9, 0], sizes = [2, 5, 128], strides = [1, 1, 1]} : vector<2x17x128xf32> to vector<2x5x128xf32>
      %cst_87 = arith.constant dense<0.000000e+00> : vector<2x128xf32>
      %108 = vector.multi_reduction <add>, %107, %cst_87 [1] : vector<2x5x128xf32> to vector<2x128xf32>
      %109 = vector.extract_strided_slice %100 {offsets = [0, 12, 0], sizes = [2, 5, 128], strides = [1, 1, 1]} : vector<2x17x128xf32> to vector<2x5x128xf32>
      %cst_88 = arith.constant dense<0.000000e+00> : vector<2x128xf32>
      %110 = vector.multi_reduction <add>, %109, %cst_88 [1] : vector<2x5x128xf32> to vector<2x128xf32>
      %c0_89 = arith.constant 0 : index
      %c9_90 = arith.constant 9 : index
      %c0_91 = arith.constant 0 : index
      %c0_92 = arith.constant 0 : index
      %111 = vector.load %arg1[%c0_89, %c9_90, %c0_91, %c0_92] : memref<2x17x17x128xf32, #tpu.memory_space<vmem>>, vector<2x1x17x128xf32>
      %112 = vector.shape_cast %111 : vector<2x1x17x128xf32> to vector<2x17x128xf32>
      %c0_93 = arith.constant 0 : index
      %c10_94 = arith.constant 10 : index
      %c0_95 = arith.constant 0 : index
      %c0_96 = arith.constant 0 : index
      %113 = vector.load %arg1[%c0_93, %c10_94, %c0_95, %c0_96] : memref<2x17x17x128xf32, #tpu.memory_space<vmem>>, vector<2x1x17x128xf32>
      %114 = vector.shape_cast %113 : vector<2x1x17x128xf32> to vector<2x17x128xf32>
      %115 = arith.addf %112, %114 : vector<2x17x128xf32>
      %c0_97 = arith.constant 0 : index
      %c11 = arith.constant 11 : index
      %c0_98 = arith.constant 0 : index
      %c0_99 = arith.constant 0 : index
      %116 = vector.load %arg1[%c0_97, %c11, %c0_98, %c0_99] : memref<2x17x17x128xf32, #tpu.memory_space<vmem>>, vector<2x1x17x128xf32>
      %117 = vector.shape_cast %116 : vector<2x1x17x128xf32> to vector<2x17x128xf32>
      %118 = arith.addf %115, %117 : vector<2x17x128xf32>
      %c0_100 = arith.constant 0 : index
      %c12 = arith.constant 12 : index
      %c0_101 = arith.constant 0 : index
      %c0_102 = arith.constant 0 : index
      %119 = vector.load %arg1[%c0_100, %c12, %c0_101, %c0_102] : memref<2x17x17x128xf32, #tpu.memory_space<vmem>>, vector<2x1x17x128xf32>
      %120 = vector.shape_cast %119 : vector<2x1x17x128xf32> to vector<2x17x128xf32>
      %121 = arith.addf %118, %120 : vector<2x17x128xf32>
      %c0_103 = arith.constant 0 : index
      %c13 = arith.constant 13 : index
      %c0_104 = arith.constant 0 : index
      %c0_105 = arith.constant 0 : index
      %122 = vector.load %arg1[%c0_103, %c13, %c0_104, %c0_105] : memref<2x17x17x128xf32, #tpu.memory_space<vmem>>, vector<2x1x17x128xf32>
      %123 = vector.shape_cast %122 : vector<2x1x17x128xf32> to vector<2x17x128xf32>
      %124 = arith.addf %121, %123 : vector<2x17x128xf32>
      %125 = vector.extract_strided_slice %124 {offsets = [0, 0, 0], sizes = [2, 5, 128], strides = [1, 1, 1]} : vector<2x17x128xf32> to vector<2x5x128xf32>
      %cst_106 = arith.constant dense<0.000000e+00> : vector<2x128xf32>
      %126 = vector.multi_reduction <add>, %125, %cst_106 [1] : vector<2x5x128xf32> to vector<2x128xf32>
      %127 = vector.extract_strided_slice %124 {offsets = [0, 3, 0], sizes = [2, 5, 128], strides = [1, 1, 1]} : vector<2x17x128xf32> to vector<2x5x128xf32>
      %cst_107 = arith.constant dense<0.000000e+00> : vector<2x128xf32>
      %128 = vector.multi_reduction <add>, %127, %cst_107 [1] : vector<2x5x128xf32> to vector<2x128xf32>
      %129 = vector.extract_strided_slice %124 {offsets = [0, 6, 0], sizes = [2, 5, 128], strides = [1, 1, 1]} : vector<2x17x128xf32> to vector<2x5x128xf32>
      %cst_108 = arith.constant dense<0.000000e+00> : vector<2x128xf32>
      %130 = vector.multi_reduction <add>, %129, %cst_108 [1] : vector<2x5x128xf32> to vector<2x128xf32>
      %131 = vector.extract_strided_slice %124 {offsets = [0, 9, 0], sizes = [2, 5, 128], strides = [1, 1, 1]} : vector<2x17x128xf32> to vector<2x5x128xf32>
      %cst_109 = arith.constant dense<0.000000e+00> : vector<2x128xf32>
      %132 = vector.multi_reduction <add>, %131, %cst_109 [1] : vector<2x5x128xf32> to vector<2x128xf32>
      %133 = vector.extract_strided_slice %124 {offsets = [0, 12, 0], sizes = [2, 5, 128], strides = [1, 1, 1]} : vector<2x17x128xf32> to vector<2x5x128xf32>
      %cst_110 = arith.constant dense<0.000000e+00> : vector<2x128xf32>
      %134 = vector.multi_reduction <add>, %133, %cst_110 [1] : vector<2x5x128xf32> to vector<2x128xf32>
      %c0_111 = arith.constant 0 : index
      %c12_112 = arith.constant 12 : index
      %c0_113 = arith.constant 0 : index
      %c0_114 = arith.constant 0 : index
      %135 = vector.load %arg1[%c0_111, %c12_112, %c0_113, %c0_114] : memref<2x17x17x128xf32, #tpu.memory_space<vmem>>, vector<2x1x17x128xf32>
      %136 = vector.shape_cast %135 : vector<2x1x17x128xf32> to vector<2x17x128xf32>
      %c0_115 = arith.constant 0 : index
      %c13_116 = arith.constant 13 : index
      %c0_117 = arith.constant 0 : index
      %c0_118 = arith.constant 0 : index
      %137 = vector.load %arg1[%c0_115, %c13_116, %c0_117, %c0_118] : memref<2x17x17x128xf32, #tpu.memory_space<vmem>>, vector<2x1x17x128xf32>
      %138 = vector.shape_cast %137 : vector<2x1x17x128xf32> to vector<2x17x128xf32>
      %139 = arith.addf %136, %138 : vector<2x17x128xf32>
      %c0_119 = arith.constant 0 : index
      %c14 = arith.constant 14 : index
      %c0_120 = arith.constant 0 : index
      %c0_121 = arith.constant 0 : index
      %140 = vector.load %arg1[%c0_119, %c14, %c0_120, %c0_121] : memref<2x17x17x128xf32, #tpu.memory_space<vmem>>, vector<2x1x17x128xf32>
      %141 = vector.shape_cast %140 : vector<2x1x17x128xf32> to vector<2x17x128xf32>
      %142 = arith.addf %139, %141 : vector<2x17x128xf32>
      %c0_122 = arith.constant 0 : index
      %c15 = arith.constant 15 : index
      %c0_123 = arith.constant 0 : index
      %c0_124 = arith.constant 0 : index
      %143 = vector.load %arg1[%c0_122, %c15, %c0_123, %c0_124] : memref<2x17x17x128xf32, #tpu.memory_space<vmem>>, vector<2x1x17x128xf32>
      %144 = vector.shape_cast %143 : vector<2x1x17x128xf32> to vector<2x17x128xf32>
      %145 = arith.addf %142, %144 : vector<2x17x128xf32>
      %c0_125 = arith.constant 0 : index
      %c16 = arith.constant 16 : index
      %c0_126 = arith.constant 0 : index
      %c0_127 = arith.constant 0 : index
      %146 = vector.load %arg1[%c0_125, %c16, %c0_126, %c0_127] : memref<2x17x17x128xf32, #tpu.memory_space<vmem>>, vector<2x1x17x128xf32>
      %147 = vector.shape_cast %146 : vector<2x1x17x128xf32> to vector<2x17x128xf32>
      %148 = arith.addf %145, %147 : vector<2x17x128xf32>
      %149 = vector.extract_strided_slice %148 {offsets = [0, 0, 0], sizes = [2, 5, 128], strides = [1, 1, 1]} : vector<2x17x128xf32> to vector<2x5x128xf32>
      %cst_128 = arith.constant dense<0.000000e+00> : vector<2x128xf32>
      %150 = vector.multi_reduction <add>, %149, %cst_128 [1] : vector<2x5x128xf32> to vector<2x128xf32>
      %151 = vector.extract_strided_slice %148 {offsets = [0, 3, 0], sizes = [2, 5, 128], strides = [1, 1, 1]} : vector<2x17x128xf32> to vector<2x5x128xf32>
      %cst_129 = arith.constant dense<0.000000e+00> : vector<2x128xf32>
      %152 = vector.multi_reduction <add>, %151, %cst_129 [1] : vector<2x5x128xf32> to vector<2x128xf32>
      %153 = vector.extract_strided_slice %148 {offsets = [0, 6, 0], sizes = [2, 5, 128], strides = [1, 1, 1]} : vector<2x17x128xf32> to vector<2x5x128xf32>
      %cst_130 = arith.constant dense<0.000000e+00> : vector<2x128xf32>
      %154 = vector.multi_reduction <add>, %153, %cst_130 [1] : vector<2x5x128xf32> to vector<2x128xf32>
      %155 = vector.extract_strided_slice %148 {offsets = [0, 9, 0], sizes = [2, 5, 128], strides = [1, 1, 1]} : vector<2x17x128xf32> to vector<2x5x128xf32>
      %cst_131 = arith.constant dense<0.000000e+00> : vector<2x128xf32>
      %156 = vector.multi_reduction <add>, %155, %cst_131 [1] : vector<2x5x128xf32> to vector<2x128xf32>
      %157 = vector.extract_strided_slice %148 {offsets = [0, 12, 0], sizes = [2, 5, 128], strides = [1, 1, 1]} : vector<2x17x128xf32> to vector<2x5x128xf32>
      %cst_132 = arith.constant dense<0.000000e+00> : vector<2x128xf32>
      %158 = vector.multi_reduction <add>, %157, %cst_132 [1] : vector<2x5x128xf32> to vector<2x128xf32>
      %159 = tpu.concatenate %54, %56, %58, %60, %62, %78, %80, %82, %84, %86, %102, %104, %106, %108, %110, %126 in 0 : vector<2x128xf32>, vector<2x128xf32>, vector<2x128xf32>, vector<2x128xf32>, vector<2x128xf32>, vector<2x128xf32>, vector<2x128xf32>, vector<2x128xf32>, vector<2x128xf32>, vector<2x128xf32>, vector<2x128xf32>, vector<2x128xf32>, vector<2x128xf32>, vector<2x128xf32>, vector<2x128xf32>, vector<2x128xf32> -> vector<32x128xf32>
      %160 = tpu.concatenate %128, %130, %132, %134, %150, %152, %154, %156, %158 in 0 : vector<2x128xf32>, vector<2x128xf32>, vector<2x128xf32>, vector<2x128xf32>, vector<2x128xf32>, vector<2x128xf32>, vector<2x128xf32>, vector<2x128xf32>, vector<2x128xf32> -> vector<18x128xf32>
      %161 = tpu.concatenate %159, %160 in 0 : vector<32x128xf32>, vector<18x128xf32> -> vector<50x128xf32>
      %cst_133 = arith.constant 4.000000e-02 : f32
      %162 = vector.broadcast %cst_133 : f32 to vector<50x128xf32>
      %163 = arith.mulf %161, %162 : vector<50x128xf32>
      %c0_134 = arith.constant 0 : index
      %c0_135 = arith.constant 0 : index
      %164 = vector.load %arg2[%c0_134, %c0_135] : memref<128x128xf32, #tpu.memory_space<vmem>>, vector<128x128xf32>
      %cst_136 = arith.constant dense<0.000000e+00> : vector<50x128xf32>
      %165 = tpu.matmul %163, %164, %cst_136 {dimension_numbers = #tpu.dot_dimension_numbers<[1], [0], [0], [1], [0, 0, 1, 1], [], []>} : vector<50x128xf32>, vector<128x128xf32>, vector<50x128xf32> -> vector<50x128xf32>
      %c0_137 = arith.constant 0 : index
      %c0_138 = arith.constant 0 : index
      %166 = vector.load %arg3[%c0_137, %c0_138] : memref<1x128xf32, #tpu.memory_space<vmem>>, vector<1x128xf32>
      %167 = vector.broadcast %166 : vector<1x128xf32> to vector<50x128xf32>
      %168 = arith.addf %165, %167 : vector<50x128xf32>
      %cst_139 = arith.constant 0.000000e+00 : f32
      %169 = vector.broadcast %cst_139 : f32 to vector<50x128xf32>
      %170 = arith.maximumf %168, %169 : vector<50x128xf32>
      %c0_140 = arith.constant 0 : index
      %c0_141 = arith.constant 0 : index
      %171 = vector.load %arg9[%c0_140, %c0_141] : memref<50x128xf32, #tpu.memory_space<vmem>>, vector<50x128xf32>
      tpu.vector_store %arg9[%c0_140, %c0_141], %170 {strides = array<i32>} : memref<50x128xf32, #tpu.memory_space<vmem>>, vector<50x128xf32>,
      %cst_142 = arith.constant 0.000000e+00 : f32
      %172 = vector.broadcast %cst_142 : f32 to vector<2x768xf32>
      %c0_143 = arith.constant 0 : index
      %c0_144 = arith.constant 0 : index
      %173 = vector.load %arg10[%c0_143, %c0_144] : memref<2x768xf32, #tpu.memory_space<vmem>>, vector<2x768xf32>
      tpu.vector_store %arg10[%c0_143, %c0_144], %172 {strides = array<i32>} : memref<2x768xf32, #tpu.memory_space<vmem>>, vector<2x768xf32>,
    } else {
    }
    %c5_i32 = arith.constant 5 : i32
    %3 = arith.muli %arg0, %c5_i32 : i32
    %c0_i32_1 = arith.constant 0 : i32
    %4 = arith.addi %3, %c0_i32_1 : i32
    %c2_i32 = arith.constant 2 : i32
    %5 = arith.muli %4, %c2_i32 : i32
    %6 = arith.index_cast %5 : i32 to index
    %c0 = arith.constant 0 : index
    %7 = vector.load %arg9[%6, %c0] : memref<50x128xf32, #tpu.memory_space<vmem>>, vector<2x128xf32>
    %c5_i32_2 = arith.constant 5 : i32
    %8 = arith.muli %arg0, %c5_i32_2 : i32
    %c1_i32 = arith.constant 1 : i32
    %9 = arith.addi %8, %c1_i32 : i32
    %c2_i32_3 = arith.constant 2 : i32
    %10 = arith.muli %9, %c2_i32_3 : i32
    %11 = arith.index_cast %10 : i32 to index
    %c0_4 = arith.constant 0 : index
    %12 = vector.load %arg9[%11, %c0_4] : memref<50x128xf32, #tpu.memory_space<vmem>>, vector<2x128xf32>
    %c5_i32_5 = arith.constant 5 : i32
    %13 = arith.muli %arg0, %c5_i32_5 : i32
    %c2_i32_6 = arith.constant 2 : i32
    %14 = arith.addi %13, %c2_i32_6 : i32
    %c2_i32_7 = arith.constant 2 : i32
    %15 = arith.muli %14, %c2_i32_7 : i32
    %16 = arith.index_cast %15 : i32 to index
    %c0_8 = arith.constant 0 : index
    %17 = vector.load %arg9[%16, %c0_8] : memref<50x128xf32, #tpu.memory_space<vmem>>, vector<2x128xf32>
    %c5_i32_9 = arith.constant 5 : i32
    %18 = arith.muli %arg0, %c5_i32_9 : i32
    %c3_i32 = arith.constant 3 : i32
    %19 = arith.addi %18, %c3_i32 : i32
    %c2_i32_10 = arith.constant 2 : i32
    %20 = arith.muli %19, %c2_i32_10 : i32
    %21 = arith.index_cast %20 : i32 to index
    %c0_11 = arith.constant 0 : index
    %22 = vector.load %arg9[%21, %c0_11] : memref<50x128xf32, #tpu.memory_space<vmem>>, vector<2x128xf32>
    %c5_i32_12 = arith.constant 5 : i32
    %23 = arith.muli %arg0, %c5_i32_12 : i32
    %c4_i32 = arith.constant 4 : i32
    %24 = arith.addi %23, %c4_i32 : i32
    %c2_i32_13 = arith.constant 2 : i32
    %25 = arith.muli %24, %c2_i32_13 : i32
    %26 = arith.index_cast %25 : i32 to index
    %c0_14 = arith.constant 0 : index
    %27 = vector.load %arg9[%26, %c0_14] : memref<50x128xf32, #tpu.memory_space<vmem>>, vector<2x128xf32>
    %28 = tpu.concatenate %7, %12, %17, %22, %27 in 1 : vector<2x128xf32>, vector<2x128xf32>, vector<2x128xf32>, vector<2x128xf32>, vector<2x128xf32> -> vector<2x640xf32>
    %29 = arith.truncf %28 : vector<2x640xf32> to vector<2x640xbf16>
    %c0_15 = arith.constant 0 : index
    %c0_16 = arith.constant 0 : index
    %30 = vector.load %arg10[%c0_15, %c0_16] : memref<2x768xf32, #tpu.memory_space<vmem>>, vector<2x768xf32>
    %c0_17 = arith.constant 0 : index
    %c0_18 = arith.constant 0 : index
    %c0_19 = arith.constant 0 : index
    %31 = vector.load %arg4[%c0_17, %c0_18, %c0_19] : memref<1x640x768xbf16, #tpu.memory_space<vmem>>, vector<1x640x768xbf16>
    %32 = vector.shape_cast %31 : vector<1x640x768xbf16> to vector<640x768xbf16>
    %cst = arith.constant dense<0.000000e+00> : vector<2x768xf32>
    %33 = tpu.matmul %29, %32, %cst {dimension_numbers = #tpu.dot_dimension_numbers<[1], [0], [0], [1], [0, 0, 1, 1], [], []>} : vector<2x640xbf16>, vector<640x768xbf16>, vector<2x768xf32> -> vector<2x768xf32>
    %34 = arith.addf %30, %33 : vector<2x768xf32>
    %c0_20 = arith.constant 0 : index
    %c0_21 = arith.constant 0 : index
    %35 = vector.load %arg10[%c0_20, %c0_21] : memref<2x768xf32, #tpu.memory_space<vmem>>, vector<2x768xf32>
    tpu.vector_store %arg10[%c0_20, %c0_21], %34 {strides = array<i32>} : memref<2x768xf32, #tpu.memory_space<vmem>>, vector<2x768xf32>,
    %c4_i32_22 = arith.constant 4 : i32
    %36 = arith.cmpi eq, %arg0, %c4_i32_22 : i32
    %37 = arith.extui %36 : i1 to i32
    %c0_i32_23 = arith.constant 0 : i32
    %38 = arith.cmpi ne, %37, %c0_i32_23 : i32
    scf.if %38 {
      %c0_24 = arith.constant 0 : index
      %c0_25 = arith.constant 0 : index
      %39 = vector.load %arg10[%c0_24, %c0_25] : memref<2x768xf32, #tpu.memory_space<vmem>>, vector<2x768xf32>
      %c0_26 = arith.constant 0 : index
      %c0_27 = arith.constant 0 : index
      %40 = vector.load %arg5[%c0_26, %c0_27] : memref<1x768xf32, #tpu.memory_space<vmem>>, vector<1x768xf32>
      %41 = vector.broadcast %40 : vector<1x768xf32> to vector<2x768xf32>
      %42 = arith.addf %39, %41 : vector<2x768xf32>
      %cst_28 = arith.constant 0.000000e+00 : f32
      %43 = vector.broadcast %cst_28 : f32 to vector<2x768xf32>
      %44 = arith.maximumf %42, %43 : vector<2x768xf32>
      %45 = arith.truncf %44 : vector<2x768xf32> to vector<2x768xbf16>
      %c0_29 = arith.constant 0 : index
      %c0_30 = arith.constant 0 : index
      %46 = vector.load %arg6[%c0_29, %c0_30] : memref<768x128xbf16, #tpu.memory_space<vmem>>, vector<768x128xbf16>
      %cst_31 = arith.constant dense<0.000000e+00> : vector<2x128xf32>
      %47 = tpu.matmul %45, %46, %cst_31 {dimension_numbers = #tpu.dot_dimension_numbers<[1], [0], [0], [1], [0, 0, 1, 1], [], []>} : vector<2x768xbf16>, vector<768x128xbf16>, vector<2x128xf32> -> vector<2x128xf32>
      %c0_32 = arith.constant 0 : index
      %c0_33 = arith.constant 0 : index
      %48 = vector.load %arg7[%c0_32, %c0_33] : memref<1x128xf32, #tpu.memory_space<vmem>>, vector<1x128xf32>
      %49 = vector.broadcast %48 : vector<1x128xf32> to vector<2x128xf32>
      %50 = arith.addf %47, %49 : vector<2x128xf32>
      %c0_34 = arith.constant 0 : index
      %c0_35 = arith.constant 0 : index
      %51 = vector.load %arg8[%c0_34, %c0_35] : memref<2x128xf32, #tpu.memory_space<vmem>>, vector<2x128xf32>
      tpu.vector_store %arg8[%c0_34, %c0_35], %50 {strides = array<i32>} : memref<2x128xf32, #tpu.memory_space<vmem>>, vector<2x128xf32>,
    } else {
    }
    return
  }
  func.func @transform_0(%arg0: i32) -> (i32, i32, i32, i32) {
    %c0_i32 = arith.constant 0 : i32
    %c0_i32_0 = arith.constant 0 : i32
    %c0_i32_1 = arith.constant 0 : i32
    %c0_i32_2 = arith.constant 0 : i32
    %c0_i32_3 = arith.constant 0 : i32
    return %c0_i32, %c0_i32_0, %c0_i32_1, %c0_i32_2 : i32, i32, i32, i32
  }
  func.func @transform_1(%arg0: i32) -> (i32, i32) {
    %c0_i32 = arith.constant 0 : i32
    %c0_i32_0 = arith.constant 0 : i32
    %c0_i32_1 = arith.constant 0 : i32
    return %c0_i32, %c0_i32_0 : i32, i32
  }
  func.func @transform_2(%arg0: i32) -> (i32, i32) {
    %c0_i32 = arith.constant 0 : i32
    %c0_i32_0 = arith.constant 0 : i32
    %c0_i32_1 = arith.constant 0 : i32
    return %c0_i32, %c0_i32_0 : i32, i32
  }
  func.func @transform_3(%arg0: i32) -> (i32, i32, i32) {
    %c0_i32 = arith.constant 0 : i32
    %c0_i32_0 = arith.constant 0 : i32
    %c0_i32_1 = arith.constant 0 : i32
    return %arg0, %c0_i32, %c0_i32_0 : i32, i32, i32
  }
  func.func @transform_4(%arg0: i32) -> (i32, i32) {
    %c0_i32 = arith.constant 0 : i32
    %c0_i32_0 = arith.constant 0 : i32
    %c0_i32_1 = arith.constant 0 : i32
    return %c0_i32, %c0_i32_0 : i32, i32
  }
  func.func @transform_5(%arg0: i32) -> (i32, i32) {
    %c0_i32 = arith.constant 0 : i32
    %c0_i32_0 = arith.constant 0 : i32
    %c0_i32_1 = arith.constant 0 : i32
    return %c0_i32, %c0_i32_0 : i32, i32
  }
  func.func @transform_6(%arg0: i32) -> (i32, i32) {
    %c0_i32 = arith.constant 0 : i32
    %c0_i32_0 = arith.constant 0 : i32
    %c0_i32_1 = arith.constant 0 : i32
    return %c0_i32, %c0_i32_0 : i32, i32
  }
  func.func @transform_7(%arg0: i32) -> (i32, i32) {
    %c0_i32 = arith.constant 0 : i32
    %c0_i32_0 = arith.constant 0 : i32
    %c0_i32_1 = arith.constant 0 : i32
    return %c0_i32, %c0_i32_0 : i32, i32
  }
}

</mosaic_0001>

<bundles_post_ra>
// kernel: inception_aux_forward.1
= control target key start
LH: loop header
LB: loop body
LE: loop exit
PB: predicated region body
PF: predicated region fallthrough
CT: control target
= control target key end

     0   :  { %12 = vsyncpa [#allocation5], 0  ;;  %s5394_s24 = smov 0   ;;  %s6814_s0 = inlined_call_operand.vmem [shape: f32[2,17,17,128], index: 0, kind: input, shape index: {}]   ;;  %s6815_s1 = inlined_call_operand.vmem [shape: f32[128,128], index: 1, kind: input, shape index: {}]   ;;  %s6816_s2 = inlined_call_operand.vmem [shape: f32[1,128], index: 2, kind: input, shape index: {}]   ;;  %s6817_s3 = inlined_call_operand.vmem [shape: bf16[5,640,768], index: 3, kind: input, shape index: {}]   ;;  %s6818_s4 = inlined_call_operand.vmem [shape: f32[1,768], index: 4, kind: input, shape index: {}]   ;;  %s6819_s5 = inlined_call_operand.vmem [shape: bf16[768,128], index: 5, kind: input, shape index: {}]   ;;  %s6820_s6 = inlined_call_operand.vmem [shape: f32[1,128], index: 6, kind: input, shape index: {}]   ;;  %s6821_s7 = inlined_call_operand.hbm [shape: f32[2,128], index: 7, kind: output, shape index: {}]  }
   0x1 LB: > { %s5400_s25 = sadd.s32 4294967295, %s5350_s24   ;;  %p3681_p0 = scmp.ge.s32.totalorder %s5350_s24, 1  ;;  %s5350_s24 = sphi %s5394_s24, %s18_s24  }
   0x2   : > { %p233_p1 = scmp.lt.s32.totalorder %s5350_s24, 6 }
   0x4   : > { %p234_p2 = pnand %p3681_p0, %p233_p1 }
   0x5   : > { %p260_p3 = scmp.lt.s32.totalorder (!%p234_p2), %s5400_s25, 4  ;;  %p3683_p4 = scmp.ne.s32.totalorder (!%p234_p2), %s5400_s25, 0 }
   0x6   : > { %237 = sbr.rel (%p234_p2) target bundleno = 914 (0x392), region = 48 }
   0xb   : > { %s261_s26 = scalar_select %p260_p3, %s5400_s25, 4 }
   0xc   : > { %268 = sbr.rel (%p3683_p4) target bundleno = 316 (0x13c), region = 52 }
   0xd   : > { %s5281_s27 = smul.u32 1920, %s261_s26 }
   0xf   : > { %s5409_s30 = scalar_lea.vmem %s6817_s3, %s5281_s27 }
  0x11   : > { %v1155_v0 = vld [vmem:[%s6815_s1 + $0x78] sm:$0xff]  ;;  %v1154_v1 = vld [vmem:[%s6815_s1 + $0x70] sm:$0xff]  ;;  %v1153_v2 = vld [vmem:[%s6815_s1 + $0x68] sm:$0xff]  ;;  %vm327_vm0 = vcmask 1044480   ;;  %vm364_vm1 = vcmask 1041408   ;;  %vm407_vm2 = vcmask 1043456  }
  0x12   : > { %5234 = vmatpush.msra.mxu2 %v1155_v0  ;;  %5235 = vmatpush.msra.mxu3 %v1155_v0  ;;  %v1152_v3 = vld [vmem:[%s6815_s1 + $0x60] sm:$0xff]  ;;  %v1151_v4 = vld [vmem:[%s6815_s1 + $0x58] sm:$0xff]  ;;  %v3714_v5 = vld [vmem:[%s6814_s0 + $0x90] sm:$0xff]  ;;  %vm1012_vm3 = vcmask 1041409   ;;  %vm1017_vm4 = vcmask 1043459   ;;  %vm1022_vm5 = vcmask 1045509  }
  0x13   : > { %1160 = vmatpush.msra.mxu0 %v1155_v0  ;;  %5233 = vmatpush.msra.mxu1 %v1155_v0  ;;  %v3715_v6 = vld [vmem:[%s6814_s0 + $0x98] sm:$0xff]  ;;  %v1150_v7 = vld [vmem:[%s6815_s1 + $0x50] sm:$0xff]  ;;  %v3716_v8 = vld [vmem:[%s6814_s0 + $0xa0] sm:$0x1]  ;;  %vm1027_vm6 = vcmask 1047559   ;;  %vm1080_vm7 = vcmask 1045504  }
  0x14   : > { %5237 = vmatpush.msra.mxu2 %v1154_v1  ;;  %5238 = vmatpush.msra.mxu3 %v1154_v1  ;;  %v3717_v9 = vld [vmem:[%s6814_s0 + $0x228] sm:$0xff]  ;;  %v3718_v10 = vld [vmem:[%s6814_s0 + $0x230] sm:$0xff]  ;;  %v3719_v11 = vld [vmem:[%s6814_s0 + $0x238] sm:$0x1] }
  0x15   : > { %1161 = vmatpush.msra.mxu0 %v1154_v1  ;;  %5236 = vmatpush.msra.mxu1 %v1154_v1  ;;  %v3720_v12 = vld [vmem:[%s6814_s0 + $0xa8] sm:$0xff]  ;;  %v3721_v13 = vld [vmem:[%s6814_s0 + $0xb0] sm:$0xff]  ;;  %v3722_v15 = vld [vmem:[%s6814_s0 + $0xb8] sm:$0x1] }
  0x16   : > { %5240 = vmatpush.msra.mxu2 %v1153_v2  ;;  %5241 = vmatpush.msra.mxu3 %v1153_v2  ;;  %v1149_v14 = vld [vmem:[%s6815_s1 + $0x48] sm:$0xff]  ;;  %v3723_v16 = vld [vmem:[%s6814_s0 + $0x240] sm:$0xff]  ;;  %v575_v18 = vadd.f32 %v3720_v12, %v3714_v5  ;;  %v576_v19 = vadd.f32 %v3721_v13, %v3715_v6  ;;  %v3725_v20 = vld [vmem:[%s6814_s0 + $0x250] sm:$0x1]  ;;  %v577_v21 = vadd.f32 %v3722_v15, %v3716_v8 }
  0x17   : > { %1162 = vmatpush.msra.mxu0 %v1153_v2  ;;  %5239 = vmatpush.msra.mxu1 %v1153_v2  ;;  %v3724_v17 = vld [vmem:[%s6814_s0 + $0x248] sm:$0xff]  ;;  %v578_v22 = vadd.f32 %v3723_v16, %v3717_v9  ;;  %v3726_v24 = vld [vmem:[%s6814_s0 + $0xc0] sm:$0xff]  ;;  %v580_v27 = vadd.f32 %v3725_v20, %v3719_v11  ;;  %v3728_v28 = vld [vmem:[%s6814_s0 + $0xd0] sm:$0x1] }
  0x18   : > { %5243 = vmatpush.msra.mxu2 %v1152_v3  ;;  %5244 = vmatpush.msra.mxu3 %v1152_v3  ;;  %v579_v23 = vadd.f32 %v3724_v17, %v3718_v10  ;;  %v3727_v25 = vld [vmem:[%s6814_s0 + $0xc8] sm:$0xff]  ;;  %v1148_v26 = vld [vmem:[%s6815_s1 + $0x40] sm:$0xff]  ;;  %v3729_v29 = vld [vmem:[%s6814_s0 + $0x258] sm:$0xff]  ;;  %v588_v31 = vadd.f32 %v3726_v24, %v575_v18  ;;  %v590_v34 = vadd.f32 %v3728_v28, %v577_v21 }
  0x19   : > { %1163 = vmatpush.msra.mxu0 %v1152_v3  ;;  %5242 = vmatpush.msra.mxu1 %v1152_v3  ;;  %v3730_v30 = vld [vmem:[%s6814_s0 + $0x260] sm:$0xff]  ;;  %v589_v32 = vadd.f32 %v3727_v25, %v576_v19  ;;  %v3731_v33 = vld [vmem:[%s6814_s0 + $0x268] sm:$0x1]  ;;  %v591_v35 = vadd.f32 %v3729_v29, %v578_v22  ;;  %v5493_v37 = vld [vmem:[%s6814_s0 + $0xd8] sm:$0xff] }
  0x1a   : > { %5246 = vmatpush.msra.mxu2 %v1151_v4  ;;  %5247 = vmatpush.msra.mxu3 %v1151_v4  ;;  %v592_v36 = vadd.f32 %v3730_v30, %v579_v23  ;;  %v5498_v38 = vld [vmem:[%s6814_s0 + $0xe0] sm:$0xff]  ;;  %v1147_v39 = vld [vmem:[%s6815_s1 + $0x38] sm:$0xff]  ;;  %v593_v40 = vadd.f32 %v3731_v33, %v580_v27  ;;  %v5506_v41 = vld [vmem:[%s6814_s0 + $0xe8] sm:$0x1]  ;;  %v601_v44 = vadd.f32 %v5493_v37, %v588_v31 }
  0x1b   : > { %1164 = vmatpush.msra.mxu0 %v1151_v4  ;;  %5245 = vmatpush.msra.mxu1 %v1151_v4  ;;  %v5511_v42 = vld [vmem:[%s6814_s0 + $0x270] sm:$0xff]  ;;  %v5516_v43 = vld [vmem:[%s6814_s0 + $0x278] sm:$0xff]  ;;  %v602_v45 = vadd.f32 %v5498_v38, %v589_v32  ;;  %v5523_v46 = vld [vmem:[%s6814_s0 + $0x280] sm:$0x1]  ;;  %v603_v47 = vadd.f32 %v5506_v41, %v590_v34 }
  0x1c   : > { %5249 = vmatpush.msra.mxu2 %v1150_v7  ;;  %5250 = vmatpush.msra.mxu3 %v1150_v7  ;;  %v604_v48 = vadd.f32 %v5511_v42, %v591_v35  ;;  %v605_v49 = vadd.f32 %v5516_v43, %v592_v36  ;;  %v5531_v50 = vld [vmem:[%s6814_s0 + $0xf0] sm:$0xff]  ;;  %v5536_v51 = vld [vmem:[%s6814_s0 + $0xf8] sm:$0xff]  ;;  %v606_v52 = vadd.f32 %v5523_v46, %v593_v40  ;;  %v5542_v53 = vld [vmem:[%s6814_s0 + $0x100] sm:$0x1] }
  0x1d   : > { %1165 = vmatpush.msra.mxu0 %v1150_v7  ;;  %5248 = vmatpush.msra.mxu1 %v1150_v7  ;;  %v5547_v54 = vld [vmem:[%s6814_s0 + $0x288] sm:$0xff]  ;;  %v5552_v55 = vld [vmem:[%s6814_s0 + $0x290] sm:$0xff]  ;;  %v5555_v56 = vadd.f32 %v5531_v50, %v601_v44  ;;  %v615_v57 = vadd.f32 %v5536_v51, %v602_v45  ;;  %v5561_v58 = vld [vmem:[%s6814_s0 + $0x298] sm:$0x1]  ;;  %v616_v59 = vadd.f32 %v5542_v53, %v603_v47 }
  0x1e   : > { %5252 = vmatpush.msra.mxu2 %v1149_v14  ;;  %5253 = vmatpush.msra.mxu3 %v1149_v14  ;;  %v5565_v60 = vadd.f32 %v5547_v54, %v604_v48  ;;  %v618_v61 = vadd.f32 %v5552_v55, %v605_v49  ;;  %v1146_v62 = vld [vmem:[%s6815_s1 + $0x30] sm:$0xff]  ;;  %v619_v63 = vadd.f32 %v5561_v58, %v606_v52  ;;  %v1145_v7 = vld [vmem:[%s6815_s1 + $0x28] sm:$0xff]  ;;  %v1144_v16 = vld [vmem:[%s6815_s1 + $0x20] sm:$0xff] }
  0x1f   : > { %1166 = vmatpush.msra.mxu0 %v1149_v14  ;;  %5251 = vmatpush.msra.mxu1 %v1149_v14  ;;  %v656_v0 = vrot.slane %v5555_v56, 6  ;;  %v657_v1 = vrot.slane %v615_v57, 6  ;;  %v678_v2 = vrot.slane %v615_v57, 1  ;;  %v698_v6 = vrot.slane %v615_v57, 4  ;;  %v1143_v25 = vld [vmem:[%s6815_s1 + $0x18] sm:$0xff]  ;;  %v1142_v33 = vld [vmem:[%s6815_s1 + $0x10] sm:$0xff] }
  0x20   : > { %5255 = vmatpush.msra.mxu2 %v1148_v26  ;;  %5256 = vmatpush.msra.mxu3 %v1148_v26  ;;  %v659_v3 = vrot.slane %v5565_v60, 6  ;;  %v660_v4 = vrot.slane %v618_v61, 6  ;;  %v679_v5 = vrot.slane %v618_v61, 1  ;;  %v699_v10 = vrot.slane %v616_v59, 4  ;;  %v3744_v57 = vld [vmem:[%s6814_s0 + $0x108] sm:$0xff] }
  0x21   : > { %1167 = vmatpush.msra.mxu0 %v1148_v26  ;;  %5254 = vmatpush.msra.mxu1 %v1148_v26  ;;  %v658_v8 = vsel %vm364_vm1, %v656_v0, %v657_v1  ;;  %v682_v9 = vsel %vm327_vm0, %v678_v2, 0.0  ;;  %v701_v11 = vrot.slane %v618_v61, 4  ;;  %v702_v23 = vrot.slane %v619_v63, 4 }
  0x22   : > { %5258 = vmatpush.msra.mxu2 %v1147_v39  ;;  %5259 = vmatpush.msra.mxu3 %v1147_v39  ;;  %v661_v12 = vsel %vm364_vm1, %v659_v3, %v660_v4  ;;  %v664_v13 = vsel %vm327_vm0, %v658_v8, 0.0  ;;  %v683_v14 = vrot.slane %v682_v9, 4  ;;  %v689_v15 = vsel %vm327_vm0, %v679_v5, 0.0  ;;  %v3753_v5 = vld [vmem:[%s6814_s0 + $0x2b8] sm:$0xff] }
  0x23   : > { %1168 = vmatpush.msra.mxu0 %v1147_v39  ;;  %5257 = vmatpush.msra.mxu1 %v1147_v39  ;;  %v665_v17 = vrot.slane %v664_v13, 4  ;;  %v671_v18 = vsel %vm327_vm0, %v661_v12, 0.0  ;;  %v690_v19 = vrot.slane %v689_v15, 4  ;;  %v700_v20 = vsel %vm407_vm2, %v698_v6, %v699_v10 }
  0x24   : > { %5261 = vmatpush.msra.mxu2 %v1146_v62  ;;  %5262 = vmatpush.msra.mxu3 %v1146_v62  ;;  %v672_v21 = vrot.slane %v671_v18, 4  ;;  %v684_v22 = vadd.f32 %v683_v14, %v682_v9  ;;  %v706_v24 = vsel %vm327_vm0, %v700_v20, 0.0  ;;  %v703_v31 = vsel %vm407_vm2, %v701_v11, %v702_v23  ;;  %v3765_v14 = vld [vmem:[%s6814_s0 + $0x2e8] sm:$0xff] }
  0x25   : > { %1169 = vmatpush.msra.mxu0 %v1146_v62  ;;  %5260 = vmatpush.msra.mxu1 %v1146_v62  ;;  %v666_v26 = vadd.f32 %v665_v17, %v664_v13  ;;  %v691_v27 = vadd.f32 %v690_v19, %v689_v15  ;;  %v707_v28 = vrot.slane %v706_v24, 4  ;;  %v720_v32 = vadd.f32 %v5531_v50, %v5493_v37  ;;  %v1141_v37 = vld [vmem:[%s6815_s1 + $0x8] sm:$0xff]  ;;  %v3747_v62 = vld [vmem:[%s6814_s0 + $0x2a0] sm:$0xff]  ;;  %v3762_v13 = vld [vmem:[%s6814_s0 + $0x150] sm:$0xff] }
  0x26   : > { %5264 = vmatpush.msra.mxu2 %v1145_v7  ;;  %5265 = vmatpush.msra.mxu3 %v1145_v7  ;;  %v673_v29 = vadd.f32 %v672_v21, %v671_v18  ;;  %v685_v30 = vrot.slane %v684_v22, 2  ;;  %v713_v39 = vsel %vm327_vm0, %v703_v31, 0.0  ;;  %v5600_v47 = vadd.f32 %v5536_v51, %v5498_v38  ;;  %v5673_v31 = vld [vmem:[%s6814_s0 + $0x140] sm:$0xff] }
  0x27   : > { %1170 = vmatpush.msra.mxu0 %v1145_v7  ;;  %5263 = vmatpush.msra.mxu1 %v1145_v7  ;;  %v667_v34 = vrot.slane %v666_v26, 2  ;;  %v692_v35 = vrot.slane %v691_v27, 2  ;;  %v708_v36 = vadd.f32 %v707_v28, %v706_v24  ;;  %v714_v45 = vrot.slane %v713_v39, 4 }
  0x28   : > { %5267 = vmatpush.msra.mxu2 %v1144_v16  ;;  %5268 = vmatpush.msra.mxu3 %v1144_v16  ;;  %v674_v40 = vrot.slane %v673_v29, 2  ;;  %v686_v44 = vadd.f32 %v685_v30, %v684_v22  ;;  %v723_v52 = vadd.f32 %v5547_v54, %v5511_v42  ;;  %v5612_v61 = vadd.f32 %v5542_v53, %v5506_v41  ;;  %v1140_v42 = vld [vmem:[%s6815_s1] sm:$0xff]  ;;  %v3768_v22 = vld [vmem:[%s6814_s0 + $0x168] sm:$0xff] }
  0x29   : > { %1171 = vmatpush.msra.mxu0 %v1144_v16  ;;  %5266 = vmatpush.msra.mxu1 %v1144_v16  ;;  %v668_v48 = vadd.f32 %v667_v34, %v666_v26  ;;  %v693_v49 = vadd.f32 %v692_v35, %v691_v27  ;;  %v709_v50 = vrot.slane %v708_v36, 2  ;;  %v715_v59 = vadd.f32 %v714_v45, %v713_v39  ;;  %v3750_v41 = vld [vmem:[%s6814_s0 + $0x120] sm:$0xff]  ;;  %v3763_v39 = vld [vmem:[%s6814_s0 + $0x158] sm:$0xff] }
  0x2a   : > { %5270 = vmatpush.msra.mxu2 %v1143_v25  ;;  %5271 = vmatpush.msra.mxu3 %v1143_v25  ;;  %v675_v38 = vadd.f32 %v674_v40, %v673_v29  ;;  %v687_v51 = vrot.slane %v686_v44, 1  ;;  %v5622_v1 = vadd.f32 %v5552_v55, %v5516_v43  ;;  %v733_v4 = vadd.f32 %v3744_v57, %v720_v32  ;;  %v3756_v43 = vld [vmem:[%s6814_s0 + $0x138] sm:$0xff]  ;;  %v3759_v55 = vld [vmem:[%s6814_s0 + $0x2d0] sm:$0xff]  ;;  %v3771_v26 = vld [vmem:[%s6814_s0 + $0x300] sm:$0xff] }
  0x2b   : > { %1172 = vmatpush.msra.mxu0 %v1143_v25  ;;  %5269 = vmatpush.msra.mxu1 %v1143_v25  ;;  %v669_v54 = vrot.slane %v668_v48, 1  ;;  %v694_v63 = vrot.slane %v693_v49, 1  ;;  %v710_v0 = vadd.f32 %v709_v50, %v708_v36  ;;  %v716_v3 = vrot.slane %v715_v59, 2  ;;  %v5668_v30 = vld [vmem:[%s6814_s0 + $0x2c0] sm:$0xff]  ;;  %v5678_v32 = vld [vmem:[%s6814_s0 + $0x2d8] sm:$0xff]  ;;  %v3766_v50 = vld [vmem:[%s6814_s0 + $0x2f0] sm:$0xff] }
  0x2c   : > { %5273 = vmatpush.msra.mxu2 %v1142_v33  ;;  %5274 = vmatpush.msra.mxu3 %v1142_v33  ;;  %v676_v53 = vrot.slane %v675_v38, 1  ;;  %v688_v2 = vadd.f32 %v687_v51, %v686_v44  ;;  %v736_v9 = vadd.f32 %v3747_v62, %v723_v52  ;;  %v746_v12 = vadd.f32 %v3750_v41, %v733_v4  ;;  %v3774_v40 = vld [vmem:[%s6814_s0 + $0x180] sm:$0xff]  ;;  %v3777_v44 = vld [vmem:[%s6814_s0 + $0x318] sm:$0xff] }
  0x2d   : > { %1173 = vmatpush.msra.mxu0 %v1142_v33  ;;  %5272 = vmatpush.msra.mxu1 %v1142_v33  ;;  %v670_v6 = vadd.f32 %v669_v54, %v668_v48  ;;  %v695_v7 = vadd.f32 %v694_v63, %v693_v49  ;;  %v711_v8 = vrot.slane %v710_v0, 1  ;;  %v717_v11 = vadd.f32 %v716_v3, %v715_v59  ;;  %v269_v52 = vld [vmem:[%s6814_s0] sm:$0xff]  ;;  %v3684_v57 = vld [vmem:[%s6814_s0 + $0x18] sm:$0xff]  ;;  %v3769_v63 = vld [vmem:[%s6814_s0 + $0x170] sm:$0xff] }
  0x2e   : > { %5276 = vmatpush.msra.mxu2 %v1141_v37  ;;  %5277 = vmatpush.msra.mxu3 %v1141_v37  ;;  %v677_v10 = vadd.f32 %v676_v53, %v675_v38  ;;  %v749_v15 = vadd.f32 %v3753_v5, %v736_v9  ;;  %v865_v16 = vadd.f32 %v3756_v43, %v3750_v41 }
  0x2f   : > { %1174 = vmatpush.msra.mxu0 %v1141_v37  ;;  %5275 = vmatpush.msra.mxu1 %v1141_v37  ;;  %v868_v17 = vadd.f32 %v3759_v55, %v3753_v5  ;;  %v712_v18 = vadd.f32 %v711_v8, %v710_v0  ;;  %v718_v19 = vrot.slane %v717_v11, 1  ;;  %v5644_v20 = vadd.f32 %v5561_v58, %v5523_v46  ;;  %v5659_v46 = vld [vmem:[%s6814_s0 + $0x128] sm:$0xff] }
  0x30   : > { %5279 = vmatpush.msra.mxu2 %v1140_v42  ;;  %5280 = vmatpush.msra.mxu3 %v1140_v42  ;;  %v5646_v21 = vadd.f32 %v3756_v43, %v746_v12  ;;  %v5651_v23 = vadd.f32 %v3759_v55, %v749_v15  ;;  %v878_v24 = vadd.f32 %v3762_v13, %v865_v16  ;;  %v3772_v0 = vld [vmem:[%s6814_s0 + $0x308] sm:$0xff] }
  0x31   : > { %1175 = vmatpush.msra.mxu0 %v1140_v42  ;;  %5278 = vmatpush.msra.mxu1 %v1140_v42  ;;  %v881_v25 = vadd.f32 %v3765_v14, %v868_v17  ;;  %v719_v58 = vadd.f32 %v718_v19, %v717_v11  ;;  %v1064_v28 = vsel %vm1012_vm3, %v677_v10, %v670_v6  ;;  %v3775_v55 = vld [vmem:[%s6814_s0 + $0x188] sm:$0xff]  ;;  %v3778_v6 = vld [vmem:[%s6814_s0 + $0x320] sm:$0xff] }
  0x32   : > { %v765_v27 = vsel %vm327_vm0, %v5646_v21, 0.0  ;;  %v1068_v29 = vsel %vm1017_vm4, %v695_v7, %v688_v2  ;;  %v772_v34 = vsel %vm327_vm0, %v5651_v23, 0.0  ;;  %v801_v35 = vrot.slane %v5646_v21, 6 }
  0x33   : > { %v766_v33 = vrot.slane %v765_v27, 4  ;;  %v891_v36 = vadd.f32 %v3768_v22, %v878_v24  ;;  %v773_v45 = vrot.slane %v772_v34, 4  ;;  %v804_v37 = vrot.slane %v5651_v23, 6 }
  0x34   : > { %v894_v48 = vadd.f32 %v3771_v26, %v881_v25  ;;  %v1072_v49 = vsel %vm1022_vm5, %v719_v58, %v712_v18  ;;  %v1088_v51 = vsel %vm364_vm1, %v1064_v28, %v1068_v29  ;;  %v866_v59 = vadd.f32 %v5673_v31, %v5659_v46 }
  0x35   : > { %v767_v38 = vadd.f32 %v766_v33, %v765_v27  ;;  %v869_v62 = vadd.f32 %v5678_v32, %v5668_v30  ;;  %v774_v42 = vadd.f32 %v773_v45, %v772_v34  ;;  %v1089_v54 = vsel %vm407_vm2, %v1088_v51, %v1072_v49 }
  0x36   : > { %v904_v41 = vadd.f32 %v3774_v40, %v891_v36  ;;  %v907_v53 = vadd.f32 %v3777_v44, %v894_v48  ;;  %v879_v3 = vadd.f32 %v3763_v39, %v866_v59  ;;  %v5715_v5 = vadd.f32 %v3684_v57, %v269_v52 }
  0x37   : > { %v768_v2 = vrot.slane %v767_v38, 2  ;;  %v882_v4 = vadd.f32 %v3766_v50, %v869_v62  ;;  %v775_v43 = vrot.slane %v774_v42, 2 }
  0x38   : > { %v910_v7 = vsel %vm327_vm0, %v904_v41, 0.0  ;;  %v917_v8 = vsel %vm327_vm0, %v907_v53, 0.0  ;;  %v926_v9 = vrot.slane %v904_v41, 3  ;;  %v892_v11 = vadd.f32 %v3769_v63, %v879_v3 }
  0x39   : > { %v769_v10 = vadd.f32 %v768_v2, %v767_v38  ;;  %v895_v12 = vadd.f32 %v3772_v0, %v882_v4  ;;  %v911_v13 = vrot.slane %v910_v7, 4  ;;  %v776_v14 = vadd.f32 %v775_v43, %v774_v42  ;;  %v3685_v4 = vld [vmem:[%s6814_s0 + $0x20] sm:$0xff] }
  0x3a   : > { %v918_v15 = vrot.slane %v917_v8, 4  ;;  %v927_v16 = vrot.slane %v907_v53, 3  ;;  %v930_v17 = vsel %vm327_vm0, %v926_v9, 0.0  ;;  %v5726_v19 = vadd.f32 %v3775_v55, %v892_v11  ;;  %v272_v11 = vld [vmem:[%s6814_s0 + $0x198] sm:$0xff] }
  0x3b   : > { %v770_v18 = vrot.slane %v769_v10, 1  ;;  %v5728_v22 = vadd.f32 %v3778_v6, %v895_v12  ;;  %v912_v24 = vadd.f32 %v911_v13, %v910_v7  ;;  %v777_v25 = vrot.slane %v776_v14, 1 }
  0x3c   : > { %v919_v26 = vadd.f32 %v918_v15, %v917_v8  ;;  %v931_v58 = vrot.slane %v930_v17, 4  ;;  %v937_v27 = vsel %vm327_vm0, %v927_v16, 0.0  ;;  %v946_v34 = vrot.slane %v904_v41, 6  ;;  %v273_v15 = vld [vmem:[%s6814_s0 + $0x1a0] sm:$0xff]  ;;  %v3687_v16 = vld [vmem:[%s6814_s0 + $0x1b0] sm:$0xff] }
  0x3d   : > { %v771_v28 = vadd.f32 %v770_v18, %v769_v10  ;;  %v913_v29 = vrot.slane %v912_v24, 2  ;;  %v938_v33 = vrot.slane %v937_v27, 4  ;;  %v778_v36 = vadd.f32 %v777_v25, %v776_v14 }
  0x3e   : > { %v920_v39 = vrot.slane %v919_v26, 2  ;;  %v932_v40 = vadd.f32 %v931_v58, %v930_v17  ;;  %v947_v44 = vrot.slane %v5726_v19, 6  ;;  %v949_v49 = vrot.slane %v907_v53, 6  ;;  %v270_v53 = vld [vmem:[%s6814_s0 + $0x8] sm:$0xff]  ;;  %v3688_v17 = vld [vmem:[%s6814_s0 + $0x1b8] sm:$0xff] }
  0x3f   : > { %v914_v45 = vadd.f32 %v913_v29, %v912_v24  ;;  %v939_v48 = vadd.f32 %v938_v33, %v937_v27  ;;  %v950_v50 = vrot.slane %v5728_v22, 6  ;;  %v1076_v52 = vsel %vm1027_vm6, %v778_v36, %v771_v28  ;;  %v3690_v27 = vld [vmem:[%s6814_s0 + $0x30] sm:$0xff]  ;;  %v3691_v36 = vld [vmem:[%s6814_s0 + $0x38] sm:$0xff] }
  0x40   : > { %v921_v57 = vadd.f32 %v920_v39, %v919_v26  ;;  %v933_v38 = vrot.slane %v932_v40, 2  ;;  %v948_v51 = vsel %vm364_vm1, %v946_v34, %v947_v44  ;;  %v1090_v59 = vsel %vm1080_vm7, %v1089_v54, %v1076_v52 }
  0x41   : > { %v915_v62 = vrot.slane %v914_v45, 1  ;;  %v940_v42 = vrot.slane %v939_v48, 2  ;;  %v951_v63 = vsel %vm364_vm1, %v949_v49, %v950_v50  ;;  %v1136_v0 = vmul.f32 0.04, %v1090_v59  ;;  %v3694_v49 = vld [vmem:[%s6814_s0 + $0x1d0] sm:$0xff] }
  0x42   : > { %v922_v41 = vrot.slane %v921_v57, 1  ;;  %v934_v2 = vadd.f32 %v933_v38, %v932_v40  ;;  %v954_v3 = vsel %vm327_vm0, %v948_v51, 0.0  ;;  %v961_v6 = vsel %vm327_vm0, %v951_v63, 0.0  ;;  %v3696_v51 = vld [vmem:[%s6814_s0 + $0x48] sm:$0xff]  ;;  %v5782_v59 = vld [vmem:[%s6814_s0 + $0x50] sm:$0xff] }
  0x43   : > { %v916_v43 = vadd.f32 %v915_v62, %v914_v45  ;;  %v941_v55 = vadd.f32 %v940_v42, %v939_v48  ;;  %v955_v54 = vrot.slane %v954_v3, 4  ;;  %1185 = vmatmul.f32.vlgmr.msra.gmra.mxu2 %v1136_v0  ;;  %v962_v9 = vrot.slane %v961_v6, 4  ;;  %v3693_v48 = vld [vmem:[%s6814_s0 + $0x1c8] sm:$0xff] }
  0x44   : > { %v923_v7 = vadd.f32 %v922_v41, %v921_v57  ;;  %v935_v8 = vrot.slane %v934_v2, 1  ;;  %v968_v10 = vrot.slane %v5726_v19, 1  ;;  %v969_v14 = vrot.slane %v5728_v22, 1  ;;  %v5788_v41 = vld [vmem:[%s6814_s0 + $0x1e0] sm:$0xff] }
  0x45   : > { %v942_v12 = vrot.slane %v941_v55, 1  ;;  %v956_v13 = vadd.f32 %v955_v54, %v954_v3  ;;  %v283_v18 = vadd.f32 %v3685_v4, %v270_v53  ;;  %v963_v25 = vadd.f32 %v962_v9, %v961_v6  ;;  %v5807_v9 = vld [vmem:[%s6814_s0 + $0x1f8] sm:$0xff] }
  0x46   : > { %v936_v24 = vadd.f32 %v935_v8, %v934_v2  ;;  %v972_v26 = vsel %vm327_vm0, %v968_v10, 0.0  ;;  %v1109_v58 = vsel %vm1012_vm3, %v923_v7, %v916_v43  ;;  %v979_v34 = vsel %vm327_vm0, %v969_v14, 0.0  ;;  %v3702_v43 = vld [vmem:[%s6814_s0 + $0x60] sm:$0xff] }
  0x47   : > { %v943_v28 = vadd.f32 %v942_v12, %v941_v55  ;;  %v957_v29 = vrot.slane %v956_v13, 2  ;;  %v973_v33 = vrot.slane %v972_v26, 4  ;;  %v964_v39 = vrot.slane %v963_v25, 2  ;;  %v5801_v55 = vld [vmem:[%s6814_s0 + $0x68] sm:$0xff]  ;;  %v5812_v10 = vld [vmem:[%s6814_s0 + $0x200] sm:$0xff] }
  0x48   : > { %v980_v40 = vrot.slane %v979_v34, 4  ;;  %v285_v44 = vadd.f32 %v3687_v16, %v272_v11  ;;  %v286_v45 = vadd.f32 %v3688_v17, %v273_v15  ;;  %v295_v38 = vadd.f32 %v3690_v27, %v5715_v5  ;;  %v5793_v5 = vld [vmem:[%s6814_s0 + $0x1e8] sm:$0xff] }
  0x49   : > { %v958_v50 = vadd.f32 %v957_v29, %v956_v13  ;;  %v974_v52 = vadd.f32 %v973_v33, %v972_v26  ;;  %v1113_v57 = vsel %vm1017_vm4, %v943_v28, %v936_v24  ;;  %v965_v62 = vadd.f32 %v964_v39, %v963_v25 }
  0x4a   : > { %v981_v42 = vadd.f32 %v980_v40, %v979_v34  ;;  %v1130_v63 = vsel %vm364_vm1, %v1109_v58, %v1113_v57  ;;  %v296_v0 = vadd.f32 %v3691_v36, %v283_v18  ;;  %v298_v53 = vadd.f32 %v3693_v48, %v285_v44 }
  0x4b   : > { %v959_v2 = vrot.slane %v958_v50, 1  ;;  %v975_v3 = vrot.slane %v974_v52, 2  ;;  %v299_v4 = vadd.f32 %v3694_v49, %v286_v45  ;;  %v966_v54 = vrot.slane %v965_v62, 1 }
  0x4c   : > { %v982_v6 = vrot.slane %v981_v42, 2  ;;  %v308_v7 = vadd.f32 %v3696_v51, %v295_v38  ;;  %v309_v8 = vadd.f32 %v5782_v59, %v296_v0  ;;  %v311_v13 = vadd.f32 %v5788_v41, %v298_v53 }
  0x4d   : > { %v960_v11 = vadd.f32 %v959_v2, %v958_v50  ;;  %v976_v12 = vadd.f32 %v975_v3, %v974_v52  ;;  %v312_v14 = vadd.f32 %v5793_v5, %v299_v4  ;;  %v967_v15 = vadd.f32 %v966_v54, %v965_v62 }
  0x4e   : > { %v983_v16 = vadd.f32 %v982_v6, %v981_v42  ;;  %v321_v17 = vadd.f32 %v3702_v43, %v308_v7  ;;  %v5817_v18 = vadd.f32 %v5801_v55, %v309_v8  ;;  %v324_v25 = vadd.f32 %v5807_v9, %v311_v13 }
  0x4f   : > { %v977_v24 = vrot.slane %v976_v12, 1  ;;  %v5821_v26 = vadd.f32 %v5812_v10, %v312_v14  ;;  %v5823_v58 = vadd.f32 %v3702_v43, %v3696_v51  ;;  %v1117_v28 = vsel %vm1022_vm5, %v967_v15, %v960_v11 }
  0x50   : > { %v984_v27 = vrot.slane %v983_v16, 1  ;;  %v328_v29 = vsel %vm327_vm0, %v321_v17, 0.0  ;;  %v344_v33 = vrot.slane %v321_v17, 3  ;;  %v1131_v36 = vsel %vm407_vm2, %v1130_v63, %v1117_v28 }
  0x51   : > { %v978_v34 = vadd.f32 %v977_v24, %v976_v12  ;;  %v329_v39 = vrot.slane %v328_v29, 4  ;;  %v335_v40 = vsel %vm327_vm0, %v324_v25, 0.0  ;;  %v345_v48 = vrot.slane %v324_v25, 3 }
  0x52   : > { %v985_v44 = vadd.f32 %v984_v27, %v983_v16  ;;  %v336_v45 = vrot.slane %v335_v40, 4  ;;  %v348_v49 = vsel %vm327_vm0, %v344_v33, 0.0  ;;  %v365_v57 = vrot.slane %v321_v17, 6 }
  0x53   : > { %v330_v50 = vadd.f32 %v329_v39, %v328_v29  ;;  %v349_v52 = vrot.slane %v348_v49, 4  ;;  %v366_v38 = vrot.slane %v5817_v18, 6  ;;  %v355_v42 = vsel %vm327_vm0, %v345_v48, 0.0 }
  0x54   : > { %v1121_v51 = vsel %vm1027_vm6, %v985_v44, %v978_v34  ;;  %v337_v62 = vadd.f32 %v336_v45, %v335_v40  ;;  %v368_v0 = vrot.slane %v324_v25, 6  ;;  %v356_v53 = vrot.slane %v355_v42, 4 }
  0x55   : > { %v1132_v63 = vsel %vm1080_vm7, %v1131_v36, %v1121_v51  ;;  %v331_v2 = vrot.slane %v330_v50, 2  ;;  %v350_v3 = vadd.f32 %v349_v52, %v348_v49  ;;  %v367_v54 = vsel %vm364_vm1, %v365_v57, %v366_v38  ;;  %v3709_v52 = vld [vmem:[%s6814_s0 + $0x80] sm:$0xff] }
  0x56   : > { %v1138_v4 = vmul.f32 0.04, %v1132_v63  ;;  %v338_v43 = vrot.slane %v337_v62, 2  ;;  %v369_v6 = vrot.slane %v5821_v26, 6  ;;  %v357_v11 = vadd.f32 %v356_v53, %v355_v42  ;;  %v3745_v53 = vld [vmem:[%s6814_s0 + $0x110] sm:$0xff] }
  0x57   : > { %v332_v7 = vadd.f32 %v331_v2, %v330_v50  ;;  %v351_v8 = vrot.slane %v350_v3, 2  ;;  %v373_v12 = vsel %vm327_vm0, %v367_v54, 0.0  ;;  %v387_v16 = vrot.slane %v5817_v18, 1  ;;  %v3748_v54 = vld [vmem:[%s6814_s0 + $0x2a8] sm:$0xff] }
  0x58   : > { %1191 = vmatmul.f32.vlgmr.msra.gmra.mxu3 %v1138_v4  ;;  %v339_v13 = vadd.f32 %v338_v43, %v337_v62  ;;  %v370_v14 = vsel %vm364_vm1, %v368_v0, %v369_v6  ;;  %v374_v15 = vrot.slane %v373_v12, 4  ;;  %v358_v25 = vrot.slane %v357_v11, 2 }
  0x59   : > { %v333_v17 = vrot.slane %v332_v7, 1  ;;  %v352_v24 = vadd.f32 %v351_v8, %v350_v3  ;;  %v380_v27 = vsel %vm327_vm0, %v370_v14, 0.0  ;;  %v388_v34 = vrot.slane %v5821_v26, 1  ;;  %v3712_v3 = vld [vmem:[%s6814_s0 + $0x218] sm:$0xff] }
  0x5a   : > { %v340_v28 = vrot.slane %v339_v13, 1  ;;  %v375_v29 = vadd.f32 %v374_v15, %v373_v12  ;;  %v381_v33 = vrot.slane %v380_v27, 4  ;;  %v359_v40 = vadd.f32 %v358_v25, %v357_v11  ;;  %v3746_v12 = vld [vmem:[%s6814_s0 + $0x118] sm:$0x1] }
  0x5b   : > { %v334_v36 = vadd.f32 %v333_v17, %v332_v7  ;;  %v353_v39 = vrot.slane %v352_v24, 1  ;;  %v391_v44 = vsel %vm327_vm0, %v387_v16, 0.0  ;;  %v398_v51 = vsel %vm327_vm0, %v388_v34, 0.0 }
  0x5c   : > { %v341_v45 = vadd.f32 %v340_v28, %v339_v13  ;;  %v376_v48 = vrot.slane %v375_v29, 2  ;;  %v382_v49 = vadd.f32 %v381_v33, %v380_v27  ;;  %v392_v50 = vrot.slane %v391_v44, 4 }
  0x5d   : > { %v354_v57 = vadd.f32 %v353_v39, %v352_v24  ;;  %v360_v38 = vrot.slane %v359_v40, 1  ;;  %v431_v62 = vadd.f32 %v5801_v55, %v5782_v59  ;;  %v399_v2 = vrot.slane %v398_v51, 4 }
  0x5e   : > { %v377_v42 = vadd.f32 %v376_v48, %v375_v29  ;;  %v383_v0 = vrot.slane %v382_v49, 2  ;;  %v393_v63 = vadd.f32 %v392_v50, %v391_v44  ;;  %v5856_v43 = vadd.f32 %v5807_v9, %v5788_v41  ;;  %v3749_v41 = vld [vmem:[%s6814_s0 + $0x2b0] sm:$0x1] }
  0x5f   : > { %v361_v4 = vadd.f32 %v360_v38, %v359_v40  ;;  %v434_v59 = vadd.f32 %v5812_v10, %v5793_v5  ;;  %v5860_v55 = vadd.f32 %v3709_v52, %v431_v62  ;;  %v400_v11 = vadd.f32 %v399_v2, %v398_v51 }
  0x60   : > { %v378_v6 = vrot.slane %v377_v42, 1  ;;  %v384_v7 = vadd.f32 %v383_v0, %v382_v49  ;;  %v394_v8 = vrot.slane %v393_v63, 2  ;;  %v1013_v5 = vsel %vm1012_vm3, %v341_v45, %v334_v36  ;;  %v5883_v36 = vld [vmem:[%s6814_s0 + $0x130] sm:$0x1]  ;;  %v5899_v49 = vld [vmem:[%s6814_s0 + $0x148] sm:$0x1] }
  0x61   : > { %v5871_v9 = vadd.f32 %v3712_v3, %v434_v59  ;;  %v1018_v10 = vsel %vm1017_vm4, %v361_v4, %v354_v57  ;;  %v734_v13 = vadd.f32 %v3745_v53, %v5600_v47  ;;  %v401_v17 = vrot.slane %v400_v11, 2  ;;  %v5888_v47 = vld [vmem:[%s6814_s0 + $0x2c8] sm:$0x1] }
  0x62   : > { %v379_v14 = vadd.f32 %v378_v6, %v377_v42  ;;  %v385_v15 = vrot.slane %v384_v7, 1  ;;  %v395_v16 = vadd.f32 %v394_v8, %v393_v63  ;;  %v1078_v24 = vsel %vm364_vm1, %v1013_v5, %v1018_v10 }
  0x63   : > { %v735_v25 = vadd.f32 %v3746_v12, %v5612_v61  ;;  %v737_v27 = vadd.f32 %v3748_v54, %v5622_v1  ;;  %v738_v28 = vadd.f32 %v3749_v41, %v5644_v20  ;;  %v402_v34 = vadd.f32 %v401_v17, %v400_v11 }
  0x64   : > { %v386_v29 = vadd.f32 %v385_v15, %v384_v7  ;;  %v396_v33 = vrot.slane %v395_v16, 1  ;;  %v747_v39 = vadd.f32 %v5659_v46, %v734_v13  ;;  %v781_v40 = vrot.slane %v5646_v21, 3  ;;  %v5904_v46 = vld [vmem:[%s6814_s0 + $0x2e0] sm:$0x1] }
  0x65   : > { %v748_v61 = vadd.f32 %v5883_v36, %v735_v25  ;;  %v750_v1 = vadd.f32 %v5668_v30, %v737_v27  ;;  %v751_v20 = vadd.f32 %v5888_v47, %v738_v28  ;;  %v403_v45 = vrot.slane %v402_v34, 1 }
  0x66   : > { %v397_v44 = vadd.f32 %v396_v33, %v395_v16  ;;  %v1023_v48 = vsel %vm1022_vm5, %v386_v29, %v379_v14  ;;  %v760_v30 = vadd.f32 %v5673_v31, %v747_v39  ;;  %v782_v62 = vrot.slane %v5651_v23, 3 }
  0x67   : > { %v1079_v50 = vsel %vm407_vm2, %v1078_v24, %v1023_v48  ;;  %v761_v52 = vadd.f32 %v5899_v49, %v748_v61  ;;  %v763_v57 = vadd.f32 %v5678_v32, %v750_v1  ;;  %v764_v38 = vadd.f32 %v5904_v46, %v751_v20 }
  0x68   : > { %v404_v51 = vadd.f32 %v403_v45, %v402_v34  ;;  %v785_v42 = vsel %vm327_vm0, %v781_v40, 0.0  ;;  %v802_v0 = vrot.slane %v760_v30, 6  ;;  %v823_v3 = vrot.slane %v760_v30, 1 }
  0x69   : > { %v786_v63 = vrot.slane %v785_v42, 4  ;;  %v805_v2 = vrot.slane %v763_v57, 6  ;;  %v824_v53 = vrot.slane %v763_v57, 1  ;;  %v792_v4 = vsel %vm327_vm0, %v782_v62, 0.0 }
  0x6a   : > { %v1028_v31 = vsel %vm1027_vm6, %v404_v51, %v397_v44  ;;  %v803_v32 = vsel %vm364_vm1, %v801_v35, %v802_v0  ;;  %v843_v59 = vrot.slane %v760_v30, 4  ;;  %v793_v7 = vrot.slane %v792_v4, 4 }
  0x6b   : > { %v1081_v54 = vsel %vm1080_vm7, %v1079_v50, %v1028_v31  ;;  %v787_v6 = vadd.f32 %v786_v63, %v785_v42  ;;  %v806_v8 = vsel %vm364_vm1, %v804_v37, %v805_v2  ;;  %v809_v12 = vsel %vm327_vm0, %v803_v32, 0.0  ;;  %v3764_v32 = vld [vmem:[%s6814_s0 + $0x160] sm:$0x1] }
  0x6c   : > { %v1133_v11 = vmul.f32 0.04, %v1081_v54  ;;  %v816_v41 = vsel %vm327_vm0, %v806_v8, 0.0  ;;  %v827_v5 = vsel %vm327_vm0, %v823_v3, 0.0  ;;  %v794_v21 = vadd.f32 %v793_v7, %v792_v4 }
  0x6d   : > { %v788_v10 = vrot.slane %v787_v6, 2  ;;  %v810_v13 = vrot.slane %v809_v12, 4  ;;  %v817_v35 = vrot.slane %v816_v41, 4  ;;  %v828_v14 = vrot.slane %v827_v5, 4 }
  0x6e   : > { %1176 = vmatmul.f32.vlgmr.msra.gmra.mxu0 %v1133_v11  ;;  %v834_v15 = vsel %vm327_vm0, %v824_v53, 0.0  ;;  %v844_v16 = vrot.slane %v761_v52, 4  ;;  %v846_v17 = vrot.slane %v763_v57, 4  ;;  %v795_v24 = vrot.slane %v794_v21, 2  ;;  %v3770_v11 = vld [vmem:[%s6814_s0 + $0x178] sm:$0x1] }
  0x6f   : > { %v789_v23 = vadd.f32 %v788_v10, %v787_v6  ;;  %v811_v37 = vadd.f32 %v810_v13, %v809_v12  ;;  %v818_v25 = vadd.f32 %v817_v35, %v816_v41  ;;  %v829_v27 = vadd.f32 %v828_v14, %v827_v5  ;;  %v3773_v10 = vld [vmem:[%s6814_s0 + $0x310] sm:$0x1]  ;;  %v3686_v14 = vld [vmem:[%s6814_s0 + $0x28] sm:$0x1] }
  0x70   : > { %v835_v28 = vrot.slane %v834_v15, 4  ;;  %v845_v29 = vsel %vm407_vm2, %v843_v59, %v844_v16  ;;  %v847_v33 = vrot.slane %v764_v38, 4  ;;  %v796_v39 = vadd.f32 %v795_v24, %v794_v21  ;;  %v3767_v59 = vld [vmem:[%s6814_s0 + $0x2f8] sm:$0x1]  ;;  %v3776_v24 = vld [vmem:[%s6814_s0 + $0x190] sm:$0x1] }
  0x71   : > { %v790_v34 = vrot.slane %v789_v23, 1  ;;  %v812_v61 = vrot.slane %v811_v37, 2  ;;  %v819_v1 = vrot.slane %v818_v25, 2  ;;  %v830_v20 = vrot.slane %v829_v27, 2 }
  0x72   : > { %v836_v40 = vadd.f32 %v835_v28, %v834_v15  ;;  %v848_v44 = vsel %vm407_vm2, %v846_v17, %v847_v33  ;;  %v851_v45 = vsel %vm327_vm0, %v845_v29, 0.0  ;;  %v797_v30 = vrot.slane %v796_v39, 1  ;;  %v3689_v15 = vld [vmem:[%s6814_s0 + $0x1c0] sm:$0x1] }
  0x73   : > { %v791_v48 = vadd.f32 %v790_v34, %v789_v23  ;;  %v813_v50 = vadd.f32 %v812_v61, %v811_v37  ;;  %v820_v52 = vadd.f32 %v819_v1, %v818_v25  ;;  %v831_v57 = vadd.f32 %v830_v20, %v829_v27  ;;  %v3779_v37 = vld [vmem:[%s6814_s0 + $0x328] sm:$0x1]  ;;  %v3692_v34 = vld [vmem:[%s6814_s0 + $0x40] sm:$0x1] }
  0x74   : > { %v837_v51 = vrot.slane %v836_v40, 2  ;;  %v852_v62 = vrot.slane %v851_v45, 4  ;;  %v858_v42 = vsel %vm327_vm0, %v848_v44, 0.0  ;;  %v798_v38 = vadd.f32 %v797_v30, %v796_v39  ;;  %v3695_v39 = vld [vmem:[%s6814_s0 + $0x1d8] sm:$0x1] }
  0x75   : > { %v814_v0 = vrot.slane %v813_v50, 1  ;;  %v821_v63 = vrot.slane %v820_v52, 1  ;;  %v859_v2 = vrot.slane %v858_v42, 4  ;;  %v832_v3 = vrot.slane %v831_v57, 1 }
  0x76   : > { %v838_v53 = vadd.f32 %v837_v51, %v836_v40  ;;  %v853_v31 = vadd.f32 %v852_v62, %v851_v45  ;;  %v867_v4 = vadd.f32 %v5899_v49, %v5883_v36  ;;  %v870_v8 = vadd.f32 %v5904_v46, %v5888_v47  ;;  %v271_v36 = vld [vmem:[%s6814_s0 + $0x10] sm:$0x1]  ;;  %v274_v47 = vld [vmem:[%s6814_s0 + $0x1a8] sm:$0x1] }
  0x77   : > { %v815_v54 = vadd.f32 %v814_v0, %v813_v50  ;;  %v822_v6 = vadd.f32 %v821_v63, %v820_v52  ;;  %v860_v7 = vadd.f32 %v859_v2, %v858_v42  ;;  %v833_v49 = vadd.f32 %v832_v3, %v831_v57  ;;  %v3704_v50 = vld [vmem:[%s6814_s0 + $0x70] sm:$0x1]  ;;  %v3707_v52 = vld [vmem:[%s6814_s0 + $0x208] sm:$0x1] }
  0x78   : > { %v839_v12 = vrot.slane %v838_v53, 1  ;;  %v854_v41 = vrot.slane %v853_v31, 2  ;;  %v1093_v5 = vsel %vm1012_vm3, %v798_v38, %v791_v48  ;;  %v880_v13 = vadd.f32 %v3764_v32, %v867_v4  ;;  %v3708_v38 = vld [vmem:[%s6814_s0 + $0x78] sm:$0xff] }
  0x79   : > { %v861_v46 = vrot.slane %v860_v7, 2  ;;  %v1097_v21 = vsel %vm1017_vm4, %v822_v6, %v815_v54  ;;  %v883_v35 = vadd.f32 %v3767_v59, %v870_v8  ;;  %v988_v25 = vrot.slane %v5726_v19, 4  ;;  %v3698_v19 = vld [vmem:[%s6814_s0 + $0x58] sm:$0x1]  ;;  %v3711_v6 = vld [vmem:[%s6814_s0 + $0x210] sm:$0xff] }
  0x7a   : > { %v840_v16 = vadd.f32 %v839_v12, %v838_v53  ;;  %v855_v17 = vadd.f32 %v854_v41, %v853_v31  ;;  %v1127_v23 = vsel %vm364_vm1, %v1093_v5, %v1097_v21  ;;  %v893_v28 = vadd.f32 %v3770_v11, %v880_v13 }
  0x7b   : > { %v862_v27 = vadd.f32 %v861_v46, %v860_v7  ;;  %v896_v29 = vadd.f32 %v3773_v10, %v883_v35  ;;  %v991_v33 = vrot.slane %v5728_v22, 4  ;;  %v284_v20 = vadd.f32 %v3686_v14, %v271_v36  ;;  %v3701_v22 = vld [vmem:[%s6814_s0 + $0x1f0] sm:$0x1] }
  0x7c   : > { %v856_v61 = vrot.slane %v855_v17, 1  ;;  %v1101_v1 = vsel %vm1022_vm5, %v840_v16, %v833_v49  ;;  %v287_v40 = vadd.f32 %v3689_v15, %v274_v47  ;;  %v906_v48 = vadd.f32 %v3776_v24, %v893_v28  ;;  %v5299_v46 = vld [vmem:[%s6814_s0 + $0x90] sm:$0xff] }
  0x7d   : > { %v863_v44 = vrot.slane %v862_v27, 1  ;;  %v1128_v45 = vsel %vm407_vm2, %v1127_v23, %v1101_v1  ;;  %v909_v30 = vadd.f32 %v3779_v37, %v896_v29  ;;  %v297_v51 = vadd.f32 %v3692_v34, %v284_v20  ;;  %v5301_v16 = vld [vmem:[%s6814_s0 + $0x230] sm:$0xff]  ;;  %v5302_v23 = vld [vmem:[%s6814_s0 + $0x228] sm:$0xff] }
  0x7e   : > { %v857_v57 = vadd.f32 %v856_v61, %v855_v17  ;;  %v300_v62 = vadd.f32 %v3695_v39, %v287_v40  ;;  %v408_v42 = vrot.slane %v5817_v18, 4  ;;  %v989_v63 = vrot.slane %v906_v48, 4  ;;  %v5305_v61 = vld [vmem:[%s6814_s0 + $0x240] sm:$0xff]  ;;  %v5306_v20 = vld [vmem:[%s6814_s0 + $0x248] sm:$0xff] }
  0x7f   : > { %v864_v0 = vadd.f32 %v863_v44, %v862_v27  ;;  %v992_v2 = vrot.slane %v909_v30, 4  ;;  %v411_v3 = vrot.slane %v5821_v26, 4  ;;  %v310_v53 = vadd.f32 %v3698_v19, %v297_v51 }
  0x80   : > { %v313_v31 = vadd.f32 %v3701_v22, %v300_v62  ;;  %v5994_v4 = vadd.f32 %v3704_v50, %v3698_v19  ;;  %v5996_v32 = vadd.f32 %v3707_v52, %v3701_v22  ;;  %v990_v54 = vsel %vm407_vm2, %v988_v25, %v989_v63  ;;  %v5304_v25 = vld [vmem:[%s6814_s0 + $0xb0] sm:$0xff] }
  0x81   : > { %v1105_v59 = vsel %vm1027_vm6, %v864_v0, %v857_v57  ;;  %v993_v18 = vsel %vm407_vm2, %v991_v33, %v992_v2  ;;  %v443_v7 = vadd.f32 %v3708_v38, %v5823_v58  ;;  %v996_v8 = vsel %vm327_vm0, %v990_v54, 0.0  ;;  %v5300_v58 = vld [vmem:[%s6814_s0 + $0x98] sm:$0xff] }
  0x82   : > { %v1129_v26 = vsel %vm1080_vm7, %v1128_v45, %v1105_v59  ;;  %v1003_v11 = vsel %vm327_vm0, %v993_v18, 0.0  ;;  %v323_v36 = vadd.f32 %v3704_v50, %v310_v53  ;;  %v997_v12 = vrot.slane %v996_v8, 4 }
  0x83   : > { %v1137_v49 = vmul.f32 0.04, %v1129_v26  ;;  %v1004_v41 = vrot.slane %v1003_v11, 4  ;;  %v326_v5 = vadd.f32 %v3707_v52, %v313_v31  ;;  %v446_v47 = vadd.f32 %v3711_v6, %v5856_v43 }
  0x84   : > { %v409_v10 = vrot.slane %v323_v36, 4  ;;  %v456_v21 = vadd.f32 %v5299_v46, %v443_v7  ;;  %v457_v13 = vadd.f32 %v5300_v58, %v5860_v55  ;;  %v998_v35 = vadd.f32 %v997_v12, %v996_v8  ;;  %v5303_v55 = vld [vmem:[%s6814_s0 + $0xa8] sm:$0xff] }
  0x85   : > { %1188 = vmatmul.f32.gmra.mxu2 %v1137_v49  ;;  %v1005_v14 = vadd.f32 %v1004_v41, %v1003_v11  ;;  %v412_v15 = vrot.slane %v326_v5, 4  ;;  %v460_v43 = vadd.f32 %v5301_v16, %v5871_v9  ;;  %v459_v24 = vadd.f32 %v5302_v23, %v446_v47  ;;  %v3710_v23 = vld [vmem:[%s6814_s0 + $0x88] sm:$0x1] }
  0x86   : > { %v410_v17 = vsel %vm407_vm2, %v408_v42, %v409_v10  ;;  %v6027_v37 = vadd.f32 %v5303_v55, %v456_v21  ;;  %v6032_v27 = vadd.f32 %v5304_v25, %v457_v13  ;;  %v999_v9 = vrot.slane %v998_v35, 2 }
  0x87   : > { %v1006_v28 = vrot.slane %v1005_v14, 2  ;;  %v413_v29 = vsel %vm407_vm2, %v411_v3, %v412_v15  ;;  %v416_v33 = vsel %vm327_vm0, %v410_v17, 0.0  ;;  %v472_v1 = vadd.f32 %v5305_v61, %v459_v24 }
  0x88   : > { %v417_v34 = vrot.slane %v416_v33, 4  ;;  %v423_v39 = vsel %vm327_vm0, %v413_v29, 0.0  ;;  %v6043_v40 = vadd.f32 %v5306_v20, %v460_v43  ;;  %v1000_v19 = vadd.f32 %v999_v9, %v998_v35  ;;  %v3713_v9 = vld [vmem:[%s6814_s0 + $0x220] sm:$0x1] }
  0x89   : > { %v1007_v22 = vadd.f32 %v1006_v28, %v1005_v14  ;;  %v424_v44 = vrot.slane %v423_v39, 4  ;;  %v475_v45 = vsel %vm327_vm0, %v6027_v37, 0.0  ;;  %v482_v50 = vsel %vm327_vm0, %v472_v1, 0.0 }
  0x8a   : > { %v418_v48 = vadd.f32 %v417_v34, %v416_v33  ;;  %v476_v30 = vrot.slane %v475_v45, 4  ;;  %v491_v52 = vrot.slane %v6027_v37, 3  ;;  %v1001_v57 = vrot.slane %v1000_v19, 1 }
  0x8b   : > { %v1008_v51 = vrot.slane %v1007_v22, 1  ;;  %v425_v62 = vadd.f32 %v424_v44, %v423_v39  ;;  %v483_v42 = vrot.slane %v482_v50, 4  ;;  %v492_v63 = vrot.slane %v472_v1, 3 }
  0x8c   : > { %v419_v38 = vrot.slane %v418_v48, 2  ;;  %v477_v0 = vadd.f32 %v476_v30, %v475_v45  ;;  %v495_v2 = vsel %vm327_vm0, %v491_v52, 0.0  ;;  %v1002_v3 = vadd.f32 %v1001_v57, %v1000_v19  ;;  %v5307_v57 = vld [vmem:[%s6814_s0 + $0xa0] sm:$0x1] }
  0x8d   : > { %v1009_v53 = vadd.f32 %v1008_v51, %v1007_v22  ;;  %v426_v31 = vrot.slane %v425_v62, 2  ;;  %v484_v59 = vadd.f32 %v483_v42, %v482_v50  ;;  %v496_v6 = vrot.slane %v495_v2, 4 }
  0x8e   : > { %v420_v54 = vadd.f32 %v419_v38, %v418_v48  ;;  %v478_v18 = vrot.slane %v477_v0, 2  ;;  %v502_v7 = vsel %vm327_vm0, %v492_v63, 0.0  ;;  %v511_v21 = vrot.slane %v6027_v37, 6 }
  0x8f   : > { %v1125_v26 = vsel %vm1012_vm3, %v1009_v53, %v1002_v3  ;;  %v427_v8 = vadd.f32 %v426_v31, %v425_v62  ;;  %v485_v11 = vrot.slane %v484_v59, 2  ;;  %v503_v36 = vrot.slane %v502_v7, 4  ;;  %v5310_v53 = vld [vmem:[%s6814_s0 + $0x250] sm:$0x1] }
  0x90   : > { %v1139_v49 = vmul.f32 0.04, %v1125_v26  ;;  %v421_v12 = vrot.slane %v420_v54, 1  ;;  %v479_v41 = vadd.f32 %v478_v18, %v477_v0  ;;  %v497_v5 = vadd.f32 %v496_v6, %v495_v2  ;;  %v5309_v2 = vld [vmem:[%s6814_s0 + $0xb8] sm:$0x1] }
  0x91   : > { %v428_v10 = vrot.slane %v427_v8, 1  ;;  %v486_v47 = vadd.f32 %v485_v11, %v484_v59  ;;  %v504_v46 = vadd.f32 %v503_v36, %v502_v7  ;;  %v512_v14 = vrot.slane %v6032_v27, 6 }
  0x92   : > { %1194 = vmatmul.f32.gmra.mxu3 %v1139_v49  ;;  %v422_v58 = vadd.f32 %v421_v12, %v420_v54  ;;  %v480_v13 = vrot.slane %v479_v41, 1  ;;  %v498_v35 = vrot.slane %v497_v5, 2  ;;  %v514_v17 = vrot.slane %v472_v1, 6 }
  0x93   : > { %v429_v15 = vadd.f32 %v428_v10, %v427_v8  ;;  %v487_v16 = vrot.slane %v486_v47, 1  ;;  %v505_v43 = vrot.slane %v504_v46, 2  ;;  %v513_v25 = vsel %vm364_vm1, %v511_v21, %v512_v14 }
  0x94   : > { %v481_v24 = vadd.f32 %v480_v13, %v479_v41  ;;  %v499_v55 = vadd.f32 %v498_v35, %v497_v5  ;;  %v515_v37 = vrot.slane %v6043_v40, 6  ;;  %v519_v33 = vsel %vm327_vm0, %v513_v25, 0.0 }
  0x95   : > { %v488_v28 = vadd.f32 %v487_v16, %v486_v47  ;;  %v506_v29 = vadd.f32 %v505_v43, %v504_v46  ;;  %v1032_v34 = vsel %vm1012_vm3, %v429_v15, %v422_v58  ;;  %v520_v1 = vrot.slane %v519_v33, 4 }
  0x96   : > { %v500_v39 = vrot.slane %v499_v55, 1  ;;  %v516_v61 = vsel %vm364_vm1, %v514_v17, %v515_v37  ;;  %v445_v20 = vadd.f32 %v3710_v23, %v5994_v4  ;;  %v448_v45 = vadd.f32 %v3713_v9, %v5996_v32  ;;  %v5308_v4 = vld [vmem:[%s6814_s0 + $0x238] sm:$0x1] }
  0x97   : > { %v507_v19 = vrot.slane %v506_v29, 1  ;;  %v526_v22 = vsel %vm327_vm0, %v516_v61, 0.0  ;;  %v1036_v44 = vsel %vm1017_vm4, %v488_v28, %v481_v24  ;;  %v521_v30 = vadd.f32 %v520_v1, %v519_v33 }
  0x98   : > { %v501_v48 = vadd.f32 %v500_v39, %v499_v55  ;;  %v527_v50 = vrot.slane %v526_v22, 4  ;;  %v458_v51 = vadd.f32 %v5307_v57, %v445_v20  ;;  %v461_v62 = vadd.f32 %v5308_v4, %v448_v45 }
  0x99   : > { %v508_v52 = vadd.f32 %v507_v19, %v506_v29  ;;  %v533_v42 = vrot.slane %v6032_v27, 1  ;;  %v522_v38 = vrot.slane %v521_v30, 2  ;;  %v1082_v32 = vsel %vm364_vm1, %v1032_v34, %v1036_v44 }
  0x9a   : > { %v528_v0 = vadd.f32 %v527_v50, %v526_v22  ;;  %v534_v63 = vrot.slane %v6043_v40, 1  ;;  %v471_v3 = vadd.f32 %v5309_v2, %v458_v51  ;;  %v474_v31 = vadd.f32 %v5310_v53, %v461_v62 }
  0x9b   : > { %v537_v59 = vsel %vm327_vm0, %v533_v42, 0.0  ;;  %v553_v54 = vrot.slane %v6032_v27, 4  ;;  %v523_v18 = vadd.f32 %v522_v38, %v521_v30  ;;  %v1040_v7 = vsel %vm1022_vm5, %v508_v52, %v501_v48 }
  0x9c   : > { %v529_v6 = vrot.slane %v528_v0, 2  ;;  %v538_v26 = vrot.slane %v537_v59, 4  ;;  %v544_v8 = vsel %vm327_vm0, %v534_v63, 0.0  ;;  %v554_v11 = vrot.slane %v471_v3, 4 }
  0x9d   : > { %v556_v36 = vrot.slane %v6043_v40, 4  ;;  %v557_v49 = vrot.slane %v474_v31, 4  ;;  %v524_v12 = vrot.slane %v523_v18, 1  ;;  %v545_v10 = vrot.slane %v544_v8, 4 }
  0x9e   : > { %v530_v41 = vadd.f32 %v529_v6, %v528_v0  ;;  %v539_v5 = vadd.f32 %v538_v26, %v537_v59  ;;  %v555_v47 = vsel %vm407_vm2, %v553_v54, %v554_v11  ;;  %v620_v27 = vsel %vm327_vm0, %v5555_v56, 0.0 }
  0x9f   : > { %v558_v46 = vsel %vm407_vm2, %v556_v36, %v557_v49  ;;  %v627_v21 = vsel %vm327_vm0, %v5565_v60, 0.0  ;;  %v525_v58 = vadd.f32 %v524_v12, %v523_v18  ;;  %v546_v14 = vadd.f32 %v545_v10, %v544_v8 }
  0xa0   : > { %v531_v13 = vrot.slane %v530_v41, 1  ;;  %v540_v35 = vrot.slane %v539_v5, 2  ;;  %v561_v40 = vsel %vm327_vm0, %v555_v47, 0.0  ;;  %v568_v15 = vsel %vm327_vm0, %v558_v46, 0.0 }
  0xa1   : > { %v621_v16 = vrot.slane %v620_v27, 4  ;;  %v628_v43 = vrot.slane %v627_v21, 4  ;;  %v1083_v23 = vsel %vm407_vm2, %v1082_v32, %v1040_v7  ;;  %v547_v24 = vrot.slane %v546_v14, 2 }
  0xa2   : > { %v532_v17 = vadd.f32 %v531_v13, %v530_v41  ;;  %v562_v55 = vrot.slane %v561_v40, 4  ;;  %v541_v25 = vadd.f32 %v540_v35, %v539_v5  ;;  %v569_v37 = vrot.slane %v568_v15, 4  ;;  %v5298_v35 = vld [vmem:[%s6816_s2] ss:$0 sm:$0xff] }
  0xa3   : > { %v622_v9 = vadd.f32 %v621_v16, %v620_v27  ;;  %v629_v28 = vadd.f32 %v628_v43, %v627_v21  ;;  %v548_v33 = vadd.f32 %v547_v24, %v546_v14  ;;  %v636_v39 = vrot.slane %v5555_v56, 3 }
  0xa4   : > { %v1044_v29 = vsel %vm1027_vm6, %v532_v17, %v525_v58  ;;  %v563_v34 = vadd.f32 %v562_v55, %v561_v40  ;;  %v570_v1 = vadd.f32 %v569_v37, %v568_v15  ;;  %v637_v50 = vrot.slane %v5565_v60, 3 }
  0xa5   : > { %v1084_v61 = vsel %vm1080_vm7, %v1083_v23, %v1044_v29  ;;  %v623_v20 = vrot.slane %v622_v9, 2  ;;  %v630_v19 = vrot.slane %v629_v28, 2  ;;  %v542_v52 = vrot.slane %v541_v25, 1 }
  0xa6   : > { %v1134_v22 = vmul.f32 0.04, %v1084_v61  ;;  %v564_v44 = vrot.slane %v563_v34, 2  ;;  %v571_v45 = vrot.slane %v570_v1, 2  ;;  %v549_v57 = vrot.slane %v548_v33, 1 }
  0xa7   : > { %v624_v48 = vadd.f32 %v623_v20, %v622_v9  ;;  %v631_v30 = vadd.f32 %v630_v19, %v629_v28  ;;  %v640_v4 = vsel %vm327_vm0, %v636_v39, 0.0  ;;  %v647_v38 = vsel %vm327_vm0, %v637_v50, 0.0 }
  0xa8   : > { %1179 = vmatmul.f32.gmra.mxu0 %v1134_v22  ;;  %v565_v51 = vadd.f32 %v564_v44, %v563_v34  ;;  %v572_v62 = vadd.f32 %v571_v45, %v570_v1  ;;  %v641_v56 = vrot.slane %v640_v4, 4  ;;  %v543_v3 = vadd.f32 %v542_v52, %v541_v25 }
  0xa9   : > { %v625_v32 = vrot.slane %v624_v48, 1  ;;  %v632_v63 = vrot.slane %v631_v30, 1  ;;  %v550_v53 = vadd.f32 %v549_v57, %v548_v33  ;;  %v648_v59 = vrot.slane %v647_v38, 4 }
  0xaa   : > { %v566_v42 = vrot.slane %v565_v51, 1  ;;  %v573_v0 = vrot.slane %v572_v62, 1  ;;  %v642_v2 = vadd.f32 %v641_v56, %v640_v4  ;;  %v5352_v34 = vmov 0.0  }
  0xab   : > { %v649_v18 = vadd.f32 %v648_v59, %v647_v38  ;;  %v626_v6 = vadd.f32 %v625_v32, %v624_v48  ;;  %v633_v7 = vadd.f32 %v632_v63, %v631_v30  ;;  %v1048_v11 = vsel %vm1012_vm3, %v550_v53, %v543_v3  ;;  %1212 = vst [vmem:[#allocation3] sm:$0xff] %v5352_v34 }
  0xac   : > { %v567_v31 = vadd.f32 %v566_v42, %v565_v51  ;;  %v574_v60 = vadd.f32 %v573_v0, %v572_v62  ;;  %v643_v54 = vrot.slane %v642_v2, 2  ;;  %1213 = vst [vmem:[#allocation3 + $0x8] sm:$0xf] %v5352_v34 }
  0xad   : > { %v650_v8 = vrot.slane %v649_v18, 2  ;;  %v1056_v41 = vsel %vm1022_vm5, %v633_v7, %v626_v6 }
  0xae   : > { %v644_v26 = vadd.f32 %v643_v54, %v642_v2  ;;  %v1052_v36 = vsel %vm1017_vm4, %v574_v60, %v567_v31 }
  0xaf   : > { %v651_v12 = vadd.f32 %v650_v8, %v649_v18  ;;  %v1085_v5 = vsel %vm364_vm1, %v1048_v11, %v1052_v36 }
  0xb0   : > { %v645_v49 = vrot.slane %v644_v26, 1  ;;  %v1086_v27 = vsel %vm407_vm2, %v1085_v5, %v1056_v41 }
  0xb1   : > { %v652_v47 = vrot.slane %v651_v12, 1 }
  0xb2   : > { %v646_v10 = vadd.f32 %v645_v49, %v644_v26 }
  0xb3   : > { %v653_v46 = vadd.f32 %v652_v47, %v651_v12 }
  0xb5   : > { %v1060_v21 = vsel %vm1027_vm6, %v653_v46, %v646_v10 }
  0xb6   : > { %v1087_v58 = vsel %vm1080_vm7, %v1086_v27, %v1060_v21 }
  0xb7   : > { %v1135_v13 = vmul.f32 0.04, %v1087_v58 }
  0xb9   : > { %1182 = vmatmul.f32.vlgmr.msra.gmra.mxu1 %v1135_v13 }
  0xc6   : > { %v1186_v14 = vpop.f32.mrf.mxu2 }
  0xc7   : > { %v1187_v40 = vadd.f32 %v5298_v35, %v1186_v14 }
  0xc9   : > { %v1201_v15 = vmax.f32 %v1187_v40, 0.0 }
  0xcb   : > { %1208 = vst [vmem:[#allocation2 + $0x18] sm:$0xff] %v1201_v15 }
  0xdb   : > { %v1192_v16 = vpop.f32.mrf.mxu3 }
  0xdc   : > { %v1193_v43 = vadd.f32 %v5298_v35, %v1192_v16 }
  0xde   : > { %v1203_v17 = vmax.f32 %v1193_v43, 0.0 }
  0xe0   : > { %1210 = vst [vmem:[#allocation2 + $0x28] sm:$0xff] %v1203_v17 }
  0xeb   : > { %v1177_v23 = vpop.f32.mrf.mxu0 }
  0xec   : > { %v1178_v24 = vadd.f32 %v5298_v35, %v1177_v23 }
  0xee   : > { %v1198_v55 = vmax.f32 %v1178_v24, 0.0 }
  0xf0   : > { %1205 = vst [vmem:[#allocation2] sm:$0xff] %v1198_v55 }
 0x108   : > { %v1189_v25 = vpop.f32.mrf.mxu2 }
 0x109   : > { %v1190_v9 = vadd.f32 %v5298_v35, %v1189_v25 }
 0x10b   : > { %v1202_v29 = vmax.f32 %v1190_v9, 0.0 }
 0x10d   : > { %1209 = vst [vmem:[#allocation2 + $0x20] sm:$0xff] %v1202_v29 }
 0x115   : > { %v1195_v37 = vpop.f32.mrf.mxu3 }
 0x116   : > { %v1196_v28 = vadd.f32 %v5298_v35, %v1195_v37 }
 0x118   : > { %v1204_v33 = vmax.f32 %v1196_v28, 0.0 }
 0x11a   : > { %1211 = vst [vmem:[#allocation2 + $0x30] sm:$0x3] %v1204_v33 }
 0x125   : > { %v1180_v39 = vpop.f32.mrf.mxu0 }
 0x126   : > { %v1181_v61 = vadd.f32 %v5298_v35, %v1180_v39 }
 0x128   : > { %v1199_v1 = vmax.f32 %v1181_v61, 0.0 }
 0x12a   : > { %1206 = vst [vmem:[#allocation2 + $0x8] sm:$0xff] %v1199_v1 }
 0x136   : > { %v1183_v20 = vpop.f32.mrf.mxu1 }
 0x137   : > { %v1184_v19 = vadd.f32 %v5298_v35, %v1183_v20 }
 0x139   : > { %v1200_v22 = vmax.f32 %v1184_v19, 0.0 }
 0x13b   : > { %1207 = vst [vmem:[#allocation2 + $0x10] sm:$0xff] %v1200_v22 }
 0x13c PF: > { %v3958_v44 = vld [vmem:[%s5409_s30 + $0x150] sm:$0xf]  ;;  %v4990_v45 = vld [vmem:[%s5409_s30 + $0x164] sm:$0xf0]  ;;  %v3934_v42 = vld [vmem:[%s5409_s30 + $0x120] sm:$0xf] }
 0x13d   : > { %v4150_v48 = vld [vmem:[%s5409_s30 + $0x2d0] sm:$0xf]  ;;  %v3959_v30 = vor.u32 %v4990_v45, %v3958_v44  ;;  %v5038_v50 = vld [vmem:[%s5409_s30 + $0x2e4] sm:$0xf0]  ;;  %v4984_v0 = vld [vmem:[%s5409_s30 + $0x134] sm:$0xf0] }
 0x13e   : > { %v4342_v52 = vld [vmem:[%s5409_s30 + $0x450] sm:$0xf]  ;;  %v5086_v57 = vld [vmem:[%s5409_s30 + $0x464] sm:$0xf0]  ;;  %v4151_v51 = vor.u32 %v5038_v50, %v4150_v48  ;;  %v4126_v32 = vld [vmem:[%s5409_s30 + $0x2a0] sm:$0xf]  ;;  %v3935_v2 = vor.u32 %v4984_v0, %v3934_v42 }
 0x13f   : > { %v4343_v4 = vor.u32 %v5086_v57, %v4342_v52  ;;  %v4534_v62 = vld [vmem:[%s5409_s30 + $0x5d0] sm:$0xf]  ;;  %v5134_v56 = vld [vmem:[%s5409_s30 + $0x5e4] sm:$0xf0]  ;;  %2681 = vmatpush.bf16.msra.mxu0 %v3959_v30  ;;  %v5032_v63 = vld [vmem:[%s5409_s30 + $0x2b4] sm:$0xf0] }
 0x140   : > { %v4535_v38 = vor.u32 %v5134_v56, %v4534_v62  ;;  %2694 = vmatpush.bf16.msra.mxu1 %v4151_v51  ;;  %v4127_v3 = vor.u32 %v5032_v63, %v4126_v32  ;;  %v4318_v53 = vld [vmem:[%s5409_s30 + $0x420] sm:$0xf]  ;;  %v5080_v31 = vld [vmem:[%s5409_s30 + $0x434] sm:$0xf0]  ;;  %v3910_v18 = vld [vmem:[%s5409_s30 + $0xf0] sm:$0xf] }
 0x141   : > { %2707 = vmatpush.bf16.msra.mxu2 %v4343_v4  ;;  %v4510_v59 = vld [vmem:[%s5409_s30 + $0x5a0] sm:$0xf]  ;;  %v4319_v60 = vor.u32 %v5080_v31, %v4318_v53  ;;  %v5128_v54 = vld [vmem:[%s5409_s30 + $0x5b4] sm:$0xf0]  ;;  %v4978_v6 = vld [vmem:[%s5409_s30 + $0x104] sm:$0xf0] }
 0x142   : > { %2720 = vmatpush.bf16.msra.mxu3 %v4535_v38  ;;  %v4511_v7 = vor.u32 %v5128_v54, %v4510_v59  ;;  %v4102_v26 = vld [vmem:[%s5409_s30 + $0x270] sm:$0xf]  ;;  %v5026_v8 = vld [vmem:[%s5409_s30 + $0x284] sm:$0xf0]  ;;  %v3911_v36 = vor.u32 %v4978_v6, %v3910_v18  ;;  %v3886_v47 = vld [vmem:[%s5409_s30 + $0xc0] sm:$0xf] }
 0x143   : > { %v4294_v11 = vld [vmem:[%s5409_s30 + $0x3f0] sm:$0xf]  ;;  %2682 = vmatpush.bf16.msra.mxu0 %v3935_v2  ;;  %v5074_v49 = vld [vmem:[%s5409_s30 + $0x404] sm:$0xf0]  ;;  %v4103_v5 = vor.u32 %v5026_v8, %v4102_v26  ;;  %v4972_v46 = vld [vmem:[%s5409_s30 + $0xd4] sm:$0xf0] }
 0x144   : > { %v4486_v12 = vld [vmem:[%s5409_s30 + $0x570] sm:$0xf]  ;;  %v5122_v41 = vld [vmem:[%s5409_s30 + $0x584] sm:$0xf0]  ;;  %2695 = vmatpush.bf16.msra.mxu1 %v4127_v3  ;;  %v4295_v10 = vor.u32 %v5074_v49, %v4294_v11  ;;  %v4078_v27 = vld [vmem:[%s5409_s30 + $0x240] sm:$0xf]  ;;  %v3887_v15 = vor.u32 %v4972_v46, %v3886_v47 }
 0x145   : > { %2708 = vmatpush.bf16.msra.mxu2 %v4319_v60  ;;  %v4487_v21 = vor.u32 %v5122_v41, %v4486_v12  ;;  %v5020_v58 = vld [vmem:[%s5409_s30 + $0x254] sm:$0xf0]  ;;  %v4270_v13 = vld [vmem:[%s5409_s30 + $0x3c0] sm:$0xf]  ;;  %v3862_v17 = vld [vmem:[%s5409_s30 + $0x90] sm:$0xf] }
 0x146   : > { %2721 = vmatpush.bf16.msra.mxu3 %v4511_v7  ;;  %v5068_v35 = vld [vmem:[%s5409_s30 + $0x3d4] sm:$0xf0]  ;;  %v4462_v14 = vld [vmem:[%s5409_s30 + $0x540] sm:$0xf]  ;;  %v4079_v16 = vor.u32 %v5020_v58, %v4078_v27  ;;  %v4966_v23 = vld [vmem:[%s5409_s30 + $0xa4] sm:$0xf0] }
 0x147   : > { %v5116_v40 = vld [vmem:[%s5409_s30 + $0x554] sm:$0xf0]  ;;  %2683 = vmatpush.bf16.msra.mxu0 %v3911_v36  ;;  %v4271_v43 = vor.u32 %v5068_v35, %v4270_v13  ;;  %v4054_v24 = vld [vmem:[%s5409_s30 + $0x210] sm:$0xf]  ;;  %v5014_v25 = vld [vmem:[%s5409_s30 + $0x224] sm:$0xf0]  ;;  %v3863_v33 = vor.u32 %v4966_v23, %v3862_v17 }
 0x148   : > { %2696 = vmatpush.bf16.msra.mxu1 %v4103_v5  ;;  %v4463_v55 = vor.u32 %v5116_v40, %v4462_v14  ;;  %v4246_v37 = vld [vmem:[%s5409_s30 + $0x390] sm:$0xf]  ;;  %v5062_v9 = vld [vmem:[%s5409_s30 + $0x3a4] sm:$0xf0]  ;;  %v4055_v34 = vor.u32 %v5014_v25, %v4054_v24  ;;  %v3838_v61 = vld [vmem:[%s5409_s30 + $0x60] sm:$0xf] }
 0x149   : > { %2709 = vmatpush.bf16.msra.mxu2 %v4295_v10  ;;  %v4438_v28 = vld [vmem:[%s5409_s30 + $0x510] sm:$0xf]  ;;  %v5110_v29 = vld [vmem:[%s5409_s30 + $0x524] sm:$0xf0]  ;;  %v4247_v39 = vor.u32 %v5062_v9, %v4246_v37  ;;  %v4960_v1 = vld [vmem:[%s5409_s30 + $0x74] sm:$0xf0] }
 0x14a   : > { %2722 = vmatpush.bf16.msra.mxu3 %v4487_v21  ;;  %v4030_v20 = vld [vmem:[%s5409_s30 + $0x1e0] sm:$0xf]  ;;  %v4439_v19 = vor.u32 %v5110_v29, %v4438_v28  ;;  %v5008_v22 = vld [vmem:[%s5409_s30 + $0x1f4] sm:$0xf0]  ;;  %v3839_v50 = vor.u32 %v4960_v1, %v3838_v61  ;;  %v3814_v51 = vld [vmem:[%s5409_s30 + $0x30] sm:$0xf] }
 0x14b   : > { %2684 = vmatpush.bf16.msra.mxu0 %v3887_v15  ;;  %v4222_v44 = vld [vmem:[%s5409_s30 + $0x360] sm:$0xf]  ;;  %v5056_v45 = vld [vmem:[%s5409_s30 + $0x374] sm:$0xf0]  ;;  %v4031_v52 = vor.u32 %v5008_v22, %v4030_v20  ;;  %v4954_v4 = vld [vmem:[%s5409_s30 + $0x44] sm:$0xf0] }
 0x14c   : > { %2697 = vmatpush.bf16.msra.mxu1 %v4079_v16  ;;  %v4414_v48 = vld [vmem:[%s5409_s30 + $0x4e0] sm:$0xf]  ;;  %v5104_v30 = vld [vmem:[%s5409_s30 + $0x4f4] sm:$0xf0]  ;;  %v4223_v57 = vor.u32 %v5056_v45, %v4222_v44  ;;  %v4006_v62 = vld [vmem:[%s5409_s30 + $0x1b0] sm:$0xf]  ;;  %v3815_v2 = vor.u32 %v4954_v4, %v3814_v51 }
 0x14d   : > { %2710 = vmatpush.bf16.msra.mxu2 %v4271_v43  ;;  %v4415_v56 = vor.u32 %v5104_v30, %v4414_v48  ;;  %v5002_v42 = vld [vmem:[%s5409_s30 + $0x1c4] sm:$0xf0]  ;;  %v4198_v38 = vld [vmem:[%s5409_s30 + $0x330] sm:$0xf]  ;;  %v3790_v3 = vld [vmem:[%s5409_s30] sm:$0xf] }
 0x14e   : > { %2723 = vmatpush.bf16.msra.mxu3 %v4463_v55  ;;  %v5050_v0 = vld [vmem:[%s5409_s30 + $0x344] sm:$0xf0]  ;;  %v4390_v32 = vld [vmem:[%s5409_s30 + $0x4b0] sm:$0xf]  ;;  %v4948_v53 = vld [vmem:[%s5409_s30 + $0x14] sm:$0xf0]  ;;  %v4007_v31 = vor.u32 %v5002_v42, %v4006_v62 }
 0x14f   : > { %2685 = vmatpush.bf16.msra.mxu0 %v3863_v33  ;;  %v5098_v63 = vld [vmem:[%s5409_s30 + $0x4c4] sm:$0xf0]  ;;  %v4199_v59 = vor.u32 %v5050_v0, %v4198_v38  ;;  %v3982_v60 = vld [vmem:[%s5409_s30 + $0x180] sm:$0xf]  ;;  %v4996_v54 = vld [vmem:[%s5409_s30 + $0x194] sm:$0xf0]  ;;  %v3791_v12 = vor.u32 %v4948_v53, %v3790_v3 }
 0x150   : > { %2698 = vmatpush.bf16.msra.mxu1 %v4055_v34  ;;  %v4174_v18 = vld [vmem:[%s5409_s30 + $0x300] sm:$0xf]  ;;  %v4391_v6 = vor.u32 %v5098_v63, %v4390_v32  ;;  %v5044_v7 = vld [vmem:[%s5409_s30 + $0x314] sm:$0xf0]  ;;  %v4726_v26 = vld [vmem:[%s5409_s30 + $0x750] sm:$0xf]  ;;  %v3983_v47 = vor.u32 %v4996_v54, %v3982_v60 }
 0x151   : > { %2711 = vmatpush.bf16.msra.mxu2 %v4247_v39  ;;  %v5182_v8 = vld [vmem:[%s5409_s30 + $0x764] sm:$0xf0]  ;;  %v4987_v11 = vld [vmem:[%s5409_s30 + $0x154] sm:$0xf]  ;;  %v3960_v36 = vld [vmem:[%s5409_s30 + $0x168] sm:$0xf0]  ;;  %v4175_v46 = vor.u32 %v5044_v7, %v4174_v18 }
 0x152   : > { %2724 = vmatpush.bf16.msra.mxu3 %v4439_v19  ;;  %v5035_v49 = vld [vmem:[%s5409_s30 + $0x2d4] sm:$0xf]  ;;  %v4152_v41 = vld [vmem:[%s5409_s30 + $0x2e8] sm:$0xf0]  ;;  %v4366_v5 = vld [vmem:[%s5409_s30 + $0x480] sm:$0xf]  ;;  %v4727_v58 = vor.u32 %v5182_v8, %v4726_v26  ;;  %v3963_v13 = vor.u32 %v4987_v11, %v3960_v36 }
 0x153   : > { %2686 = vmatpush.bf16.msra.mxu0 %v3839_v50  ;;  %v5092_v10 = vld [vmem:[%s5409_s30 + $0x494] sm:$0xf0]  ;;  %v5083_v27 = vld [vmem:[%s5409_s30 + $0x454] sm:$0xf]  ;;  %v4344_v21 = vld [vmem:[%s5409_s30 + $0x468] sm:$0xf0]  ;;  %v4155_v14 = vor.u32 %v5035_v49, %v4152_v41 }
 0x154   : > { %2699 = vmatpush.bf16.msra.mxu1 %v4031_v52  ;;  %v4702_v35 = vld [vmem:[%s5409_s30 + $0x720] sm:$0xf]  ;;  %v4367_v40 = vor.u32 %v5092_v10, %v4366_v5  ;;  %v5176_v15 = vld [vmem:[%s5409_s30 + $0x734] sm:$0xf0]  ;;  %v4981_v16 = vld [vmem:[%s5409_s30 + $0x124] sm:$0xf]  ;;  %v4347_v17 = vor.u32 %v5083_v27, %v4344_v21 }
 0x155   : > { %2712 = vmatpush.bf16.msra.mxu2 %v4223_v57  ;;  %v3936_v43 = vld [vmem:[%s5409_s30 + $0x138] sm:$0xf0]  ;;  %v5029_v23 = vld [vmem:[%s5409_s30 + $0x2a4] sm:$0xf]  ;;  %v4703_v37 = vor.u32 %v5176_v15, %v4702_v35  ;;  %v4678_v28 = vld [vmem:[%s5409_s30 + $0x6f0] sm:$0xf] }
 0x156   : > { %2725 = vmatpush.bf16.msra.mxu3 %v4415_v56  ;;  %v4128_v24 = vld [vmem:[%s5409_s30 + $0x2b8] sm:$0xf0]  ;;  %v5077_v55 = vld [vmem:[%s5409_s30 + $0x424] sm:$0xf]  ;;  %v3939_v9 = vor.u32 %v4981_v16, %v3936_v43  ;;  %v5170_v29 = vld [vmem:[%s5409_s30 + $0x704] sm:$0xf0] }
 0x157   : > { %2687 = vmatpush.bf16.msra.mxu0 %v3815_v2  ;;  %v4320_v25 = vld [vmem:[%s5409_s30 + $0x438] sm:$0xf0]  ;;  %v4131_v33 = vor.u32 %v5029_v23, %v4128_v24  ;;  %v4975_v34 = vld [vmem:[%s5409_s30 + $0xf4] sm:$0xf]  ;;  %v3912_v39 = vld [vmem:[%s5409_s30 + $0x108] sm:$0xf0]  ;;  %v4679_v44 = vor.u32 %v5170_v29, %v4678_v28 }
 0x158   : > { %2700 = vmatpush.bf16.msra.mxu1 %v4007_v31  ;;  %s1214_s10 = smul.u32 10, %s5400_s25  ;;  %v4323_v61 = vor.u32 %v5077_v55, %v4320_v25  ;;  %v5023_v1 = vld [vmem:[%s5409_s30 + $0x274] sm:$0xf]  ;;  %v4104_v20 = vld [vmem:[%s5409_s30 + $0x288] sm:$0xf0]  ;;  %v3915_v45 = vor.u32 %v4975_v34, %v3912_v39  ;;  %vm3081_vm8 = vcmask 1041408  }
 0x159   : > { %2713 = vmatpush.bf16.msra.mxu2 %v4199_v59  ;;  %v5071_v19 = vld [vmem:[%s5409_s30 + $0x3f4] sm:$0xf]  ;;  %v4296_v22 = vld [vmem:[%s5409_s30 + $0x408] sm:$0xf0]  ;;  %v4654_v48 = vld [vmem:[%s5409_s30 + $0x6c0] sm:$0xf]  ;;  %v4107_v52 = vor.u32 %v5023_v1, %v4104_v20 }
 0x15a   : > { %2726 = vmatpush.bf16.msra.mxu3 %v4391_v6  ;;  %v5164_v30 = vld [vmem:[%s5409_s30 + $0x6d4] sm:$0xf0]  ;;  %s6205_s11 = scalar_lea.vmem [#allocation2], %s1214_s10  ;;  %v4969_v57 = vld [vmem:[%s5409_s30 + $0xc4] sm:$0xf]  ;;  %v4299_v56 = vor.u32 %v5071_v19, %v4296_v22  ;;  %vm3083_vm9 = vcmask 1045508  }
 0x15b   : > { %2688 = vmatpush.bf16.msra.mxu0 %v3791_v12  ;;  %v1216_v50 = vld [vmem:[%s6205_s11] sm:$0x3]  ;;  %v3888_v51 = vld [vmem:[%s5409_s30 + $0xd8] sm:$0xf0]  ;;  %v3781_v62 = vld [vmem:[%s6205_s11 + $0x2] sm:$0x3]  ;;  %v4655_v3 = vor.u32 %v5164_v30, %v4654_v48 }
 0x15c   : > { %2701 = vmatpush.bf16.msra.mxu1 %v3983_v47  ;;  %v6210_v4 = vpack.c.bf16 %v1216_v50, %v1216_v50  ;;  %v5017_v42 = vld [vmem:[%s5409_s30 + $0x244] sm:$0xf]  ;;  %v4080_v38 = vld [vmem:[%s5409_s30 + $0x258] sm:$0xf0]  ;;  %v6215_v0 = vpack.c.bf16 %v3781_v62, %v3781_v62  ;;  %v3891_v53 = vor.u32 %v4969_v57, %v3888_v51  ;;  %v4630_v31 = vld [vmem:[%s5409_s30 + $0x690] sm:$0xf] }
 0x15d   : > { %2714 = vmatpush.bf16.msra.mxu2 %v4175_v46  ;;  %v5065_v32 = vld [vmem:[%s5409_s30 + $0x3c4] sm:$0xf]  ;;  %v4272_v63 = vld [vmem:[%s5409_s30 + $0x3d8] sm:$0xf0]  ;;  %v4083_v54 = vor.u32 %v5017_v42, %v4080_v38  ;;  %v5158_v18 = vld [vmem:[%s5409_s30 + $0x6a4] sm:$0xf0] }
 0x15e   : > { %2727 = vmatpush.bf16.msra.mxu3 %v4367_v40  ;;  %2689 = vmatmul.bf16.vlgmr.msra.gmra.mxu0 %v6210_v4  ;;  %v3783_v2 = vld [vmem:[%s6205_s11 + $0x4] sm:$0x3]  ;;  %v3785_v60 = vld [vmem:[%s6205_s11 + $0x6] sm:$0x3]  ;;  %v4963_v6 = vld [vmem:[%s5409_s30 + $0x94] sm:$0xf]  ;;  %v4275_v8 = vor.u32 %v5065_v32, %v4272_v63  ;;  %v4631_v41 = vor.u32 %v5158_v18, %v4630_v31 }
 0x15f   : > { %2733 = vmatpush.bf16.msrb.mxu0 %v4727_v58  ;;  %v6222_v59 = vpack.c.bf16 %v3783_v2, %v3783_v2  ;;  %v3864_v7 = vld [vmem:[%s5409_s30 + $0xa8] sm:$0xf0]  ;;  %2702 = vmatmul.bf16.vlgmr.msra.gmra.mxu1 %v6215_v0  ;;  %v6229_v26 = vpack.c.bf16 %v3785_v60, %v3785_v60  ;;  %v5011_v11 = vld [vmem:[%s5409_s30 + $0x214] sm:$0xf]  ;;  %v4606_v10 = vld [vmem:[%s5409_s30 + $0x660] sm:$0xf] }
 0x160   : > { %2746 = vmatpush.bf16.msrb.mxu1 %v3963_v13  ;;  %v4056_v36 = vld [vmem:[%s5409_s30 + $0x228] sm:$0xf0]  ;;  %v5059_v49 = vld [vmem:[%s5409_s30 + $0x394] sm:$0xf]  ;;  %v3867_v5 = vor.u32 %v4963_v6, %v3864_v7  ;;  %v5152_v46 = vld [vmem:[%s5409_s30 + $0x674] sm:$0xf0] }
 0x161   : > { %2759 = vmatpush.bf16.msrb.mxu2 %v4155_v14  ;;  %v4248_v12 = vld [vmem:[%s5409_s30 + $0x3a8] sm:$0xf0]  ;;  %2728 = vmatmul.bf16.vlgmr.msra.gmra.mxu3 %v6229_v26  ;;  %v4059_v47 = vor.u32 %v5011_v11, %v4056_v36  ;;  %v4957_v27 = vld [vmem:[%s5409_s30 + $0x64] sm:$0xf]  ;;  %v3840_v21 = vld [vmem:[%s5409_s30 + $0x78] sm:$0xf0]  ;;  %v4607_v15 = vor.u32 %v5152_v46, %v4606_v10 }
 0x162   : > { %2772 = vmatpush.bf16.msrb.mxu3 %v4347_v17  ;;  %2715 = vmatmul.bf16.vlgmr.msra.gmra.mxu2 %v6222_v59  ;;  %v4251_v58 = vor.u32 %v5059_v49, %v4248_v12  ;;  %v5005_v13 = vld [vmem:[%s5409_s30 + $0x1e4] sm:$0xf]  ;;  %v4032_v35 = vld [vmem:[%s5409_s30 + $0x1f8] sm:$0xf0]  ;;  %v3843_v16 = vor.u32 %v4957_v27, %v3840_v21  ;;  %v4582_v43 = vld [vmem:[%s5409_s30 + $0x630] sm:$0xf] }
 0x163   : > { %2734 = vmatpush.bf16.msrb.mxu0 %v4703_v37  ;;  %v5053_v14 = vld [vmem:[%s5409_s30 + $0x364] sm:$0xf]  ;;  %v4224_v40 = vld [vmem:[%s5409_s30 + $0x378] sm:$0xf0]  ;;  %v4035_v17 = vor.u32 %v5005_v13, %v4032_v35  ;;  %v5146_v23 = vld [vmem:[%s5409_s30 + $0x644] sm:$0xf0] }
 0x164   : > { %2747 = vmatpush.bf16.msrb.mxu1 %v3939_v9  ;;  %v4951_v24 = vld [vmem:[%s5409_s30 + $0x34] sm:$0xf]  ;;  %v3816_v55 = vld [vmem:[%s5409_s30 + $0x48] sm:$0xf0]  ;;  %v4227_v25 = vor.u32 %v5053_v14, %v4224_v40  ;;  %v4558_v39 = vld [vmem:[%s5409_s30 + $0x600] sm:$0xf] }
 0x165   : > { %2760 = vmatpush.bf16.msrb.mxu2 %v4131_v33  ;;  %v4999_v37 = vld [vmem:[%s5409_s30 + $0x1b4] sm:$0xf]  ;;  %v4008_v9 = vld [vmem:[%s5409_s30 + $0x1c8] sm:$0xf0]  ;;  %v4583_v33 = vor.u32 %v5146_v23, %v4582_v43  ;;  %v3819_v34 = vor.u32 %v4951_v24, %v3816_v55  ;;  %v4945_v1 = vld [vmem:[%s5409_s30 + $0x4] sm:$0xf] }
 0x166   : > { %2773 = vmatpush.bf16.msrb.mxu3 %v4323_v61  ;;  %v5047_v28 = vld [vmem:[%s5409_s30 + $0x334] sm:$0xf]  ;;  %v4200_v29 = vld [vmem:[%s5409_s30 + $0x348] sm:$0xf0]  ;;  %v5140_v61 = vld [vmem:[%s5409_s30 + $0x614] sm:$0xf0]  ;;  %v4011_v20 = vor.u32 %v4999_v37, %v4008_v9 }
 0x167   : > { %2735 = vmatpush.bf16.msrb.mxu0 %v4679_v44  ;;  %v3792_v19 = vld [vmem:[%s5409_s30 + $0x18] sm:$0xf0]  ;;  %v4993_v22 = vld [vmem:[%s5409_s30 + $0x184] sm:$0xf]  ;;  %v5131_v48 = vld [vmem:[%s5409_s30 + $0x5d4] sm:$0xf]  ;;  %v4559_v62 = vor.u32 %v5140_v61, %v4558_v39 }
 0x168   : > { %2748 = vmatpush.bf16.msrb.mxu1 %v3915_v45  ;;  %v3984_v44 = vld [vmem:[%s5409_s30 + $0x198] sm:$0xf0]  ;;  %v4203_v45 = vor.u32 %v5047_v28, %v4200_v29  ;;  %v4536_v30 = vld [vmem:[%s5409_s30 + $0x5e8] sm:$0xf0]  ;;  %v5179_v50 = vld [vmem:[%s5409_s30 + $0x754] sm:$0xf] }
 0x169   : > { %2761 = vmatpush.bf16.msrb.mxu2 %v4107_v52  ;;  %v4728_v52 = vld [vmem:[%s5409_s30 + $0x768] sm:$0xf0]  ;;  %v3966_v57 = vld [vmem:[%s5409_s30 + $0x158] sm:$0xf]  ;;  %v4991_v51 = vld [vmem:[%s5409_s30 + $0x16c] sm:$0xf0]  ;;  %v3987_v63 = vor.u32 %v4993_v22, %v3984_v44  ;;  %v4539_v2 = vor.u32 %v5131_v48, %v4536_v30 }
 0x16a   : > { %2774 = vmatpush.bf16.msrb.mxu3 %v4299_v56  ;;  %v3795_v56 = vor.u32 %v4945_v1, %v3792_v19  ;;  %v5041_v42 = vld [vmem:[%s5409_s30 + $0x304] sm:$0xf]  ;;  %v4176_v38 = vld [vmem:[%s5409_s30 + $0x318] sm:$0xf0]  ;;  %v3787_v32 = vld [vmem:[%s6205_s11 + $0x8] sm:$0x3]  ;;  %v4731_v31 = vor.u32 %v5179_v50, %v4728_v52  ;;  %v3967_v60 = vor.u32 %v4991_v51, %v3966_v57 }
 0x16b   : > { %2736 = vmatpush.bf16.msrb.mxu0 %v4655_v3  ;;  %v4158_v3 = vld [vmem:[%s5409_s30 + $0x2d8] sm:$0xf]  ;;  %v4512_v18 = vld [vmem:[%s5409_s30 + $0x5b8] sm:$0xf0]  ;;  %v5173_v6 = vld [vmem:[%s5409_s30 + $0x724] sm:$0xf]  ;;  %v4179_v7 = vor.u32 %v5041_v42, %v4176_v38  ;;  %v6276_v49 = vpack.c.bf16 %v3787_v32, %v3787_v32 }
 0x16c   : > { %2749 = vmatpush.bf16.msrb.mxu1 %v3891_v53  ;;  %v5039_v53 = vld [vmem:[%s5409_s30 + $0x2ec] sm:$0xf0]  ;;  %v3942_v11 = vld [vmem:[%s5409_s30 + $0x128] sm:$0xf]  ;;  %v4985_v36 = vld [vmem:[%s5409_s30 + $0x13c] sm:$0xf0] }
 0x16d   : > { %2762 = vmatpush.bf16.msrb.mxu2 %v4083_v54  ;;  %v5125_v54 = vld [vmem:[%s5409_s30 + $0x5a4] sm:$0xf]  ;;  %v4159_v12 = vor.u32 %v5039_v53, %v4158_v3  ;;  %v5033_v10 = vld [vmem:[%s5409_s30 + $0x2bc] sm:$0xf0]  ;;  %v3943_v46 = vor.u32 %v4985_v36, %v3942_v11  ;;  %v5119_v27 = vld [vmem:[%s5409_s30 + $0x574] sm:$0xf] }
 0x16e   : > { %2775 = vmatpush.bf16.msrb.mxu3 %v4275_v8  ;;  %v4704_v8 = vld [vmem:[%s5409_s30 + $0x738] sm:$0xf0]  ;;  %v4488_v21 = vld [vmem:[%s5409_s30 + $0x588] sm:$0xf0]  ;;  %v3918_v35 = vld [vmem:[%s5409_s30 + $0xf8] sm:$0xf] }
 0x16f   : > { %2737 = vmatpush.bf16.msrb.mxu0 %v4631_v41  ;;  %v4515_v41 = vor.u32 %v5125_v54, %v4512_v18  ;;  %v4680_v13 = vld [vmem:[%s5409_s30 + $0x708] sm:$0xf0]  ;;  %v4979_v14 = vld [vmem:[%s5409_s30 + $0x10c] sm:$0xf0]  ;;  %v5113_v24 = vld [vmem:[%s5409_s30 + $0x544] sm:$0xf] }
 0x170   : > { %2750 = vmatpush.bf16.msrb.mxu1 %v3867_v5  ;;  %v4134_v5 = vld [vmem:[%s5409_s30 + $0x2a8] sm:$0xf]  ;;  %v5027_v43 = vld [vmem:[%s5409_s30 + $0x28c] sm:$0xf0]  ;;  %v3919_v23 = vor.u32 %v4979_v14, %v3918_v35  ;;  %v4464_v55 = vld [vmem:[%s5409_s30 + $0x558] sm:$0xf0] }
 0x171   : > { %2763 = vmatpush.bf16.msrb.mxu2 %v4059_v47  ;;  %v4707_v47 = vor.u32 %v5173_v6, %v4704_v8  ;;  %v4135_v40 = vor.u32 %v5033_v10, %v4134_v5  ;;  %v4656_v37 = vld [vmem:[%s5409_s30 + $0x6d8] sm:$0xf0]  ;;  %v3894_v9 = vld [vmem:[%s5409_s30 + $0xc8] sm:$0xf]  ;;  %v4973_v28 = vld [vmem:[%s5409_s30 + $0xdc] sm:$0xf0] }
 0x172   : > { %2776 = vmatpush.bf16.msrb.mxu3 %v4251_v58  ;;  %v5167_v58 = vld [vmem:[%s5409_s30 + $0x6f4] sm:$0xf]  ;;  %v5021_v39 = vld [vmem:[%s5409_s30 + $0x25c] sm:$0xf0]  ;;  %v3895_v1 = vor.u32 %v4973_v28, %v3894_v9  ;;  %v4440_v19 = vld [vmem:[%s5409_s30 + $0x528] sm:$0xf0] }
 0x173   : > { %2738 = vmatpush.bf16.msrb.mxu0 %v4607_v15  ;;  %v4491_v15 = vor.u32 %v5119_v27, %v4488_v21  ;;  %v5155_v22 = vld [vmem:[%s5409_s30 + $0x694] sm:$0xf]  ;;  %v4632_v44 = vld [vmem:[%s5409_s30 + $0x6a8] sm:$0xf0]  ;;  %v4967_v48 = vld [vmem:[%s5409_s30 + $0xac] sm:$0xf0] }
 0x174   : > { %2751 = vmatpush.bf16.msrb.mxu1 %v3843_v16  ;;  %v4110_v16 = vld [vmem:[%s5409_s30 + $0x278] sm:$0xf]  ;;  %v5015_v57 = vld [vmem:[%s5409_s30 + $0x22c] sm:$0xf0]  ;;  %v4635_v51 = vor.u32 %v5155_v22, %v4632_v44  ;;  %v4416_v42 = vld [vmem:[%s5409_s30 + $0x4f8] sm:$0xf0] }
 0x175   : > { %2764 = vmatpush.bf16.msrb.mxu2 %v4035_v17  ;;  %v4683_v17 = vor.u32 %v5167_v58, %v4680_v13  ;;  %v4111_v29 = vor.u32 %v5027_v43, %v4110_v16  ;;  %v4062_v52 = vld [vmem:[%s5409_s30 + $0x218] sm:$0xf]  ;;  %v5149_v38 = vld [vmem:[%s5409_s30 + $0x664] sm:$0xf]  ;;  %v4608_v32 = vld [vmem:[%s5409_s30 + $0x678] sm:$0xf0] }
 0x176   : > { %2777 = vmatpush.bf16.msrb.mxu3 %v4227_v25  ;;  %v5161_v25 = vld [vmem:[%s5409_s30 + $0x6c4] sm:$0xf]  ;;  %v4063_v3 = vor.u32 %v5015_v57, %v4062_v52  ;;  %v4611_v54 = vor.u32 %v5149_v38, %v4608_v32  ;;  %v5095_v6 = vld [vmem:[%s5409_s30 + $0x4b4] sm:$0xf]  ;;  %v4584_v11 = vld [vmem:[%s5409_s30 + $0x648] sm:$0xf0] }
 0x177   : > { %2739 = vmatpush.bf16.msrb.mxu0 %v4583_v33  ;;  %v4467_v33 = vor.u32 %v5113_v24, %v4464_v55  ;;  %v4659_v61 = vor.u32 %v5161_v25, %v4656_v37  ;;  %v5143_v8 = vld [vmem:[%s5409_s30 + $0x634] sm:$0xf]  ;;  %v3822_v36 = vld [vmem:[%s5409_s30 + $0x38] sm:$0xf]  ;;  %v4368_v27 = vld [vmem:[%s5409_s30 + $0x498] sm:$0xf0] }
 0x178   : > { %2752 = vmatpush.bf16.msrb.mxu1 %v3819_v34  ;;  %v4086_v34 = vld [vmem:[%s5409_s30 + $0x248] sm:$0xf]  ;;  %v4014_v5 = vld [vmem:[%s5409_s30 + $0x1b8] sm:$0xf]  ;;  %v4587_v21 = vor.u32 %v5143_v8, %v4584_v11  ;;  %v5137_v13 = vld [vmem:[%s5409_s30 + $0x604] sm:$0xf] }
 0x179   : > { %2765 = vmatpush.bf16.msrb.mxu2 %v4011_v20  ;;  %v5107_v20 = vld [vmem:[%s5409_s30 + $0x514] sm:$0xf]  ;;  %v4087_v30 = vor.u32 %v5021_v39, %v4086_v34  ;;  %v4560_v35 = vld [vmem:[%s5409_s30 + $0x618] sm:$0xf0]  ;;  %v3798_v14 = vld [vmem:[%s5409_s30 + $0x8] sm:$0xf] }
 0x17a   : > { %2778 = vmatpush.bf16.msrb.mxu3 %v4203_v45  ;;  %v3870_v45 = vld [vmem:[%s5409_s30 + $0x98] sm:$0xf]  ;;  %v4443_v50 = vor.u32 %v5107_v20, %v4440_v19  ;;  %v5087_v16 = vld [vmem:[%s5409_s30 + $0x46c] sm:$0xf0]  ;;  %v3990_v37 = vld [vmem:[%s5409_s30 + $0x188] sm:$0xf]  ;;  %v4563_v28 = vor.u32 %v5137_v13, %v4560_v35 }
 0x17b   : > { %2740 = vmatpush.bf16.msrb.mxu0 %v4559_v62  ;;  %v3871_v62 = vor.u32 %v4967_v48, %v3870_v45  ;;  %v4734_v24 = vld [vmem:[%s5409_s30 + $0x758] sm:$0xf]  ;;  %v5183_v25 = vld [vmem:[%s5409_s30 + $0x76c] sm:$0xf0]  ;;  %v4997_v9 = vld [vmem:[%s5409_s30 + $0x19c] sm:$0xf0] }
 0x17c   : > { %2753 = vmatpush.bf16.msrb.mxu1 %v3795_v56  ;;  %v5101_v56 = vld [vmem:[%s5409_s30 + $0x4e4] sm:$0xf]  ;;  %v3968_v34 = vld [vmem:[%s5409_s30 + $0x170] sm:$0xf0]  ;;  %v4735_v20 = vor.u32 %v5183_v25, %v4734_v24  ;;  %v3991_v19 = vor.u32 %v4997_v9, %v3990_v37  ;;  %v5081_v22 = vld [vmem:[%s5409_s30 + $0x43c] sm:$0xf0] }
 0x17d   : > { %2766 = vmatpush.bf16.msrb.mxu2 %v3987_v63  ;;  %v3846_v63 = vld [vmem:[%s5409_s30 + $0x68] sm:$0xf]  ;;  %v4419_v53 = vor.u32 %v5101_v56, %v4416_v42  ;;  %v5129_v45 = vld [vmem:[%s5409_s30 + $0x5bc] sm:$0xf0]  ;;  %v4982_v52 = vld [vmem:[%s5409_s30 + $0x12c] sm:$0xf] }
 0x17e   : > { %2779 = vmatpush.bf16.msrb.mxu3 %v4179_v7  ;;  %2741 = vmatmul.bf16.vlgmr.msrb.gmra.mxu0 %v6276_v49  ;;  %v4392_v7 = vld [vmem:[%s5409_s30 + $0x4c8] sm:$0xf0]  ;;  %v4518_v44 = vld [vmem:[%s5409_s30 + $0x5a8] sm:$0xf]  ;;  %v3944_v57 = vld [vmem:[%s5409_s30 + $0x140] sm:$0xf0] }
 0x17f   : > { %2785 = vmatpush.bf16.msra.mxu0 %v4539_v2  ;;  %2754 = vmatmul.bf16.vlgmr.msrb.gmra.mxu1 %v6210_v4  ;;  %v4961_v2 = vld [vmem:[%s5409_s30 + $0x7c] sm:$0xf0]  ;;  %v4395_v10 = vor.u32 %v5095_v6, %v4392_v7  ;;  %v4302_v56 = vld [vmem:[%s5409_s30 + $0x3f8] sm:$0xf]  ;;  %v5075_v38 = vld [vmem:[%s5409_s30 + $0x40c] sm:$0xf0] }
 0x180   : > { %2798 = vmatpush.bf16.msra.mxu1 %v4731_v31  ;;  %2767 = vmatmul.bf16.vlgmr.msrb.gmra.mxu2 %v6215_v0  ;;  %v4038_v31 = vld [vmem:[%s5409_s30 + $0x1e8] sm:$0xf]  ;;  %v3847_v18 = vor.u32 %v4961_v2, %v3846_v63  ;;  %v4494_v32 = vld [vmem:[%s5409_s30 + $0x578] sm:$0xf]  ;;  %v5123_v63 = vld [vmem:[%s5409_s30 + $0x58c] sm:$0xf0]  ;;  %v3947_v2 = vor.u32 %v4982_v52, %v3944_v57 }
 0x181   : > { %2811 = vmatpush.bf16.msra.mxu2 %v3967_v60  ;;  %2780 = vmatmul.bf16.vlgmr.msrb.gmra.mxu3 %v6222_v59  ;;  %v5009_v60 = vld [vmem:[%s5409_s30 + $0x1fc] sm:$0xf0]  ;;  %v4278_v6 = vld [vmem:[%s5409_s30 + $0x3c8] sm:$0xf]  ;;  %v5063_v13 = vld [vmem:[%s5409_s30 + $0x3ac] sm:$0xf0] }
 0x182   : > { %2824 = vmatpush.bf16.msra.mxu3 %v4159_v12  ;;  %v4955_v12 = vld [vmem:[%s5409_s30 + $0x4c] sm:$0xf0]  ;;  %v5069_v8 = vld [vmem:[%s5409_s30 + $0x3dc] sm:$0xf0]  ;;  %v4470_v11 = vld [vmem:[%s5409_s30 + $0x548] sm:$0xf] }
 0x183   : > { %2786 = vmatpush.bf16.msra.mxu0 %v4515_v41  ;;  %v4039_v41 = vor.u32 %v5009_v60, %v4038_v31  ;;  %v3823_v58 = vor.u32 %v4955_v12, %v3822_v36  ;;  %v4976_v31 = vld [vmem:[%s5409_s30 + $0xfc] sm:$0xf]  ;;  %v3920_v60 = vld [vmem:[%s5409_s30 + $0x110] sm:$0xf0]  ;;  %v5117_v36 = vld [vmem:[%s5409_s30 + $0x55c] sm:$0xf0] }
 0x184   : > { %2799 = vmatpush.bf16.msra.mxu1 %v4707_v47  ;;  %v5003_v47 = vld [vmem:[%s5409_s30 + $0x1cc] sm:$0xf0]  ;;  %v3923_v12 = vor.u32 %v4976_v31, %v3920_v60  ;;  %v4446_v35 = vld [vmem:[%s5409_s30 + $0x518] sm:$0xf]  ;;  %v5057_v37 = vld [vmem:[%s5409_s30 + $0x37c] sm:$0xf0] }
 0x185   : > { %2812 = vmatpush.bf16.msra.mxu2 %v3943_v46  ;;  %v5089_v46 = vld [vmem:[%s5409_s30 + $0x484] sm:$0xf]  ;;  %v4015_v43 = vor.u32 %v5003_v47, %v4014_v5  ;;  %v5165_v5 = vld [vmem:[%s5409_s30 + $0x6dc] sm:$0xf0]  ;;  %v4422_v9 = vld [vmem:[%s5409_s30 + $0x4e8] sm:$0xf] }
 0x186   : > { %2825 = vmatpush.bf16.msra.mxu3 %v4135_v40  ;;  %v4949_v40 = vld [vmem:[%s5409_s30 + $0x1c] sm:$0xf0]  ;;  %v4371_v55 = vor.u32 %v5089_v46, %v4368_v27  ;;  %v3896_v47 = vld [vmem:[%s5409_s30 + $0xe0] sm:$0xf0]  ;;  %v4279_v46 = vor.u32 %v5069_v8, %v4278_v6  ;;  %v4471_v27 = vor.u32 %v5117_v36, %v4470_v11  ;;  %v5147_v52 = vld [vmem:[%s5409_s30 + $0x64c] sm:$0xf0] }
 0x187   : > { %2787 = vmatpush.bf16.msra.mxu0 %v4491_v15  ;;  %v4350_v15 = vld [vmem:[%s5409_s30 + $0x458] sm:$0xf]  ;;  %v4952_v57 = vld [vmem:[%s5409_s30 + $0x3c] sm:$0xf]  ;;  %v4352_v6 = vld [vmem:[%s5409_s30 + $0x470] sm:$0xf0] }
 0x188   : > { %2800 = vmatpush.bf16.msra.mxu1 %v4683_v17  ;;  %v4542_v17 = vld [vmem:[%s5409_s30 + $0x5d8] sm:$0xf]  ;;  %v4351_v39 = vor.u32 %v5087_v16, %v4350_v15  ;;  %v5159_v16 = vld [vmem:[%s5409_s30 + $0x6ac] sm:$0xf0]  ;;  %v5036_v60 = vld [vmem:[%s5409_s30 + $0x2dc] sm:$0xf] }
 0x189   : > { %2813 = vmatpush.bf16.msra.mxu2 %v3919_v23  ;;  %v5135_v23 = vld [vmem:[%s5409_s30 + $0x5ec] sm:$0xf0]  ;;  %v4638_v15 = vld [vmem:[%s5409_s30 + $0x698] sm:$0xf]  ;;  %v4544_v8 = vld [vmem:[%s5409_s30 + $0x5f0] sm:$0xf0] }
 0x18a   : > { %2826 = vmatpush.bf16.msra.mxu3 %v4111_v29  ;;  %v3799_v29 = vor.u32 %v4949_v40, %v3798_v14  ;;  %v5111_v14 = vld [vmem:[%s5409_s30 + $0x52c] sm:$0xf0]  ;;  %v4639_v25 = vor.u32 %v5159_v16, %v4638_v15  ;;  %v5126_v15 = vld [vmem:[%s5409_s30 + $0x5ac] sm:$0xf]  ;;  %v4520_v16 = vld [vmem:[%s5409_s30 + $0x5c0] sm:$0xf0] }
 0x18b   : > { %2788 = vmatpush.bf16.msra.mxu0 %v4467_v33  ;;  %v4988_v33 = vld [vmem:[%s5409_s30 + $0x15c] sm:$0xf]  ;;  %v4447_v24 = vor.u32 %v5111_v14, %v4446_v35  ;;  %v5078_v35 = vld [vmem:[%s5409_s30 + $0x42c] sm:$0xf]  ;;  %vm3085_vm10 = vcmask 1043456   ;;  %p4748_p5 = scmp.ne.s32.totalorder %s5400_s25, 4 }
 0x18c   : > { %2801 = vmatpush.bf16.msra.mxu1 %v4659_v61  ;;  %v4543_v61 = vor.u32 %v5135_v23, %v4542_v17  ;;  %v3971_v48 = vor.u32 %v4988_v33, %v3968_v34  ;;  %v3872_v17 = vld [vmem:[%s5409_s30 + $0xb0] sm:$0xf0]  ;;  %v4614_v33 = vld [vmem:[%s5409_s30 + $0x668] sm:$0xf]  ;;  %v5153_v34 = vld [vmem:[%s5409_s30 + $0x67c] sm:$0xf0] }
 0x18d   : > { %2814 = vmatpush.bf16.msra.mxu2 %v3895_v1  ;;  %v4326_v1 = vld [vmem:[%s5409_s30 + $0x428] sm:$0xf] }
 0x18e   : > { %2827 = vmatpush.bf16.msra.mxu3 %v4087_v30  ;;  %v4710_v30 = vld [vmem:[%s5409_s30 + $0x728] sm:$0xf] }
 0x18f   : > { %2789 = vmatpush.bf16.msra.mxu0 %v4443_v50  ;;  %v5177_v50 = vld [vmem:[%s5409_s30 + $0x73c] sm:$0xf0] }
 0x190   : > { %2802 = vmatpush.bf16.msra.mxu1 %v4635_v51  ;;  %v4327_v51 = vor.u32 %v5081_v22, %v4326_v1  ;;  %v4711_v42 = vor.u32 %v5177_v50, %v4710_v30  ;;  %v4615_v22 = vor.u32 %v5153_v34, %v4614_v33  ;;  %v4590_v50 = vld [vmem:[%s5409_s30 + $0x638] sm:$0xf]  ;;  %v5120_v33 = vld [vmem:[%s5409_s30 + $0x57c] sm:$0xf]  ;;  %v4496_v34 = vld [vmem:[%s5409_s30 + $0x590] sm:$0xf0] }
 0x191   : > { %2815 = vmatpush.bf16.msra.mxu2 %v3871_v62  ;;  %v4519_v62 = vor.u32 %v5129_v45, %v4518_v44  ;;  %v5051_v44 = vld [vmem:[%s5409_s30 + $0x34c] sm:$0xf0]  ;;  %v4398_v45 = vld [vmem:[%s5409_s30 + $0x4b8] sm:$0xf] }
 0x192   : > { %2828 = vmatpush.bf16.msra.mxu3 %v4063_v3  ;;  %v4686_v3 = vld [vmem:[%s5409_s30 + $0x6f8] sm:$0xf] }
 0x193   : > { %2790 = vmatpush.bf16.msra.mxu0 %v4419_v53  ;;  %v5171_v53 = vld [vmem:[%s5409_s30 + $0x70c] sm:$0xf0] }
 0x194   : > { %2803 = vmatpush.bf16.msra.mxu1 %v4611_v54  ;;  %v4303_v54 = vor.u32 %v5075_v38, %v4302_v56  ;;  %v4687_v7 = vor.u32 %v5171_v53, %v4686_v3  ;;  %v5045_v38 = vld [vmem:[%s5409_s30 + $0x31c] sm:$0xf0]  ;;  %v4566_v3 = vld [vmem:[%s5409_s30 + $0x608] sm:$0xf] }
 0x195   : > { %2816 = vmatpush.bf16.msra.mxu2 %v3847_v18  ;;  %v4495_v18 = vor.u32 %v5123_v63, %v4494_v32  ;;  %v4374_v32 = vld [vmem:[%s5409_s30 + $0x488] sm:$0xf]  ;;  %v4591_v63 = vor.u32 %v5147_v52, %v4590_v50  ;;  %v5141_v53 = vld [vmem:[%s5409_s30 + $0x61c] sm:$0xf0]  ;;  %v5114_v50 = vld [vmem:[%s5409_s30 + $0x54c] sm:$0xf] }
 0x196   : > { %2829 = vmatpush.bf16.msra.mxu3 %v4039_v41  ;;  %v4662_v41 = vld [vmem:[%s5409_s30 + $0x6c8] sm:$0xf]  ;;  %v4472_v52 = vld [vmem:[%s5409_s30 + $0x560] sm:$0xf0] }
 0x197   : > { %2791 = vmatpush.bf16.msra.mxu0 %v4395_v10  ;;  %v4970_v10 = vld [vmem:[%s5409_s30 + $0xcc] sm:$0xf] }
 0x198   : > { %2804 = vmatpush.bf16.msra.mxu1 %v4587_v21  ;;  %v4254_v21 = vld [vmem:[%s5409_s30 + $0x398] sm:$0xf]  ;;  %v3899_v40 = vor.u32 %v4970_v10, %v3896_v47  ;;  %v5180_v47 = vld [vmem:[%s5409_s30 + $0x75c] sm:$0xf] }
 0x199   : > { %2817 = vmatpush.bf16.msra.mxu2 %v3823_v58  ;;  %v4663_v58 = vor.u32 %v5165_v5, %v4662_v41  ;;  %v4255_v23 = vor.u32 %v5063_v13, %v4254_v21  ;;  %v3800_v41 = vld [vmem:[%s5409_s30 + $0x20] sm:$0xf0]  ;;  %v4567_v5 = vor.u32 %v5141_v53, %v4566_v3  ;;  %v4256_v3 = vld [vmem:[%s5409_s30 + $0x3b0] sm:$0xf0]  ;;  %v5108_v53 = vld [vmem:[%s5409_s30 + $0x51c] sm:$0xf] }
 0x19a   : > { %2830 = vmatpush.bf16.msra.mxu3 %v4015_v43  ;;  %v4964_v43 = vld [vmem:[%s5409_s30 + $0x9c] sm:$0xf]  ;;  %v4136_v13 = vld [vmem:[%s5409_s30 + $0x2c0] sm:$0xf0] }
 0x19b   : > { %2792 = vmatpush.bf16.msra.mxu0 %v4371_v55  ;;  %v4230_v55 = vld [vmem:[%s5409_s30 + $0x368] sm:$0xf] }
 0x19c   : > { %2805 = vmatpush.bf16.msra.mxu1 %v4563_v28  ;;  %v5105_v28 = vld [vmem:[%s5409_s30 + $0x4fc] sm:$0xf0]  ;;  %v4231_v1 = vor.u32 %v5057_v37, %v4230_v55  ;;  %v5024_v37 = vld [vmem:[%s5409_s30 + $0x27c] sm:$0xf] }
 0x19d   : > { %2818 = vmatpush.bf16.msra.mxu2 %v3799_v29  ;;  %v3875_v29 = vor.u32 %v4964_v43, %v3872_v17 }
 0x19e   : > { %2831 = vmatpush.bf16.msra.mxu3 %v3991_v19  ;;  %2793 = vmatmul.bf16.vlgmr.msra.gmra.mxu0 %v6229_v26  ;;  %v4206_v19 = vld [vmem:[%s5409_s30 + $0x338] sm:$0xf] }
 0x19f   : > { %2837 = vmatpush.bf16.msrb.mxu0 %v4351_v39  ;;  %2806 = vmatmul.bf16.vlgmr.msra.gmra.mxu1 %v6276_v49  ;;  %v4958_v39 = vld [vmem:[%s5409_s30 + $0x6c] sm:$0xf] }
 0x1a0   : > { %2850 = vmatpush.bf16.msrb.mxu1 %v4543_v61  ;;  %2819 = vmatmul.bf16.vlgmr.msra.gmra.mxu2 %v6210_v4  ;;  %v3848_v61 = vld [vmem:[%s5409_s30 + $0x80] sm:$0xf0] }
 0x1a1   : > { %2863 = vmatpush.bf16.msrb.mxu2 %v4735_v20  ;;  %2832 = vmatmul.bf16.vlgmr.msra.gmra.mxu3 %v6215_v0  ;;  %v4423_v20 = vor.u32 %v5105_v28, %v4422_v9  ;;  %v3851_v30 = vor.u32 %v4958_v39, %v3848_v61  ;;  %v4112_v9 = vld [vmem:[%s5409_s30 + $0x290] sm:$0xf0]  ;;  %v5072_v28 = vld [vmem:[%s5409_s30 + $0x3fc] sm:$0xf] }
 0x1a2   : > { %2876 = vmatpush.bf16.msrb.mxu3 %v3971_v48  ;;  %v5099_v48 = vld [vmem:[%s5409_s30 + $0x4cc] sm:$0xf0]  ;;  %v4115_v61 = vor.u32 %v5024_v37, %v4112_v9 }
 0x1a3   : > { %2838 = vmatpush.bf16.msrb.mxu0 %v4327_v51  ;;  %v3824_v51 = vld [vmem:[%s5409_s30 + $0x50] sm:$0xf0]  ;;  %v4399_v56 = vor.u32 %v5099_v48, %v4398_v45  ;;  %v4088_v45 = vld [vmem:[%s5409_s30 + $0x260] sm:$0xf0]  ;;  %v5066_v48 = vld [vmem:[%s5409_s30 + $0x3cc] sm:$0xf] }
 0x1a4   : > { %2851 = vmatpush.bf16.msrb.mxu1 %v4519_v62  ;;  %v4207_v62 = vor.u32 %v5051_v44, %v4206_v19  ;;  %v3827_v31 = vor.u32 %v4952_v57, %v3824_v51  ;;  %v5018_v44 = vld [vmem:[%s5409_s30 + $0x24c] sm:$0xf] }
 0x1a5   : > { %2864 = vmatpush.bf16.msrb.mxu2 %v4711_v42  ;;  %v4182_v42 = vld [vmem:[%s5409_s30 + $0x308] sm:$0xf]  ;;  %v4091_v51 = vor.u32 %v5018_v44, %v4088_v45  ;;  %v5138_v45 = vld [vmem:[%s5409_s30 + $0x60c] sm:$0xf] }
 0x1a6   : > { %2877 = vmatpush.bf16.msrb.mxu3 %v3947_v2  ;;  %v5093_v2 = vld [vmem:[%s5409_s30 + $0x49c] sm:$0xf0]  ;;  %v4183_v11 = vor.u32 %v5045_v38, %v4182_v42  ;;  %v4475_v38 = vor.u32 %v5114_v50, %v4472_v52 }
 0x1a7   : > { %2839 = vmatpush.bf16.msrb.mxu0 %v4303_v54  ;;  %v4160_v54 = vld [vmem:[%s5409_s30 + $0x2f0] sm:$0xf0]  ;;  %v4375_v36 = vor.u32 %v5093_v2, %v4374_v32  ;;  %v5012_v32 = vld [vmem:[%s5409_s30 + $0x21c] sm:$0xf]  ;;  %v4358_v52 = vld [vmem:[%s5409_s30 + $0x460] sm:$0xf] }
 0x1a8   : > { %2852 = vmatpush.bf16.msrb.mxu1 %v4495_v18  ;;  %v5084_v18 = vld [vmem:[%s5409_s30 + $0x45c] sm:$0xf]  ;;  %v4163_v10 = vor.u32 %v5036_v60, %v4160_v54 }
 0x1a9   : > { %2865 = vmatpush.bf16.msrb.mxu2 %v4687_v7  ;;  %v5132_v7 = vld [vmem:[%s5409_s30 + $0x5dc] sm:$0xf] }
 0x1aa   : > { %2878 = vmatpush.bf16.msrb.mxu3 %v3923_v12  ;;  %v4946_v12 = vld [vmem:[%s5409_s30 + $0xc] sm:$0xf]  ;;  %v4547_v21 = vor.u32 %v5132_v7, %v4544_v8  ;;  %v5060_v2 = vld [vmem:[%s5409_s30 + $0x39c] sm:$0xf] }
 0x1ab   : > { %2840 = vmatpush.bf16.msrb.mxu0 %v4279_v46  ;;  %v4736_v46 = vld [vmem:[%s5409_s30 + $0x770] sm:$0xf0]  ;;  %v3803_v14 = vor.u32 %v4946_v12, %v3800_v41  ;;  %v4259_v7 = vor.u32 %v5060_v2, %v4256_v3  ;;  %v5054_v12 = vld [vmem:[%s5409_s30 + $0x36c] sm:$0xf]  ;;  %v4232_v41 = vld [vmem:[%s5409_s30 + $0x380] sm:$0xf0] }
 0x1ac   : > { %2853 = vmatpush.bf16.msrb.mxu1 %v4471_v27  ;;  %v4355_v27 = vor.u32 %v5084_v18, %v4352_v6  ;;  %v4739_v43 = vor.u32 %v5180_v47, %v4736_v46  ;;  %v5156_v18 = vld [vmem:[%s5409_s30 + $0x69c] sm:$0xf]  ;;  %v4640_v6 = vld [vmem:[%s5409_s30 + $0x6b0] sm:$0xf0]  ;;  %v4142_v2 = vld [vmem:[%s5409_s30 + $0x2b0] sm:$0xf] }
 0x1ad   : > { %2866 = vmatpush.bf16.msrb.mxu2 %v4663_v58  ;;  %v5030_v58 = vld [vmem:[%s5409_s30 + $0x2ac] sm:$0xf]  ;;  %v4643_v47 = vor.u32 %v5156_v18, %v4640_v6  ;;  %v5034_v3 = vld [vmem:[%s5409_s30 + $0x2c4] sm:$0xf0]  ;;  %v4526_v6 = vld [vmem:[%s5409_s30 + $0x5b0] sm:$0xf] }
 0x1ae   : > { %2879 = vmatpush.bf16.msrb.mxu3 %v3899_v40  ;;  %v4328_v40 = vld [vmem:[%s5409_s30 + $0x440] sm:$0xf0]  ;;  %v4139_v17 = vor.u32 %v5030_v58, %v4136_v13  ;;  %v4235_v58 = vor.u32 %v5054_v12, %v4232_v41  ;;  %v5082_v18 = vld [vmem:[%s5409_s30 + $0x444] sm:$0xf0]  ;;  %v4118_v12 = vld [vmem:[%s5409_s30 + $0x280] sm:$0xf] }
 0x1af   : > { %2841 = vmatpush.bf16.msrb.mxu0 %v4255_v23  ;;  %v5174_v23 = vld [vmem:[%s5409_s30 + $0x72c] sm:$0xf]  ;;  %v4331_v55 = vor.u32 %v5078_v35, %v4328_v40  ;;  %v5000_v35 = vld [vmem:[%s5409_s30 + $0x1bc] sm:$0xf]  ;;  %v5028_v41 = vld [vmem:[%s5409_s30 + $0x294] sm:$0xf0] }
 0x1b0   : > { %2854 = vmatpush.bf16.msrb.mxu1 %v4447_v24  ;;  %v4712_v24 = vld [vmem:[%s5409_s30 + $0x740] sm:$0xf0]  ;;  %v5048_v40 = vld [vmem:[%s5409_s30 + $0x33c] sm:$0xf] }
 0x1b1   : > { %2867 = vmatpush.bf16.msrb.mxu2 %v4639_v25  ;;  %v4523_v25 = vor.u32 %v5126_v15, %v4520_v16  ;;  %v4715_v39 = vor.u32 %v5174_v23, %v4712_v24  ;;  %v4208_v15 = vld [vmem:[%s5409_s30 + $0x350] sm:$0xf0]  ;;  %v5096_v16 = vld [vmem:[%s5409_s30 + $0x4bc] sm:$0xf] }
 0x1b2   : > { %2880 = vmatpush.bf16.msrb.mxu3 %v3875_v29  ;;  %v4304_v29 = vld [vmem:[%s5409_s30 + $0x410] sm:$0xf0]  ;;  %v5144_v24 = vld [vmem:[%s5409_s30 + $0x63c] sm:$0xf]  ;;  %v4211_v37 = vor.u32 %v5048_v40, %v4208_v15  ;;  %v4094_v40 = vld [vmem:[%s5409_s30 + $0x250] sm:$0xf] }
 0x1b3   : > { %2842 = vmatpush.bf16.msrb.mxu0 %v4231_v1  ;;  %v5168_v1 = vld [vmem:[%s5409_s30 + $0x6fc] sm:$0xf]  ;;  %v4307_v19 = vor.u32 %v5072_v28, %v4304_v29  ;;  %v3992_v28 = vld [vmem:[%s5409_s30 + $0x1a0] sm:$0xf0]  ;;  %v5042_v29 = vld [vmem:[%s5409_s30 + $0x30c] sm:$0xf] }
 0x1b4   : > { %2855 = vmatpush.bf16.msrb.mxu1 %v4423_v20  ;;  %v4688_v20 = vld [vmem:[%s5409_s30 + $0x710] sm:$0xf0]  ;;  %v5022_v15 = vld [vmem:[%s5409_s30 + $0x264] sm:$0xf0] }
 0x1b5   : > { %2868 = vmatpush.bf16.msrb.mxu2 %v4615_v22  ;;  %v4499_v22 = vor.u32 %v5120_v33, %v4496_v34  ;;  %v4691_v57 = vor.u32 %v5168_v1, %v4688_v20  ;;  %v4184_v33 = vld [vmem:[%s5409_s30 + $0x320] sm:$0xf0]  ;;  %v5090_v34 = vld [vmem:[%s5409_s30 + $0x48c] sm:$0xf]  ;;  %v4992_v20 = vld [vmem:[%s5409_s30 + $0x174] sm:$0xf0] }
 0x1b6   : > { %2881 = vmatpush.bf16.msrb.mxu3 %v3851_v30  ;;  %v4280_v30 = vld [vmem:[%s5409_s30 + $0x3e0] sm:$0xf0] }
 0x1b7   : > { %2843 = vmatpush.bf16.msrb.mxu0 %v4207_v62  ;;  %v5162_v62 = vld [vmem:[%s5409_s30 + $0x6cc] sm:$0xf]  ;;  %v4283_v42 = vor.u32 %v5066_v48, %v4280_v30  ;;  %v4568_v48 = vld [vmem:[%s5409_s30 + $0x620] sm:$0xf0]  ;;  %v4187_v30 = vor.u32 %v5042_v29, %v4184_v33  ;;  %v4070_v29 = vld [vmem:[%s5409_s30 + $0x220] sm:$0xf] }
 0x1b8   : > { %2856 = vmatpush.bf16.msrb.mxu1 %v4399_v56  ;;  %v4664_v56 = vld [vmem:[%s5409_s30 + $0x6e0] sm:$0xf0]  ;;  %v5016_v33 = vld [vmem:[%s5409_s30 + $0x234] sm:$0xf0] }
 0x1b9   : > { %2869 = vmatpush.bf16.msrb.mxu2 %v4591_v63  ;;  %v4064_v63 = vld [vmem:[%s5409_s30 + $0x230] sm:$0xf0]  ;;  %v4667_v60 = vor.u32 %v5162_v62, %v4664_v56  ;;  %v5088_v62 = vld [vmem:[%s5409_s30 + $0x474] sm:$0xf0]  ;;  %v4550_v56 = vld [vmem:[%s5409_s30 + $0x5e0] sm:$0xf] }
 0x1ba   : > { %2882 = vmatpush.bf16.msrb.mxu3 %v3827_v31  ;;  %v4448_v31 = vld [vmem:[%s5409_s30 + $0x530] sm:$0xf0]  ;;  %v4067_v54 = vor.u32 %v5012_v32, %v4064_v63  ;;  %v3950_v32 = vld [vmem:[%s5409_s30 + $0x130] sm:$0xf]  ;;  %v4986_v63 = vld [vmem:[%s5409_s30 + $0x144] sm:$0xf0] }
 0x1bb   : > { %2844 = vmatpush.bf16.msrb.mxu0 %v4183_v11  ;;  %v4451_v8 = vor.u32 %v5108_v53, %v4448_v31  ;;  %v5006_v11 = vld [vmem:[%s5409_s30 + $0x1ec] sm:$0xf]  ;;  %v4359_v53 = vor.u32 %v5088_v62, %v4358_v52  ;;  %v4238_v62 = vld [vmem:[%s5409_s30 + $0x370] sm:$0xf] }
 0x1bc   : > { %2857 = vmatpush.bf16.msrb.mxu1 %v4375_v36  ;;  %v4040_v36 = vld [vmem:[%s5409_s30 + $0x200] sm:$0xf0] }
 0x1bd   : > { %2870 = vmatpush.bf16.msrb.mxu2 %v4567_v5  ;;  %v5102_v5 = vld [vmem:[%s5409_s30 + $0x4ec] sm:$0xf]  ;;  %v4043_v46 = vor.u32 %v5006_v11, %v4040_v36  ;;  %v3926_v11 = vld [vmem:[%s5409_s30 + $0x100] sm:$0xf]  ;;  %v4980_v36 = vld [vmem:[%s5409_s30 + $0x114] sm:$0xf0] }
 0x1be   : > { %2883 = vmatpush.bf16.msrb.mxu3 %v3803_v14  ;;  %2845 = vmatmul.bf16.vlgmr.msrb.gmra.mxu0 %v6222_v59  ;;  %v4016_v14 = vld [vmem:[%s5409_s30 + $0x1d0] sm:$0xf0] }
 0x1bf   : > { %2889 = vmatpush.bf16.msra.mxu0 %v4163_v10  ;;  %2858 = vmatmul.bf16.vlgmr.msrb.gmra.mxu1 %v6229_v26  ;;  %v4424_v10 = vld [vmem:[%s5409_s30 + $0x500] sm:$0xf0]  ;;  %v4019_v23 = vor.u32 %v5000_v35, %v4016_v14  ;;  %v3902_v35 = vld [vmem:[%s5409_s30 + $0xd0] sm:$0xf]  ;;  %v4974_v14 = vld [vmem:[%s5409_s30 + $0xe4] sm:$0xf0] }
 0x1c0   : > { %2902 = vmatpush.bf16.msra.mxu1 %v4355_v27  ;;  %2871 = vmatmul.bf16.vlgmr.msrb.gmra.mxu2 %v6276_v49  ;;  %v5150_v27 = vld [vmem:[%s5409_s30 + $0x66c] sm:$0xf]  ;;  %v4427_v13 = vor.u32 %v5102_v5, %v4424_v10 }
 0x1c1   : > { %2915 = vmatpush.bf16.msra.mxu2 %v4547_v21  ;;  %2884 = vmatmul.bf16.vlgmr.msrb.gmra.mxu3 %v6210_v4  ;;  %v4616_v21 = vld [vmem:[%s5409_s30 + $0x680] sm:$0xf0] }
 0x1c2   : > { %2928 = vmatpush.bf16.msra.mxu3 %v4739_v43  ;;  %v4400_v43 = vld [vmem:[%s5409_s30 + $0x4d0] sm:$0xf0] }
 0x1c3   : > { %2890 = vmatpush.bf16.msra.mxu0 %v4139_v17  ;;  %v4619_v17 = vor.u32 %v5150_v27, %v4616_v21  ;;  %v4403_v9 = vor.u32 %v5096_v16, %v4400_v43  ;;  %v5076_v27 = vld [vmem:[%s5409_s30 + $0x414] sm:$0xf0]  ;;  %v4502_v21 = vld [vmem:[%s5409_s30 + $0x580] sm:$0xf] }
 0x1c4   : > { %2903 = vmatpush.bf16.msra.mxu1 %v4331_v55  ;;  %v4592_v55 = vld [vmem:[%s5409_s30 + $0x650] sm:$0xf0] }
 0x1c5   : > { %2916 = vmatpush.bf16.msra.mxu2 %v4523_v25  ;;  %v4994_v25 = vld [vmem:[%s5409_s30 + $0x18c] sm:$0xf]  ;;  %v4595_v1 = vor.u32 %v5144_v24, %v4592_v55  ;;  %v5070_v24 = vld [vmem:[%s5409_s30 + $0x3e4] sm:$0xf0]  ;;  %v4478_v55 = vld [vmem:[%s5409_s30 + $0x550] sm:$0xf] }
 0x1c6   : > { %2929 = vmatpush.bf16.msra.mxu3 %v4715_v39  ;;  %v4376_v39 = vld [vmem:[%s5409_s30 + $0x4a0] sm:$0xf0]  ;;  %v3995_v44 = vor.u32 %v4994_v25, %v3992_v28  ;;  %v5118_v25 = vld [vmem:[%s5409_s30 + $0x564] sm:$0xf0]  ;;  %v4968_v28 = vld [vmem:[%s5409_s30 + $0xb4] sm:$0xf0] }
 0x1c7   : > { %2891 = vmatpush.bf16.msra.mxu0 %v4115_v61  ;;  %v3974_v61 = vld [vmem:[%s5409_s30 + $0x160] sm:$0xf]  ;;  %v4379_v50 = vor.u32 %v5090_v34, %v4376_v39  ;;  %v4479_v39 = vor.u32 %v5118_v25, %v4478_v55  ;;  %v5094_v55 = vld [vmem:[%s5409_s30 + $0x4a4] sm:$0xf0] }
 0x1c8   : > { %2904 = vmatpush.bf16.msra.mxu1 %v4307_v19  ;;  %v4166_v19 = vld [vmem:[%s5409_s30 + $0x2e0] sm:$0xf] }
 0x1c9   : > { %2917 = vmatpush.bf16.msra.mxu2 %v4499_v22  ;;  %v5040_v22 = vld [vmem:[%s5409_s30 + $0x2f4] sm:$0xf0] }
 0x1ca   : > { %2930 = vmatpush.bf16.msra.mxu3 %v4691_v57  ;;  %v3975_v57 = vor.u32 %v4992_v20, %v3974_v61  ;;  %v4262_v61 = vld [vmem:[%s5409_s30 + $0x3a0] sm:$0xf]  ;;  %v5064_v20 = vld [vmem:[%s5409_s30 + $0x3b4] sm:$0xf0] }
 0x1cb   : > { %2892 = vmatpush.bf16.msra.mxu0 %v4091_v51  ;;  %v4167_v51 = vor.u32 %v5040_v22, %v4166_v19  ;;  %v4454_v19 = vld [vmem:[%s5409_s30 + $0x520] sm:$0xf]  ;;  %v5112_v22 = vld [vmem:[%s5409_s30 + $0x534] sm:$0xf0] }
 0x1cc   : > { %2905 = vmatpush.bf16.msra.mxu1 %v4283_v42  ;;  %v5136_v42 = vld [vmem:[%s5409_s30 + $0x5f4] sm:$0xf0] }
 0x1cd   : > { %2918 = vmatpush.bf16.msra.mxu2 %v4475_v38  ;;  %v4571_v38 = vor.u32 %v5138_v45, %v4568_v48  ;;  %v4551_v31 = vor.u32 %v5136_v42, %v4550_v56  ;;  %v3854_v45 = vld [vmem:[%s5409_s30 + $0x70] sm:$0xf]  ;;  %v4962_v48 = vld [vmem:[%s5409_s30 + $0x84] sm:$0xf0] }
 0x1ce   : > { %2931 = vmatpush.bf16.msra.mxu3 %v4667_v60  ;;  %v4334_v60 = vld [vmem:[%s5409_s30 + $0x430] sm:$0xf]  ;;  %v3855_v56 = vor.u32 %v4962_v48, %v3854_v45  ;;  %v5058_v42 = vld [vmem:[%s5409_s30 + $0x384] sm:$0xf0] }
 0x1cf   : > { %2893 = vmatpush.bf16.msra.mxu0 %v4067_v54  ;;  %v3951_v54 = vor.u32 %v4986_v63, %v3950_v32  ;;  %v4335_v5 = vor.u32 %v5082_v18, %v4334_v60  ;;  %v5106_v32 = vld [vmem:[%s5409_s30 + $0x504] sm:$0xf0]  ;;  %v4022_v60 = vld [vmem:[%s5409_s30 + $0x1c0] sm:$0xf]  ;;  %v3806_v18 = vld [vmem:[%s5409_s30 + $0x10] sm:$0xf] }
 0x1d0   : > { %2906 = vmatpush.bf16.msra.mxu1 %v4259_v7  ;;  %v5130_v7 = vld [vmem:[%s5409_s30 + $0x5c4] sm:$0xf0] }
 0x1d1   : > { %2919 = vmatpush.bf16.msra.mxu2 %v4451_v8  ;;  %v4143_v8 = vor.u32 %v5034_v3, %v4142_v2  ;;  %v4527_v10 = vor.u32 %v5130_v7, %v4526_v6  ;;  %v3830_v3 = vld [vmem:[%s5409_s30 + $0x40] sm:$0xf]  ;;  %v4239_v6 = vor.u32 %v5058_v42, %v4238_v62  ;;  %v5079_v62 = vld [vmem:[%s5409_s30 + $0x434] sm:$0xf] }
 0x1d2   : > { %2932 = vmatpush.bf16.msra.mxu3 %v4643_v47  ;;  %v4310_v47 = vld [vmem:[%s5409_s30 + $0x400] sm:$0xf] }
 0x1d3   : > { %2894 = vmatpush.bf16.msra.mxu0 %v4043_v46  ;;  %v3927_v46 = vor.u32 %v4980_v36, %v3926_v11  ;;  %v4311_v16 = vor.u32 %v5076_v27, %v4310_v47  ;;  %v5052_v36 = vld [vmem:[%s5409_s30 + $0x354] sm:$0xf0]  ;;  %v3998_v47 = vld [vmem:[%s5409_s30 + $0x190] sm:$0xf]  ;;  %v4742_v27 = vld [vmem:[%s5409_s30 + $0x760] sm:$0xf] }
 0x1d4   : > { %2907 = vmatpush.bf16.msra.mxu1 %v4235_v58  ;;  %v5124_v58 = vld [vmem:[%s5409_s30 + $0x594] sm:$0xf0] }
 0x1d5   : > { %2920 = vmatpush.bf16.msra.mxu2 %v4427_v13  ;;  %v4119_v13 = vor.u32 %v5028_v41, %v4118_v12  ;;  %v4503_v43 = vor.u32 %v5124_v58, %v4502_v21  ;;  %v4406_v12 = vld [vmem:[%s5409_s30 + $0x4c0] sm:$0xf]  ;;  %v5100_v41 = vld [vmem:[%s5409_s30 + $0x4d4] sm:$0xf0]  ;;  %v4989_v58 = vld [vmem:[%s5409_s30 + $0x164] sm:$0xf] }
 0x1d6   : > { %2933 = vmatpush.bf16.msra.mxu3 %v4619_v17  ;;  %v4286_v17 = vld [vmem:[%s5409_s30 + $0x3d0] sm:$0xf]  ;;  %v5184_v21 = vld [vmem:[%s5409_s30 + $0x774] sm:$0xf0] }
 0x1d7   : > { %2895 = vmatpush.bf16.msra.mxu0 %v4019_v23  ;;  %v3903_v23 = vor.u32 %v4974_v14, %v3902_v35  ;;  %v4287_v34 = vor.u32 %v5070_v24, %v4286_v17  ;;  %v3976_v35 = vld [vmem:[%s5409_s30 + $0x178] sm:$0xf0]  ;;  %v4382_v24 = vld [vmem:[%s5409_s30 + $0x490] sm:$0xf] }
 0x1d8   : > { %2908 = vmatpush.bf16.msra.mxu1 %v4211_v37  ;;  %v4095_v37 = vor.u32 %v5022_v15, %v4094_v40  ;;  %v4407_v40 = vor.u32 %v5100_v41, %v4406_v12  ;;  %v4190_v15 = vld [vmem:[%s5409_s30 + $0x310] sm:$0xf]  ;;  %v4383_v48 = vor.u32 %v5094_v55, %v4382_v24  ;;  %v5166_v12 = vld [vmem:[%s5409_s30 + $0x6e4] sm:$0xf0]  ;;  %v4971_v41 = vld [vmem:[%s5409_s30 + $0xd4] sm:$0xf] }
 0x1d9   : > { %2921 = vmatpush.bf16.msra.mxu2 %v4403_v9  ;;  %v3878_v9 = vld [vmem:[%s5409_s30 + $0xa0] sm:$0xf] }
 0x1da   : > { %2934 = vmatpush.bf16.msra.mxu3 %v4595_v1  ;;  %v3879_v1 = vor.u32 %v4968_v28, %v3878_v9 }
 0x1db   : > { %2896 = vmatpush.bf16.msra.mxu0 %v3995_v44  ;;  %v4071_v44 = vor.u32 %v5016_v33, %v4070_v29  ;;  %v2690_v52 = vpop.f32.mrf.mxu0  ;;  %v4743_v29 = vor.u32 %v5184_v21, %v4742_v27  ;;  %v4168_v33 = vld [vmem:[%s5409_s30 + $0x2f8] sm:$0xf0]  ;;  %v4096_v21 = vld [vmem:[%s5409_s30 + $0x268] sm:$0xf0] }
 0x1dc   : > { %2909 = vmatpush.bf16.msra.mxu1 %v4187_v30  ;;  %v4046_v30 = vld [vmem:[%s5409_s30 + $0x1f0] sm:$0xf]  ;;  %v2703_v63 = vpop.f32.mrf.mxu1 }
 0x1dd   : > { %2922 = vmatpush.bf16.msra.mxu2 %v4379_v50  ;;  %v5010_v50 = vld [vmem:[%s5409_s30 + $0x204] sm:$0xf0] }
 0x1de   : > { %2935 = vmatpush.bf16.msra.mxu3 %v4571_v38  ;;  %2897 = vmatmul.bf16.vlgmr.msra.gmra.mxu0 %v6215_v0  ;;  %v4430_v38 = vld [vmem:[%s5409_s30 + $0x4f0] sm:$0xf]  ;;  %v4047_v2 = vor.u32 %v5010_v50, %v4046_v30 }
 0x1df   : > { %2941 = vmatpush.bf16.msrb.mxu0 %v3975_v57  ;;  %2910 = vmatmul.bf16.vlgmr.msra.gmra.mxu1 %v6222_v59  ;;  %v4263_v57 = vor.u32 %v5064_v20, %v4262_v61  ;;  %v4431_v7 = vor.u32 %v5106_v32, %v4430_v38  ;;  %v3979_v61 = vor.u32 %v4989_v58, %v3976_v35  ;;  %v5178_v20 = vld [vmem:[%s5409_s30 + $0x744] sm:$0xf0]  ;;  %v4694_v38 = vld [vmem:[%s5409_s30 + $0x700] sm:$0xf]  ;;  %v5172_v32 = vld [vmem:[%s5409_s30 + $0x714] sm:$0xf0] }
 0x1e0   : > { %2954 = vmatpush.bf16.msrb.mxu1 %v4167_v51  ;;  %2923 = vmatmul.bf16.vlgmr.msra.gmra.mxu2 %v6229_v26  ;;  %v4455_v51 = vor.u32 %v5112_v22, %v4454_v19  ;;  %v4983_v22 = vld [vmem:[%s5409_s30 + $0x134] sm:$0xf] }
 0x1e1   : > { %2967 = vmatpush.bf16.msrb.mxu2 %v4359_v53  ;;  %2936 = vmatmul.bf16.vlgmr.msra.gmra.mxu3 %v6276_v49  ;;  %v4956_v53 = vld [vmem:[%s5409_s30 + $0x54] sm:$0xf0]  ;;  %v5067_v58 = vld [vmem:[%s5409_s30 + $0x3d4] sm:$0xf] }
 0x1e2   : > { %2980 = vmatpush.bf16.msrb.mxu3 %v4551_v31  ;;  %v2704_v31 = vadd.f32 %v2703_v63, %v2690_v52  ;;  %v3831_v11 = vor.u32 %v4956_v53, %v3830_v3  ;;  %v5031_v52 = vld [vmem:[%s5409_s30 + $0x2b4] sm:$0xf]  ;;  %v4977_v63 = vld [vmem:[%s5409_s30 + $0x104] sm:$0xf] }
 0x1e3   : > { %2942 = vmatpush.bf16.msrb.mxu0 %v3951_v54  ;;  %v5004_v54 = vld [vmem:[%s5409_s30 + $0x1d4] sm:$0xf0] }
 0x1e4   : > { %2955 = vmatpush.bf16.msrb.mxu1 %v4143_v8  ;;  %v4214_v8 = vld [vmem:[%s5409_s30 + $0x340] sm:$0xf]  ;;  %v2705_v25 = vpop.f32.mrf.mxu1  ;;  %v2729_v9 = vpop.f32.mrf.mxu3 }
 0x1e5   : > { %2968 = vmatpush.bf16.msrb.mxu2 %v4335_v5  ;;  %v4023_v5 = vor.u32 %v5004_v54, %v4022_v60  ;;  %v4215_v14 = vor.u32 %v5052_v36, %v4214_v8  ;;  %v5025_v60 = vld [vmem:[%s5409_s30 + $0x284] sm:$0xf]  ;;  %v4312_v8 = vld [vmem:[%s5409_s30 + $0x418] sm:$0xf0]  ;;  %v4670_v36 = vld [vmem:[%s5409_s30 + $0x6d0] sm:$0xf] }
 0x1e6   : > { %2981 = vmatpush.bf16.msrb.mxu3 %v4527_v10  ;;  %v4950_v10 = vld [vmem:[%s5409_s30 + $0x24] sm:$0xf0]  ;;  %v4671_v27 = vor.u32 %v5166_v12, %v4670_v36  ;;  %v5013_v25 = vld [vmem:[%s5409_s30 + $0x224] sm:$0xf]  ;;  %v4947_v36 = vld [vmem:[%s5409_s30 + $0x14] sm:$0xf] }
 0x1e7   : > { %2943 = vmatpush.bf16.msrb.mxu0 %v3927_v46  ;;  %v4998_v46 = vld [vmem:[%s5409_s30 + $0x1a4] sm:$0xf0]  ;;  %v3807_v17 = vor.u32 %v4950_v10, %v3806_v18  ;;  %v4695_v18 = vor.u32 %v5172_v32, %v4694_v38  ;;  %v3808_v12 = vld [vmem:[%s5409_s30 + $0x28] sm:$0xf0] }
 0x1e8   : > { %2956 = vmatpush.bf16.msrb.mxu1 %v4119_v13  ;;  %v2692_v13 = vpop.f32.mrf.mxu0  ;;  %v3999_v28 = vor.u32 %v4998_v46, %v3998_v47  ;;  %v5019_v46 = vld [vmem:[%s5409_s30 + $0x254] sm:$0xf] }
 0x1e9   : > { %2969 = vmatpush.bf16.msrb.mxu2 %v4311_v16  ;;  %v5046_v16 = vld [vmem:[%s5409_s30 + $0x324] sm:$0xf0]  ;;  %v4288_v13 = vld [vmem:[%s5409_s30 + $0x3e8] sm:$0xf0]  ;;  %v4099_v24 = vor.u32 %v5019_v46, %v4096_v21 }
 0x1ea   : > { %2982 = vmatpush.bf16.msrb.mxu3 %v4503_v43  ;;  %v2716_v43 = vpop.f32.mrf.mxu2  ;;  %v4191_v45 = vor.u32 %v5046_v16, %v4190_v15  ;;  %v5160_v15 = vld [vmem:[%s5409_s30 + $0x6b4] sm:$0xf0]  ;;  %v4291_v55 = vor.u32 %v5067_v58, %v4288_v13  ;;  %v4995_v58 = vld [vmem:[%s5409_s30 + $0x194] sm:$0xf]  ;;  %v4000_v13 = vld [vmem:[%s5409_s30 + $0x1a8] sm:$0xf0] }
 0x1eb   : > { %2944 = vmatpush.bf16.msrb.mxu0 %v3903_v23  ;;  %v5037_v23 = vld [vmem:[%s5409_s30 + $0x2e4] sm:$0xf] }
 0x1ec   : > { %2957 = vmatpush.bf16.msrb.mxu1 %v4095_v37  ;;  %v2717_v37 = vadd.f32 %v2716_v43, %v2704_v31  ;;  %v4171_v30 = vor.u32 %v5037_v23, %v4168_v33  ;;  %v2731_v54 = vpop.f32.mrf.mxu3  ;;  %v4965_v43 = vld [vmem:[%s5409_s30 + $0xa4] sm:$0xf] }
 0x1ed   : > { %2970 = vmatpush.bf16.msrb.mxu2 %v4287_v34  ;;  %v5085_v34 = vld [vmem:[%s5409_s30 + $0x464] sm:$0xf] }
 0x1ee   : > { %2983 = vmatpush.bf16.msrb.mxu3 %v4479_v39  ;;  %v4360_v39 = vld [vmem:[%s5409_s30 + $0x478] sm:$0xf0]  ;;  %v2730_v19 = vadd.f32 %v2729_v9, %v2717_v37  ;;  %v5049_v54 = vld [vmem:[%s5409_s30 + $0x344] sm:$0xf] }
 0x1ef   : > { %2945 = vmatpush.bf16.msrb.mxu0 %v3879_v1  ;;  %v4718_v1 = vld [vmem:[%s5409_s30 + $0x730] sm:$0xf]  ;;  %v4363_v50 = vor.u32 %v5085_v34, %v4360_v39  ;;  %v4072_v9 = vld [vmem:[%s5409_s30 + $0x238] sm:$0xf0]  ;;  %v5154_v39 = vld [vmem:[%s5409_s30 + $0x684] sm:$0xf0] }
 0x1f0   : > { %2958 = vmatpush.bf16.msrb.mxu1 %v4071_v44  ;;  %v3952_v44 = vld [vmem:[%s5409_s30 + $0x148] sm:$0xf0]  ;;  %v4622_v34 = vld [vmem:[%s5409_s30 + $0x670] sm:$0xf] }
 0x1f1   : > { %2971 = vmatpush.bf16.msrb.mxu2 %v4263_v57  ;;  %v4719_v57 = vor.u32 %v5178_v20, %v4718_v1  ;;  %v3955_v42 = vor.u32 %v4983_v22, %v3952_v44  ;;  %v3856_v1 = vld [vmem:[%s5409_s30 + $0x88] sm:$0xf0]  ;;  %v4075_v20 = vor.u32 %v5013_v25, %v4072_v9  ;;  %v5007_v22 = vld [vmem:[%s5409_s30 + $0x1f4] sm:$0xf]  ;;  %v4623_v44 = vor.u32 %v5154_v39, %v4622_v34  ;;  %v5121_v34 = vld [vmem:[%s5409_s30 + $0x584] sm:$0xf] }
 0x1f2   : > { %2984 = vmatpush.bf16.msrb.mxu3 %v4455_v51  ;;  %v4144_v51 = vld [vmem:[%s5409_s30 + $0x2c8] sm:$0xf0]  ;;  %v2718_v3 = vpop.f32.mrf.mxu2  ;;  %v4504_v39 = vld [vmem:[%s5409_s30 + $0x598] sm:$0xf0] }
 0x1f3   : > { %2946 = vmatpush.bf16.msrb.mxu0 %v3855_v56  ;;  %v4336_v56 = vld [vmem:[%s5409_s30 + $0x448] sm:$0xf0]  ;;  %v4147_v53 = vor.u32 %v5031_v52, %v4144_v51  ;;  %v4598_v52 = vld [vmem:[%s5409_s30 + $0x640] sm:$0xf]  ;;  %v5001_v3 = vld [vmem:[%s5409_s30 + $0x1c4] sm:$0xf] }
 0x1f4   : > { %2959 = vmatpush.bf16.msrb.mxu1 %v4047_v2  ;;  %v3928_v2 = vld [vmem:[%s5409_s30 + $0x118] sm:$0xf0]  ;;  %v4339_v31 = vor.u32 %v5079_v62, %v4336_v56  ;;  %v4953_v56 = vld [vmem:[%s5409_s30 + $0x44] sm:$0xf]  ;;  %v4720_v25 = vld [vmem:[%s5409_s30 + $0x748] sm:$0xf0] }
 0x1f5   : > { %2972 = vmatpush.bf16.msrb.mxu2 %v4239_v6  ;;  %v4120_v6 = vld [vmem:[%s5409_s30 + $0x298] sm:$0xf0] }
 0x1f6   : > { %2985 = vmatpush.bf16.msrb.mxu3 %v4431_v7  ;;  %v5073_v7 = vld [vmem:[%s5409_s30 + $0x404] sm:$0xf]  ;;  %v4123_v10 = vor.u32 %v5025_v60, %v4120_v6  ;;  %v4024_v60 = vld [vmem:[%s5409_s30 + $0x1d8] sm:$0xf0] }
 0x1f7   : > { %2947 = vmatpush.bf16.msrb.mxu0 %v3831_v11  ;;  %v3931_v11 = vor.u32 %v4977_v63, %v3928_v2  ;;  %v4315_v47 = vor.u32 %v5073_v7, %v4312_v8  ;;  %v4574_v8 = vld [vmem:[%s5409_s30 + $0x610] sm:$0xf]  ;;  %v4027_v46 = vor.u32 %v5001_v3, %v4024_v60  ;;  %v4624_v3 = vld [vmem:[%s5409_s30 + $0x688] sm:$0xf0] }
 0x1f8   : > { %2960 = vmatpush.bf16.msrb.mxu1 %v4023_v5  ;;  %v3904_v5 = vld [vmem:[%s5409_s30 + $0xe8] sm:$0xf0] }
 0x1f9   : > { %2973 = vmatpush.bf16.msrb.mxu2 %v4215_v14  ;;  %v3907_v35 = vor.u32 %v4971_v41, %v3904_v5  ;;  %v5133_v41 = vld [vmem:[%s5409_s30 + $0x5e4] sm:$0xf]  ;;  %v4552_v5 = vld [vmem:[%s5409_s30 + $0x5f8] sm:$0xf0] }
 0x1fa   : > { %2986 = vmatpush.bf16.msrb.mxu3 %v4407_v40  ;;  %v4646_v40 = vld [vmem:[%s5409_s30 + $0x6a0] sm:$0xf] }
 0x1fb   : > { %2948 = vmatpush.bf16.msrb.mxu0 %v3807_v17  ;;  %v2742_v14 = vpop.f32.mrf.mxu0  ;;  %v3880_v17 = vld [vmem:[%s5409_s30 + $0xb8] sm:$0xf0]  ;;  %v4647_v37 = vor.u32 %v5160_v15, %v4646_v40  ;;  %v5043_v40 = vld [vmem:[%s5409_s30 + $0x314] sm:$0xf]  ;;  %v4192_v15 = vld [vmem:[%s5409_s30 + $0x328] sm:$0xf0] }
 0x1fc   : > { %2961 = vmatpush.bf16.msrb.mxu1 %v3999_v28  ;;  %v6574_v16 = vadd.f32 %v2742_v14, %v2730_v19  ;;  %v2755_v23 = vpop.f32.mrf.mxu1  ;;  %v5061_v28 = vld [vmem:[%s5409_s30 + $0x3a4] sm:$0xf]  ;;  %v3883_v33 = vor.u32 %v4965_v43, %v3880_v17  ;;  %v4555_v14 = vor.u32 %v5133_v41, %v4552_v5 }
 0x1fd   : > { %2974 = vmatpush.bf16.msrb.mxu2 %v4191_v45  ;;  %v4048_v45 = vld [vmem:[%s5409_s30 + $0x208] sm:$0xf0] }
 0x1fe   : > { %2987 = vmatpush.bf16.msrb.mxu3 %v4383_v48  ;;  %2949 = vmatmul.bf16.vlgmr.msrb.gmra.mxu0 %v6210_v4  ;;  %v5055_v48 = vld [vmem:[%s5409_s30 + $0x374] sm:$0xf]  ;;  %v4051_v63 = vor.u32 %v5007_v22, %v4048_v45 }
 0x1ff   : > { %2993 = vmatpush.bf16.msra.mxu0 %v4743_v29  ;;  %2962 = vmatmul.bf16.vlgmr.msrb.gmra.mxu1 %v6215_v0  ;;  %v4264_v29 = vld [vmem:[%s5409_s30 + $0x3b8] sm:$0xf0]  ;;  %v5115_v22 = vld [vmem:[%s5409_s30 + $0x554] sm:$0xf] }
 0x200   : > { %3006 = vmatpush.bf16.msra.mxu1 %v3979_v61  ;;  %2975 = vmatmul.bf16.vlgmr.msrb.gmra.mxu2 %v6222_v59  ;;  %v4959_v61 = vld [vmem:[%s5409_s30 + $0x74] sm:$0xf]  ;;  %v4267_v19 = vor.u32 %v5061_v28, %v4264_v29  ;;  %v4195_v28 = vor.u32 %v5043_v40, %v4192_v15 }
 0x201   : > { %3019 = vmatpush.bf16.msra.mxu2 %v4171_v30  ;;  %2988 = vmatmul.bf16.vlgmr.msrb.gmra.mxu3 %v6229_v26  ;;  %v4240_v30 = vld [vmem:[%s5409_s30 + $0x388] sm:$0xf0]  ;;  %v5163_v45 = vld [vmem:[%s5409_s30 + $0x6d4] sm:$0xf] }
 0x202   : > { %3032 = vmatpush.bf16.msra.mxu3 %v4363_v50  ;;  %v3859_v50 = vor.u32 %v4959_v61, %v3856_v1  ;;  %v4243_v2 = vor.u32 %v5055_v48, %v4240_v30  ;;  %v5169_v61 = vld [vmem:[%s5409_s30 + $0x704] sm:$0xf]  ;;  %v4696_v1 = vld [vmem:[%s5409_s30 + $0x718] sm:$0xf0]  ;;  %v4672_v48 = vld [vmem:[%s5409_s30 + $0x6e8] sm:$0xf0] }
 0x203   : > { %2994 = vmatpush.bf16.msra.mxu0 %v4719_v57  ;;  %v5148_v57 = vld [vmem:[%s5409_s30 + $0x654] sm:$0xf0]  ;;  %v2744_v51 = vpop.f32.mrf.mxu0  ;;  %v2768_v62 = vpop.f32.mrf.mxu2  ;;  %v4675_v30 = vor.u32 %v5163_v45, %v4672_v48  ;;  %v1239_v45 = vld [vmem:[#allocation3] sm:$0xff] }
 0x204   : > { %3007 = vmatpush.bf16.msra.mxu1 %v3955_v42  ;;  %v3832_v42 = vld [vmem:[%s5409_s30 + $0x58] sm:$0xf0]  ;;  %v2757_v38 = vpop.f32.mrf.mxu1  ;;  %v2769_v32 = vadd.f32 %v2768_v62, %v2755_v23  ;;  %v5127_v23 = vld [vmem:[%s5409_s30 + $0x5b4] sm:$0xf]  ;;  %v5157_v51 = vld [vmem:[%s5409_s30 + $0x6a4] sm:$0xf] }
 0x205   : > { %3020 = vmatpush.bf16.msra.mxu2 %v4147_v53  ;;  %v2781_v53 = vpop.f32.mrf.mxu3  ;;  %v3835_v7 = vor.u32 %v4953_v56, %v3832_v42  ;;  %v4648_v62 = vld [vmem:[%s5409_s30 + $0x6b8] sm:$0xf0] }
 0x206   : > { %3033 = vmatpush.bf16.msra.mxu3 %v4339_v31  ;;  %v4599_v31 = vor.u32 %v5148_v57, %v4598_v52  ;;  %v6598_v6 = vadd.f32 %v2781_v53, %v2769_v32  ;;  %v4456_v52 = vld [vmem:[%s5409_s30 + $0x538] sm:$0xf0]  ;;  %v4651_v38 = vor.u32 %v5157_v51, %v4648_v62  ;;  %v5103_v32 = vld [vmem:[%s5409_s30 + $0x4f4] sm:$0xf] }
 0x207   : > { %2995 = vmatpush.bf16.msra.mxu0 %v4695_v18  ;;  %v4216_v18 = vld [vmem:[%s5409_s30 + $0x358] sm:$0xf0] }
 0x208   : > { %3008 = vmatpush.bf16.msra.mxu1 %v3931_v11  ;;  %v5142_v11 = vld [vmem:[%s5409_s30 + $0x624] sm:$0xf0] }
 0x209   : > { %3021 = vmatpush.bf16.msra.mxu2 %v4123_v10  ;;  %v5181_v10 = vld [vmem:[%s5409_s30 + $0x764] sm:$0xf]  ;;  %v4575_v21 = vor.u32 %v5142_v11, %v4574_v8  ;;  %v4600_v11 = vld [vmem:[%s5409_s30 + $0x658] sm:$0xf0] }
 0x20a   : > { %3034 = vmatpush.bf16.msra.mxu3 %v4315_v47  ;;  %v4744_v47 = vld [vmem:[%s5409_s30 + $0x778] sm:$0xf0]  ;;  %v5145_v8 = vld [vmem:[%s5409_s30 + $0x644] sm:$0xf] }
 0x20b   : > { %2996 = vmatpush.bf16.msra.mxu0 %v4671_v27  ;;  %v4219_v27 = vor.u32 %v5049_v54, %v4216_v18  ;;  %v2770_v43 = vpop.f32.mrf.mxu2  ;;  %v4747_v17 = vor.u32 %v5181_v10, %v4744_v47  ;;  %v5097_v18 = vld [vmem:[%s5409_s30 + $0x4c4] sm:$0xf]  ;;  %v4603_v10 = vor.u32 %v5145_v8, %v4600_v11  ;;  %v5091_v47 = vld [vmem:[%s5409_s30 + $0x494] sm:$0xf] }
 0x20c   : > { %3009 = vmatpush.bf16.msra.mxu1 %v3907_v35  ;;  %v3811_v35 = vor.u32 %v4947_v36, %v3808_v12 }
 0x20d   : > { %3022 = vmatpush.bf16.msra.mxu2 %v4099_v24  ;;  %v4528_v24 = vld [vmem:[%s5409_s30 + $0x5c8] sm:$0xf0]  ;;  %v2783_v9 = vpop.f32.mrf.mxu3 }
 0x20e   : > { %3035 = vmatpush.bf16.msra.mxu3 %v4291_v55  ;;  %v5175_v55 = vld [vmem:[%s5409_s30 + $0x734] sm:$0xf]  ;;  %v4531_v29 = vor.u32 %v5127_v23, %v4528_v24 }
 0x20f   : > { %2997 = vmatpush.bf16.msra.mxu0 %v4647_v37  ;;  %v4003_v37 = vor.u32 %v4995_v58, %v4000_v13 }
 0x210   : > { %3010 = vmatpush.bf16.msra.mxu1 %v3883_v33  ;;  %v4723_v33 = vor.u32 %v5175_v55, %v4720_v25 }
 0x211   : > { %3023 = vmatpush.bf16.msra.mxu2 %v4075_v20  ;;  %v4507_v20 = vor.u32 %v5121_v34, %v4504_v39 }
 0x212   : > { %3036 = vmatpush.bf16.msra.mxu3 %v4267_v19  ;;  %v4699_v19 = vor.u32 %v5169_v61, %v4696_v1 }
 0x213   : > { %2998 = vmatpush.bf16.msra.mxu0 %v4623_v44  ;;  %v4480_v44 = vld [vmem:[%s5409_s30 + $0x568] sm:$0xf0] }
 0x214   : > { %3011 = vmatpush.bf16.msra.mxu1 %v3859_v50  ;;  %v5109_v50 = vld [vmem:[%s5409_s30 + $0x524] sm:$0xf] }
 0x215   : > { %3024 = vmatpush.bf16.msra.mxu2 %v4051_v63  ;;  %v4459_v42 = vor.u32 %v5109_v50, %v4456_v52  ;;  %v4432_v63 = vld [vmem:[%s5409_s30 + $0x508] sm:$0xf0] }
 0x216   : > { %3037 = vmatpush.bf16.msra.mxu3 %v4243_v2  ;;  %v5151_v2 = vld [vmem:[%s5409_s30 + $0x674] sm:$0xf] }
 0x217   : > { %2999 = vmatpush.bf16.msra.mxu0 %v4599_v31  ;;  %v4435_v31 = vor.u32 %v5103_v32, %v4432_v63  ;;  %v4627_v54 = vor.u32 %v5151_v2, %v4624_v3 }
 0x218   : > { %3012 = vmatpush.bf16.msra.mxu1 %v3835_v7 }
 0x219   : > { %3025 = vmatpush.bf16.msra.mxu2 %v4027_v46  ;;  %v4384_v46 = vld [vmem:[%s5409_s30 + $0x4a8] sm:$0xf0] }
 0x21a   : > { %3038 = vmatpush.bf16.msra.mxu3 %v4219_v27  ;;  %v4576_v27 = vld [vmem:[%s5409_s30 + $0x628] sm:$0xf0] }
 0x21b   : > { %3000 = vmatpush.bf16.msra.mxu0 %v4575_v21  ;;  %v2794_v57 = vpop.f32.mrf.mxu0  ;;  %v4387_v21 = vor.u32 %v5091_v47, %v4384_v46  ;;  %v1240_v47 = vld [vmem:[#allocation3 + $0x8] sm:$0xf] }
 0x21c   : > { %3013 = vmatpush.bf16.msra.mxu1 %v3811_v35  ;;  %v2807_v56 = vpop.f32.mrf.mxu1 }
 0x21d   : > { %3026 = vmatpush.bf16.msra.mxu2 %v4003_v37 }
 0x21e   : > { %3001 = vmatmul.bf16.vlgmr.msra.gmra.mxu0 %v6276_v49  ;;  %3039 = vmatpush.bf16.msra.mxu3 %v4195_v28 }
 0x21f   : > { %3045 = vmatpush.bf16.msrb.mxu0 %v4555_v14  ;;  %3014 = vmatmul.bf16.vlgmr.msra.gmra.mxu1 %v6210_v4  ;;  %v4483_v4 = vor.u32 %v5115_v22, %v4480_v44 }
 0x220   : > { %3058 = vmatpush.bf16.msrb.mxu1 %v4747_v17  ;;  %3027 = vmatmul.bf16.vlgmr.msra.gmra.mxu2 %v6215_v0  ;;  %v2795_v0 = vadd.f32 %v2794_v57, %v6598_v6  ;;  %v4408_v6 = vld [vmem:[%s5409_s30 + $0x4d8] sm:$0xf0] }
 0x221   : > { %3040 = vmatmul.bf16.vlgmr.msra.gmra.mxu3 %v6222_v59  ;;  %v4411_v5 = vor.u32 %v5097_v18, %v4408_v6 }
 0x222   : > { %v2808_v59 = vadd.f32 %v2807_v56, %v2795_v0 }
 0x223   : > { %3046 = vmatpush.bf16.msrb.mxu0 %v4531_v29  ;;  %v2820_v7 = vpop.f32.mrf.mxu2  ;;  %v2796_v36 = vpop.f32.mrf.mxu0 }
 0x224   : > { %3059 = vmatpush.bf16.msrb.mxu1 %v4723_v33  ;;  %v3077_v53 = vrot.slane %v2808_v59, 6  ;;  %v2809_v12 = vpop.f32.mrf.mxu1  ;;  %v2833_v41 = vpop.f32.mrf.mxu3 }
 0x225   : > { %v2834_v25 = vadd.f32 %v2833_v41, %v2820_v7 }
 0x226   : > { %v3082_v60 = vsel %vm3081_vm8, %v6574_v16, %v3077_v53  ;;  %v5139_v16 = vld [vmem:[%s5409_s30 + $0x614] sm:$0xf] }
 0x227   : > { %3047 = vmatpush.bf16.msrb.mxu0 %v4507_v20  ;;  %v4579_v58 = vor.u32 %v5139_v16, %v4576_v27 }
 0x228   : > { %3060 = vmatpush.bf16.msrb.mxu1 %v4699_v19 }
 0x22b   : > { %3048 = vmatpush.bf16.msrb.mxu0 %v4483_v4  ;;  %v2822_v13 = vpop.f32.mrf.mxu2 }
 0x22c   : > { %3061 = vmatpush.bf16.msrb.mxu1 %v4675_v30  ;;  %v2835_v35 = vpop.f32.mrf.mxu3 }
 0x22f   : > { %3049 = vmatpush.bf16.msrb.mxu0 %v4459_v42 }
 0x230   : > { %3062 = vmatpush.bf16.msrb.mxu1 %v4651_v38 }
 0x233   : > { %3050 = vmatpush.bf16.msrb.mxu0 %v4435_v31 }
 0x234   : > { %3063 = vmatpush.bf16.msrb.mxu1 %v4627_v54 }
 0x237   : > { %3051 = vmatpush.bf16.msrb.mxu0 %v4411_v5 }
 0x238   : > { %3064 = vmatpush.bf16.msrb.mxu1 %v4603_v10 }
 0x23b   : > { %3052 = vmatpush.bf16.msrb.mxu0 %v4387_v21  ;;  %v2846_v14 = vpop.f32.mrf.mxu0 }
 0x23c   : > { %3065 = vmatpush.bf16.msrb.mxu1 %v4579_v58  ;;  %v2859_v40 = vpop.f32.mrf.mxu1  ;;  %v2847_v37 = vadd.f32 %v2846_v14, %v2834_v25 }
 0x23e   : > { %3053 = vmatmul.bf16.vlgmr.msrb.gmra.mxu0 %v6229_v26  ;;  %v2860_v33 = vadd.f32 %v2859_v40, %v2847_v37 }
 0x23f   : > { %3066 = vmatmul.bf16.vlgmr.msrb.gmra.mxu1 %v6276_v49 }
 0x243   : > { %v2872_v15 = vpop.f32.mrf.mxu2  ;;  %v2848_v43 = vpop.f32.mrf.mxu0 }
 0x244   : > { %v2885_v17 = vpop.f32.mrf.mxu3  ;;  %v2861_v23 = vpop.f32.mrf.mxu1  ;;  %v2873_v61 = vadd.f32 %v2872_v15, %v2860_v33 }
 0x246   : > { %v3078_v22 = vrot.slane %v2873_v61, 4 }
 0x24b   : > { %v2874_v24 = vpop.f32.mrf.mxu2 }
 0x24c   : > { %v2887_v55 = vpop.f32.mrf.mxu3 }
 0x25b   : > { %v2898_v9 = vpop.f32.mrf.mxu0 }
 0x25c   : > { %v2899_v28 = vadd.f32 %v2898_v9, %v2885_v17  ;;  %v2911_v29 = vpop.f32.mrf.mxu1 }
 0x25e   : > { %v2912_v34 = vadd.f32 %v2911_v29, %v2899_v28 }
 0x263   : > { %v2924_v39 = vpop.f32.mrf.mxu2  ;;  %v2900_v1 = vpop.f32.mrf.mxu0 }
 0x264   : > { %v2925_v26 = vadd.f32 %v2924_v39, %v2912_v34  ;;  %v2937_v49 = vpop.f32.mrf.mxu3  ;;  %v2913_v20 = vpop.f32.mrf.mxu1 }
 0x266   : > { %v2938_v19 = vadd.f32 %v2937_v49, %v2925_v26 }
 0x268   : > { %v3079_v44 = vrot.slane %v2938_v19, 2 }
 0x26a   : > { %v3084_v48 = vsel %vm3083_vm9, %v3078_v22, %v3079_v44 }
 0x26b   : > { %v3086_v4 = vsel %vm3085_vm10, %v3082_v60, %v3084_v48  ;;  %v2926_v30 = vpop.f32.mrf.mxu2 }
 0x26c   : > { %v3090_v50 = vadd.f32 %v3086_v4, %v1239_v45  ;;  %v2939_v52 = vpop.f32.mrf.mxu3 }
 0x26e   : > { %3092 = vst [vmem:[#allocation3] sm:$0xff] %v3090_v50 }
 0x27b   : > { %v2950_v51 = vpop.f32.mrf.mxu0 }
 0x27c   : > { %v2963_v57 = vpop.f32.mrf.mxu1 }
 0x27d   : > { %v2964_v18 = vadd.f32 %v2963_v57, %v2950_v51 }
 0x283   : > { %v2976_v0 = vpop.f32.mrf.mxu2  ;;  %v2952_v56 = vpop.f32.mrf.mxu0 }
 0x284   : > { %v2965_v62 = vpop.f32.mrf.mxu1  ;;  %v2989_v42 = vpop.f32.mrf.mxu3  ;;  %v2977_v7 = vadd.f32 %v2976_v0, %v2964_v18 }
 0x286   : > { %v2990_v36 = vadd.f32 %v2989_v42, %v2977_v7 }
 0x28b   : > { %v2978_v59 = vpop.f32.mrf.mxu2 }
 0x28c   : > { %v2991_v38 = vpop.f32.mrf.mxu3 }
 0x29b   : > { %v3002_v32 = vpop.f32.mrf.mxu0 }
 0x29c   : > { %v3015_v63 = vpop.f32.mrf.mxu1  ;;  %v3003_v10 = vadd.f32 %v3002_v32, %v2990_v36 }
 0x2a3   : > { %v3004_v2 = vpop.f32.mrf.mxu0  ;;  %v3028_v53 = vpop.f32.mrf.mxu2 }
 0x2a4   : > { %v3017_v3 = vpop.f32.mrf.mxu1  ;;  %v3041_v31 = vpop.f32.mrf.mxu3  ;;  %v3029_v6 = vadd.f32 %v3028_v53, %v3015_v63 }
 0x2a6   : > { %v3042_v8 = vadd.f32 %v3041_v31, %v3029_v6 }
 0x2ab   : > { %v3030_v54 = vpop.f32.mrf.mxu2 }
 0x2ac   : > { %v3043_v60 = vpop.f32.mrf.mxu3 }
 0x2bb   : > { %v3054_v11 = vpop.f32.mrf.mxu0 }
 0x2bc   : > { %v3055_v12 = vadd.f32 %v3054_v11, %v3042_v8  ;;  %v3067_v41 = vpop.f32.mrf.mxu1 }
 0x2be   : > { %v3068_v5 = vadd.f32 %v3067_v41, %v3055_v12 }
 0x2c0   : > { %v3080_v46 = vrot.slane %v3068_v5, 6 }
 0x2c1   : > { %3097 = sbr.rel (%p4748_p5) target bundleno = 909 (0x38d), region = 56 }
 0x2c2   : > { %v3087_v16 = vsel %vm3081_vm8, %v3003_v10, %v3080_v46 }
 0x2c3   : > { %v3091_v27 = vadd.f32 %v3087_v16, %v1240_v47  ;;  %v3056_v21 = vpop.f32.mrf.mxu0 }
 0x2c4   : > { %v3069_v58 = vpop.f32.mrf.mxu1 }
 0x2c5   : > { %3093 = vst [vmem:[#allocation3 + $0x8] sm:$0xf] %v3091_v27 }
 0x2c6   : > { %v5192_v13 = vld [vmem:[%s6819_s5 + $0x38] sm:$0xff]  ;;  %v5191_v14 = vld [vmem:[%s6819_s5 + $0x30] sm:$0xff]  ;;  %v5190_v24 = vld [vmem:[%s6819_s5 + $0x28] sm:$0xff] }
 0x2c7   : > { %v5200_v35 = vld [vmem:[%s6819_s5 + $0x78] sm:$0xff]  ;;  %3533 = vmatpush.bf16.msra.mxu0 %v5192_v13  ;;  %v5199_v40 = vld [vmem:[%s6819_s5 + $0x70] sm:$0xff]  ;;  %v5198_v55 = vld [vmem:[%s6819_s5 + $0x68] sm:$0xff] }
 0x2c8   : > { %3546 = vmatpush.bf16.msra.mxu1 %v5200_v35  ;;  %v5208_v15 = vld [vmem:[%s6819_s5 + $0xb8] sm:$0xff]  ;;  %v5207_v17 = vld [vmem:[%s6819_s5 + $0xb0] sm:$0xff]  ;;  %v5206_v25 = vld [vmem:[%s6819_s5 + $0xa8] sm:$0xff] }
 0x2c9   : > { %v5216_v43 = vld [vmem:[%s6819_s5 + $0xf8] sm:$0xff]  ;;  %3559 = vmatpush.bf16.msra.mxu2 %v5208_v15  ;;  %v5215_v23 = vld [vmem:[%s6819_s5 + $0xf0] sm:$0xff]  ;;  %v5214_v37 = vld [vmem:[%s6819_s5 + $0xe8] sm:$0xff] }
 0x2ca   : > { %3572 = vmatpush.bf16.msra.mxu3 %v5216_v43  ;;  %v5189_v9 = vld [vmem:[%s6819_s5 + $0x20] sm:$0xff]  ;;  %v5188_v19 = vld [vmem:[%s6819_s5 + $0x18] sm:$0xff]  ;;  %v5187_v42 = vld [vmem:[%s6819_s5 + $0x10] sm:$0xff] }
 0x2cb   : > { %3534 = vmatpush.bf16.msra.mxu0 %v5191_v14  ;;  %v5197_v28 = vld [vmem:[%s6819_s5 + $0x60] sm:$0xff]  ;;  %v5196_v22 = vld [vmem:[%s6819_s5 + $0x58] sm:$0xff]  ;;  %v5195_v59 = vld [vmem:[%s6819_s5 + $0x50] sm:$0xff] }
 0x2cc   : > { %3547 = vmatpush.bf16.msra.mxu1 %v5199_v40  ;;  %v3100_v29 = vld [vmem:[%s6818_s4] sm:$0x3f]  ;;  %v3099_v30 = vld [vmem:[#allocation3 + $0x8] sm:$0xf]  ;;  %v5204_v52 = vld [vmem:[%s6819_s5 + $0x98] sm:$0xff] }
 0x2cd   : > { %3560 = vmatpush.bf16.msra.mxu2 %v5207_v17  ;;  %v5205_v33 = vld [vmem:[%s6819_s5 + $0xa0] sm:$0xff]  ;;  %v3102_v39 = vperm.slane %v3100_v29, 0  ;;  %v3103_v61 = vperm.slane %v3100_v29, 1  ;;  %v3104_v26 = vperm.slane %v3100_v29, 2  ;;  %v3105_v1 = vperm.slane %v3100_v29, 3  ;;  %v5212_v57 = vld [vmem:[%s6819_s5 + $0xd8] sm:$0xff] }
 0x2ce   : > { %3573 = vmatpush.bf16.msra.mxu3 %v5215_v23  ;;  %v5213_v34 = vld [vmem:[%s6819_s5 + $0xe0] sm:$0xff]  ;;  %v3106_v49 = vperm.slane %v3100_v29, 4  ;;  %v3107_v20 = vperm.slane %v3100_v29, 5  ;;  %v5203_v63 = vld [vmem:[%s6819_s5 + $0x90] sm:$0xff]  ;;  %v5186_v31 = vld [vmem:[%s6819_s5 + $0x8] sm:$0xff] }
 0x2cf   : > { %3535 = vmatpush.bf16.msra.mxu0 %v5190_v24  ;;  %v3108_v44 = vrot.slane %v3103_v61, 6  ;;  %v3109_v45 = vrot.slane %v3104_v26, 4  ;;  %v3110_v48 = vrot.slane %v3105_v1, 2  ;;  %v3098_v4 = vld [vmem:[#allocation3] sm:$0xff]  ;;  %v5211_v2 = vld [vmem:[%s6819_s5 + $0xd0] sm:$0xff]  ;;  %v5194_v54 = vld [vmem:[%s6819_s5 + $0x48] sm:$0xff] }
 0x2d0   : > { %3548 = vmatpush.bf16.msra.mxu1 %v5198_v55  ;;  %v3111_v50 = vrot.slane %v3107_v20, 6  ;;  %v5202_v60 = vld [vmem:[%s6819_s5 + $0x88] sm:$0xff]  ;;  %v5185_v6 = vld [vmem:[%s6819_s5] sm:$0xff]  ;;  %v5224_v8 = vld [vmem:[%s6819_s5 + $0x138] sm:$0xff] }
 0x2d1   : > { %3561 = vmatpush.bf16.msra.mxu2 %v5206_v25  ;;  %v3112_v51 = vsel %vm3081_vm8, %v3102_v39, %v3108_v44  ;;  %v3113_v62 = vsel %vm3083_vm9, %v3109_v45, %v3110_v48  ;;  %v5210_v18 = vld [vmem:[%s6819_s5 + $0xc8] sm:$0xff]  ;;  %v5193_v7 = vld [vmem:[%s6819_s5 + $0x40] sm:$0xff]  ;;  %v5232_v11 = vld [vmem:[%s6819_s5 + $0x178] sm:$0xff] }
 0x2d2   : > { %3574 = vmatpush.bf16.msra.mxu3 %v5214_v37  ;;  %v3114_v0 = vsel %vm3085_vm10, %v3112_v51, %v3113_v62  ;;  %v3115_v56 = vsel %vm3081_vm8, %v3106_v49, %v3111_v50  ;;  %v5201_v36 = vld [vmem:[%s6819_s5 + $0x80] sm:$0xff]  ;;  %v5223_v27 = vld [vmem:[%s6819_s5 + $0x130] sm:$0xff]  ;;  %v5222_v35 = vld [vmem:[%s6819_s5 + $0x128] sm:$0xff] }
 0x2d3   : > { %3536 = vmatpush.bf16.msra.mxu0 %v5189_v9  ;;  %v3118_v38 = vadd.f32 %v3114_v0, %v3098_v4  ;;  %v3119_v32 = vadd.f32 %v3115_v56, %v3099_v30  ;;  %v5209_v12 = vld [vmem:[%s6819_s5 + $0xc0] sm:$0xff]  ;;  %v5231_v21 = vld [vmem:[%s6819_s5 + $0x170] sm:$0xff]  ;;  %v5230_v14 = vld [vmem:[%s6819_s5 + $0x168] sm:$0xff] }
 0x2d4   : > { %3549 = vmatpush.bf16.msra.mxu1 %v5197_v28  ;;  %v5221_v40 = vld [vmem:[%s6819_s5 + $0x120] sm:$0xff]  ;;  %v5220_v43 = vld [vmem:[%s6819_s5 + $0x118] sm:$0xff]  ;;  %v5219_v23 = vld [vmem:[%s6819_s5 + $0x110] sm:$0xff] }
 0x2d5   : > { %3562 = vmatpush.bf16.msra.mxu2 %v5205_v33  ;;  %v3120_v3 = vmax.f32 %v3118_v38, 0.0  ;;  %v3121_v53 = vmax.f32 %v3119_v32, 0.0  ;;  %v5229_v15 = vld [vmem:[%s6819_s5 + $0x160] sm:$0xff]  ;;  %v5228_v17 = vld [vmem:[%s6819_s5 + $0x158] sm:$0xff]  ;;  %v5227_v24 = vld [vmem:[%s6819_s5 + $0x150] sm:$0xff] }
 0x2d6   : > { %3575 = vmatpush.bf16.msra.mxu3 %v5213_v34  ;;  %v5218_v55 = vld [vmem:[%s6819_s5 + $0x108] sm:$0xff]  ;;  %v5217_v37 = vld [vmem:[%s6819_s5 + $0x100] sm:$0xff] }
 0x2d7   : > { %3537 = vmatpush.bf16.msra.mxu0 %v5188_v19  ;;  %3124 = vst [vmem:[#allocation1] ss:$4 sm:$0xff] %v3120_v3  ;;  %v5226_v25 = vld [vmem:[%s6819_s5 + $0x148] sm:$0xff]  ;;  %v5225_v9 = vld [vmem:[%s6819_s5 + $0x140] sm:$0xff] }
 0x2d8   : > { %3550 = vmatpush.bf16.msra.mxu1 %v5196_v22  ;;  %3126 = vst [vmem:[#allocation1 + $0x20] ss:$4 sm:$0xff] %v3121_v53  ;;  %v5311_v19 = vld [vmem:[%s6820_s6] ss:$0 sm:$0xff] }
 0x2d9   : > { %3563 = vmatpush.bf16.msra.mxu2 %v5204_v52 }
 0x2da   : > { %3576 = vmatpush.bf16.msra.mxu3 %v5212_v57 }
 0x2db   : > { %3538 = vmatpush.bf16.msra.mxu0 %v5187_v42 }
 0x2dc   : > { %3551 = vmatpush.bf16.msra.mxu1 %v5195_v59 }
 0x2dd   : > { %3564 = vmatpush.bf16.msra.mxu2 %v5203_v63 }
 0x2de   : > { %3577 = vmatpush.bf16.msra.mxu3 %v5211_v2  ;;  %v3127_v41 = vld.sshfl [vmem:[#allocation1] sm:$0xff pattern:$0x73625140]  ;;  %v3128_v5 = vld.sshfl [vmem:[#allocation1 + $0x8] sm:$0xff pattern:$0x73625140] }
 0x2df   : > { %3539 = vmatpush.bf16.msra.mxu0 %v5186_v31  ;;  %v3139_v10 = vpack.c.bf16 %v3127_v41, %v3127_v41  ;;  %v3140_v47 = vpack.c.bf16 %v3128_v5, %v3128_v5  ;;  %v3129_v46 = vld.sshfl [vmem:[#allocation1 + $0x10] sm:$0xff pattern:$0x73625140]  ;;  %v3130_v16 = vld.sshfl [vmem:[#allocation1 + $0x18] sm:$0xff pattern:$0x73625140] }
 0x2e0   : > { %3552 = vmatpush.bf16.msra.mxu1 %v5194_v54  ;;  %v3141_v58 = vpack.c.bf16 %v3129_v46, %v3129_v46  ;;  %v3142_v13 = vpack.c.bf16 %v3130_v16, %v3130_v16  ;;  %v3131_v28 = vld.sshfl [vmem:[#allocation1 + $0x20] sm:$0xff pattern:$0x73625140]  ;;  %v3132_v29 = vld.sshfl [vmem:[#allocation1 + $0x28] sm:$0xff pattern:$0x73625140] }
 0x2e1   : > { %3565 = vmatpush.bf16.msra.mxu2 %v5202_v60  ;;  %v3143_v33 = vpack.c.bf16 %v3131_v28, %v3131_v28  ;;  %v3144_v34 = vpack.c.bf16 %v3132_v29, %v3132_v29 }
 0x2e2   : > { %3578 = vmatpush.bf16.msra.mxu3 %v5210_v18 }
 0x2e3   : > { %3540 = vmatpush.bf16.msra.mxu0 %v5185_v6 }
 0x2e4   : > { %3553 = vmatpush.bf16.msra.mxu1 %v5193_v7 }
 0x2e5   : > { %3566 = vmatpush.bf16.msra.mxu2 %v5201_v36 }
 0x2e6   : > { %3579 = vmatpush.bf16.msra.mxu3 %v5209_v12  ;;  %3541 = vmatmul.bf16.vlgmr.msra.gmra.mxu0 %v3139_v10 }
 0x2e7   : > { %3585 = vmatpush.bf16.msrb.mxu0 %v5224_v8  ;;  %3554 = vmatmul.bf16.vlgmr.msra.gmra.mxu1 %v3140_v47 }
 0x2e8   : > { %3598 = vmatpush.bf16.msrb.mxu1 %v5232_v11  ;;  %3567 = vmatmul.bf16.vlgmr.msra.gmra.mxu2 %v3141_v58 }
 0x2e9   : > { %3580 = vmatmul.bf16.vlgmr.msra.gmra.mxu3 %v3142_v13 }
 0x2eb   : > { %3586 = vmatpush.bf16.msrb.mxu0 %v5223_v27 }
 0x2ec   : > { %3599 = vmatpush.bf16.msrb.mxu1 %v5231_v21 }
 0x2ef   : > { %3587 = vmatpush.bf16.msrb.mxu0 %v5222_v35 }
 0x2f0   : > { %3600 = vmatpush.bf16.msrb.mxu1 %v5230_v14 }
 0x2f3   : > { %3588 = vmatpush.bf16.msrb.mxu0 %v5221_v40 }
 0x2f4   : > { %3601 = vmatpush.bf16.msrb.mxu1 %v5229_v15 }
 0x2f7   : > { %3589 = vmatpush.bf16.msrb.mxu0 %v5220_v43 }
 0x2f8   : > { %3602 = vmatpush.bf16.msrb.mxu1 %v5228_v17 }
 0x2fb   : > { %3590 = vmatpush.bf16.msrb.mxu0 %v5219_v23 }
 0x2fc   : > { %3603 = vmatpush.bf16.msrb.mxu1 %v5227_v24 }
 0x2ff   : > { %3591 = vmatpush.bf16.msrb.mxu0 %v5218_v55 }
 0x300   : > { %3604 = vmatpush.bf16.msrb.mxu1 %v5226_v25 }
 0x303   : > { %3592 = vmatpush.bf16.msrb.mxu0 %v5217_v37 }
 0x304   : > { %3605 = vmatpush.bf16.msrb.mxu1 %v5225_v9 }
 0x306   : > { %3593 = vmatmul.bf16.vlgmr.msrb.gmra.mxu0 %v3143_v33 }
 0x307   : > { %3606 = vmatmul.bf16.vlgmr.msrb.gmra.mxu1 %v3144_v34 }
 0x363   : > { %v3542_v39 = vpop.f32.mrf.mxu0 }
 0x364   : > { %v3555_v61 = vpop.f32.mrf.mxu1  ;;  %v3543_v22 = vadd.f32 %v5311_v19, %v3542_v39 }
 0x366   : > { %v3556_v48 = vadd.f32 %v3555_v61, %v3543_v22 }
 0x36b   : > { %v3544_v26 = vpop.f32.mrf.mxu0  ;;  %v3568_v49 = vpop.f32.mrf.mxu2 }
 0x36c   : > { %v3557_v1 = vpop.f32.mrf.mxu1  ;;  %v3581_v20 = vpop.f32.mrf.mxu3  ;;  %v3569_v4 = vadd.f32 %v3568_v49, %v3556_v48 }
 0x36e   : > { %v3582_v30 = vadd.f32 %v3581_v20, %v3569_v4 }
 0x373   : > { %v3570_v44 = vpop.f32.mrf.mxu2 }
 0x374   : > { %v3583_v45 = vpop.f32.mrf.mxu3 }
 0x383   : > { %v3594_v50 = vpop.f32.mrf.mxu0 }
 0x384   : > { %v3607_v52 = vpop.f32.mrf.mxu1  ;;  %v3595_v57 = vadd.f32 %v3594_v50, %v3582_v30 }
 0x386   : > { %v3608_v51 = vadd.f32 %v3607_v52, %v3595_v57 }
 0x388   : > { %3611 = vst [vmem:[#allocation4] sm:$0x3] %v3608_v51 }
 0x38b   : > { %v3596_v62 = vpop.f32.mrf.mxu0 }
 0x38c   : > { %v3609_v0 = vpop.f32.mrf.mxu1 }
 0x38d PF: > { %p5286_p6 = scmp.eq.s32.totalorder %s5400_s25, 4  ;;  %s5353_s29 = smov [#allocation4]  }
 0x38e   : > { %s3618_s8 = sshll.u32 %s5353_s29, 4  ;;  %s3620_s11 = sshll.u32 %s6821_s7, 4  ;;  %s3619_s8 = int_to_ptr.vmem [resolvable:$true] %s3618_s8  ;;  %s3621_s11 = int_to_ptr.hbm [resolvable:$true] %s3620_s11 }
 0x38f   : > { %5283 = dma.vmem_to_hbm [thread:$0]  (%p5286_p6), %s3619_s8, 32, %s3621_s11, [#allocation5]  }
 0x390   : > { %5345 = dma.done.wait (%p5286_p6), [#allocation5], 32  }
 0x391   : > { %5347 = vsyncadd (%p5286_p6), [#allocation5], 4294967264 }
 0x392 PF: > { %s18_s24 = sadd.s32 1, %s5350_s24  }
 0x393   : > { %p15_p7 = scmp.ge.s32.totalorder %s18_s24, 7  }
 0x395   :  { %17 = sbr.rel (!%p15_p7) target bundleno = 1 (0x1), region = 105 }
 0x39a   :  { %3634 = vsyncpa [#allocation5], 1 }
 0x39b   :  { %3636 = vsyncpa [#allocation5 + $0x1], 1 }

</bundles_post_ra>
